<compile_context>
chip_gen: v7x
topology: tpu7x:2x2x1
jax: 0.10.0
libtpu: 0.0.40
codegen_flags: <defaults>
</compile_context>

<pallas_src>
import functools

import jax
import jax.numpy as jnp
from jax.experimental import pallas as pl
from jax.experimental.pallas import tpu as pltpu

NEG_INF = -1e30


def _rcca3d_kernel(gamma_ref, w_ref, b_ref, mask_ref, x_ref, out_ref, *, ci, recurrence):
    x = x_ref[...]                      # (C, P) float32, P = T*H*W in lanes (lane-dense)
    gamma = gamma_ref[0, 0]             # scalar from SMEM
    w_all = w_ref[...]                  # (2*Ci + C, C) fused q/k/v weight, read once (hoisted)
    b_all = b_ref[...]                  # (2*Ci + C, 1) fused bias
    neg_mask = mask_ref[...]            # (P, P) additive criss-cross mask: 0 allowed, -1e30 otherwise

    cur = x
    for _ in range(recurrence):         # RCCA3D_MODULE recurrence: out = cca(out) + x (data dependent)
        # fused 1x1x1 conv projection: one channel matmul, single pass over `cur`
        qkv = jnp.dot(w_all, cur, preferred_element_type=jnp.float32) + b_all     # (2Ci+C, P)
        q = qkv[:ci]                    # (Ci, P)
        k = qkv[ci:2 * ci]              # (Ci, P)
        v = qkv[2 * ci:]                # (C,  P)

        # gram[p, p'] = <q[:, p], k[:, p']>  (q^T k), f32 accumulation on the MXU
        gram = jax.lax.dot_general(q, k, (((0,), (0,)), ((), ())),
                                   preferred_element_type=jnp.float32)            # (P, P)

        # single masked softmax over the lane-dense key axis (criss-cross slots only survive)
        logits = gram + neg_mask
        m = jnp.max(logits, axis=-1, keepdims=True)                               # (P, 1)
        e = jnp.exp(logits - m)                                                   # masked -> exactly 0
        denom = jnp.sum(e, axis=-1, keepdims=True)
        att = e * pl.reciprocal(denom, approx=True)                               # (P, P)

        # ca_map aggregation: out[c, p] = sum_{p'} att[p, p'] * v[c, p']  (v @ att^T)
        agg = jax.lax.dot_general(v, att, (((1,), (1,)), ((), ())),
                                  preferred_element_type=jnp.float32)             # (C, P)

        cur = gamma * agg + x
    out_ref[...] = cur.astype(out_ref.dtype)


def rcca3d_pallas(x5, params, recurrence=3):
    N, C, T, H, W = x5.shape
    P = T * H * W
    Ci = params["wq"].shape[0]
    O = 2 * Ci + C

    # fused 2-D weights / biases (built once in the wrapper, not per recurrence step)
    w_all = jnp.concatenate([params["wq"], params["wk"], params["wv"]], axis=0).astype(jnp.float32)
    b_all = jnp.concatenate([params["bq"], params["bk"], params["bv"]], axis=0).reshape(O, 1).astype(jnp.float32)
    gamma = jnp.reshape(params["gamma"], (1, 1)).astype(jnp.float32)

    # criss-cross adjacency over flattened positions p = (t*H + h)*W + w, as an additive mask.
    # Allowed keys of (t,h,w): same (t,h) row, same (t,w) column, same (h,w) temporal line.
    # Self is counted exactly once -> identical softmax to the (H+W+T-2)-slot CCA3D weights.
    pos = jnp.arange(P, dtype=jnp.int32)
    t_id, h_id, w_id = pos // (H * W), (pos // W) % H, pos % W
    same_t = t_id[:, None] == t_id[None, :]
    same_h = h_id[:, None] == h_id[None, :]
    same_w = w_id[:, None] == w_id[None, :]
    allowed = (same_t & same_h) | (same_t & same_w) | (same_h & same_w)
    neg_mask = jnp.where(allowed, 0.0, NEG_INF).astype(jnp.float32)               # (P, P)

    x3 = x5.reshape(N, C, P).astype(jnp.float32)                                  # lane-dense clips

    kernel = functools.partial(_rcca3d_kernel, ci=Ci, recurrence=recurrence)
    out3 = pl.pallas_call(
        kernel,
        out_shape=jax.ShapeDtypeStruct((N, C, P), jnp.float32),
        grid=(N,),
        in_specs=[
            pl.BlockSpec((1, 1), lambda n: (0, 0), memory_space=pltpu.MemorySpace.SMEM),
            pl.BlockSpec((O, C), lambda n: (0, 0)),
            pl.BlockSpec((O, 1), lambda n: (0, 0)),
            pl.BlockSpec((P, P), lambda n: (0, 0)),
            pl.BlockSpec((None, C, P), lambda n: (n, 0, 0)),
        ],
        out_specs=pl.BlockSpec((None, C, P), lambda n: (n, 0, 0)),
        compiler_params=pltpu.CompilerParams(dimension_semantics=("parallel",)),
    )(gamma, w_all, b_all, neg_mask, x3)
    return out3.reshape(N, C, T, H, W)


def cca3d_wrapper_forward(x, params, n_segment, recurrence=3):
    # TODO(synk): `block` (externally injected nn.Module, e.g. a ResNet bottleneck) has no
    # definition in this module; it is modeled as identity so the CCA3D path is exercised exactly.
    nt, c, h, w = x.shape
    n = nt // n_segment
    x5 = jnp.transpose(x.reshape(n, n_segment, c, h, w), (0, 2, 1, 3, 4))   # (N, C, T, H, W)
    out5 = rcca3d_pallas(x5, params, recurrence=recurrence)
    return jnp.transpose(out5, (0, 2, 1, 3, 4)).reshape(nt, c, h, w)


# ---------------- pure-JAX reference (for self-check only) ----------------
def _cca_step_ref(x5, params):
    wq, bq = params["wq"], params["bq"]
    wk, bk = params["wk"], params["bk"]
    wv, bv = params["wv"], params["bv"]
    gamma = params["gamma"].reshape(())
    q = jnp.einsum("oc,ncthw->nothw", wq, x5) + bq[None, :, None, None, None]
    k = jnp.einsum("oc,ncthw->nothw", wk, x5) + bk[None, :, None, None, None]
    v = jnp.einsum("oc,ncthw->nothw", wv, x5) + bv[None, :, None, None, None]
    N, C, T, H, W = x5.shape
    e_w = jnp.einsum("ncthw,ncthv->nthwv", q, k)
    e_h = jnp.einsum("ncthw,nctgw->nthwg", q, k)
    e_t = jnp.einsum("ncthw,ncshw->nthws", q, k)
    eyeH = jnp.arange(H)[:, None] == jnp.arange(H)[None, :]
    eyeT = jnp.arange(T)[:, None] == jnp.arange(T)[None, :]
    e_h = jnp.where(eyeH[None, None, :, None, :], NEG_INF, e_h)
    e_t = jnp.where(eyeT[None, :, None, None, :], NEG_INF, e_t)
    att = jax.nn.softmax(jnp.concatenate([e_w, e_h, e_t], axis=-1), axis=-1)
    a_w, a_h, a_t = att[..., :W], att[..., W:W + H], att[..., W + H:]
    out = (jnp.einsum("nthwv,ncthv->ncthw", a_w, v)
           + jnp.einsum("nthwg,nctgw->ncthw", a_h, v)
           + jnp.einsum("nthws,ncshw->ncthw", a_t, v))
    return gamma * out


def cca3d_wrapper_ref(x, params, n_segment, recurrence=3):
    nt, c, h, w = x.shape
    n = nt // n_segment
    x5 = jnp.transpose(x.reshape(n, n_segment, c, h, w), (0, 2, 1, 3, 4))
    out5 = x5
    for _ in range(recurrence):
        out5 = _cca_step_ref(out5, params) + x5
    return jnp.transpose(out5, (0, 2, 1, 3, 4)).reshape(nt, c, h, w)


if __name__ == "__main__":
    # Small shapes: N=2 clips, C=8 channels (-> inter_dim=2), T=n_segment=4, H=W=8 (P=256 lanes).
    N, C, T, H, W = 2, 8, 4, 8, 8
    n_segment = T
    nt = N * n_segment
    Ci = C // 4

    key = jax.random.PRNGKey(0)
    kx, k1, k2, k3, k4, k5, k6 = jax.random.split(key, 7)
    x = jax.random.normal(kx, (nt, C, H, W), dtype=jnp.float32)
    params = {
        "wq": 0.3 * jax.random.normal(k1, (Ci, C), dtype=jnp.float32),
        "bq": 0.1 * jax.random.normal(k2, (Ci,), dtype=jnp.float32),
        "wk": 0.3 * jax.random.normal(k3, (Ci, C), dtype=jnp.float32),
        "bk": 0.1 * jax.random.normal(k4, (Ci,), dtype=jnp.float32),
        "wv": 0.3 * jax.random.normal(k5, (C, C), dtype=jnp.float32),
        "bv": 0.1 * jax.random.normal(k6, (C,), dtype=jnp.float32),
        "gamma": jnp.ones((1,), dtype=jnp.float32),   # nn.Parameter(torch.ones(1))
    }

    out = cca3d_wrapper_forward(x, params, n_segment)
    out = jax.block_until_ready(out)

    ref = cca3d_wrapper_ref(x, params, n_segment)
    err = float(jnp.max(jnp.abs(out - ref)))
    # tolerance accounts for pl.reciprocal(approx=True) in the softmax (per perf review) and
    # MXU accumulation-order differences over the 3-step recurrence; structural bugs would be >>1e-1.
    if out.shape != (nt, C, H, W) or not (err < 1e-2):
        raise RuntimeError(f"mismatch: shape={out.shape} max_abs_err={err}")
    print("KERNEL_OK")
</pallas_src>

<mosaic_0001>
module attributes {stable_mosaic.version = 11 : i64} {
  func.func @_rcca3d_kernel(%arg0: i32, %arg1: memref<1x1xf32, #tpu.memory_space<smem>>, %arg2: memref<12x8xf32, #tpu.memory_space<vmem>>, %arg3: memref<12x1xf32, #tpu.memory_space<vmem>>, %arg4: memref<256x256xf32, #tpu.memory_space<vmem>>, %arg5: memref<1x8x256xf32, #tpu.memory_space<vmem>>, %arg6: memref<1x8x256xf32, #tpu.memory_space<vmem>>) attributes {dimension_semantics = [#tpu.dimension_semantics<parallel>], iteration_bounds = array<i64: 2>, scalar_prefetch = 0 : i64, scratch_operands = 0 : i64, tpu.core_type = #tpu.core_type<tc>, window_params = [{transform_indices = @transform_0, window_bounds = array<i64: 1, 1>}, {pipeline_mode = #tpu.pipeline_mode<synchronous>, transform_indices = @transform_1, window_bounds = array<i64: 12, 8>}, {pipeline_mode = #tpu.pipeline_mode<synchronous>, transform_indices = @transform_2, window_bounds = array<i64: 12, 1>}, {pipeline_mode = #tpu.pipeline_mode<synchronous>, transform_indices = @transform_3, window_bounds = array<i64: 256, 256>}, {transform_indices = @transform_4, window_bounds = array<i64: 1, 8, 256>}, {transform_indices = @transform_5, window_bounds = array<i64: 1, 8, 256>}]} {
    %c0 = arith.constant 0 : index
    %c0_0 = arith.constant 0 : index
    %c0_1 = arith.constant 0 : index
    %0 = vector.load %arg5[%c0, %c0_0, %c0_1] : memref<1x8x256xf32, #tpu.memory_space<vmem>>, vector<1x8x256xf32>
    %1 = vector.shape_cast %0 : vector<1x8x256xf32> to vector<8x256xf32>
    %c0_2 = arith.constant 0 : index
    %c0_3 = arith.constant 0 : index
    %2 = memref.load %arg1[%c0_2, %c0_3] : memref<1x1xf32, #tpu.memory_space<smem>>
    %c0_4 = arith.constant 0 : index
    %c0_5 = arith.constant 0 : index
    %3 = vector.load %arg2[%c0_4, %c0_5] : memref<12x8xf32, #tpu.memory_space<vmem>>, vector<12x8xf32>
    %c0_6 = arith.constant 0 : index
    %c0_7 = arith.constant 0 : index
    %4 = vector.load %arg3[%c0_6, %c0_7] : memref<12x1xf32, #tpu.memory_space<vmem>>, vector<12x1xf32>
    %c0_8 = arith.constant 0 : index
    %c0_9 = arith.constant 0 : index
    %5 = vector.load %arg4[%c0_8, %c0_9] : memref<256x256xf32, #tpu.memory_space<vmem>>, vector<256x256xf32>
    %cst = arith.constant dense<0.000000e+00> : vector<12x256xf32>
    %6 = tpu.matmul %3, %1, %cst {dimension_numbers = #tpu.dot_dimension_numbers<[1], [0], [0], [1], [0, 0, 1, 1], [], []>} : vector<12x8xf32>, vector<8x256xf32>, vector<12x256xf32> -> vector<12x256xf32>
    %7 = vector.broadcast %4 : vector<12x1xf32> to vector<12x256xf32>
    %8 = arith.addf %6, %7 : vector<12x256xf32>
    %9 = vector.extract_strided_slice %8 {offsets = [0, 0], sizes = [2, 256], strides = [1, 1]} : vector<12x256xf32> to vector<2x256xf32>
    %10 = vector.extract_strided_slice %8 {offsets = [2, 0], sizes = [2, 256], strides = [1, 1]} : vector<12x256xf32> to vector<2x256xf32>
    %11 = vector.extract_strided_slice %8 {offsets = [4, 0], sizes = [8, 256], strides = [1, 1]} : vector<12x256xf32> to vector<8x256xf32>
    %cst_10 = arith.constant dense<0.000000e+00> : vector<256x256xf32>
    %12 = tpu.matmul %9, %10, %cst_10 {dimension_numbers = #tpu.dot_dimension_numbers<[0], [0], [1], [1], [0, 1, 1, 1], [], []>} : vector<2x256xf32>, vector<2x256xf32>, vector<256x256xf32> -> vector<256x256xf32>
    %13 = arith.addf %12, %5 : vector<256x256xf32>
    %cst_11 = arith.constant dense<0xFF800000> : vector<256xf32>
    %14 = vector.multi_reduction <maximumf>, %13, %cst_11 [1] : vector<256x256xf32> to vector<256xf32>
    %15 = vector.shape_cast %14 : vector<256xf32> to vector<256x1xf32>
    %16 = vector.broadcast %15 : vector<256x1xf32> to vector<256x256xf32>
    %17 = arith.subf %13, %16 : vector<256x256xf32>
    %18 = math.exp %17 : vector<256x256xf32>
    %cst_12 = arith.constant dense<0.000000e+00> : vector<256xf32>
    %19 = vector.multi_reduction <add>, %18, %cst_12 [1] : vector<256x256xf32> to vector<256xf32>
    %20 = vector.shape_cast %19 : vector<256xf32> to vector<256x1xf32>
    %21 = tpu.reciprocal %20 {approx = true} : vector<256x1xf32> -> vector<256x1xf32>
    %22 = vector.broadcast %21 : vector<256x1xf32> to vector<256x256xf32>
    %23 = arith.mulf %18, %22 : vector<256x256xf32>
    %cst_13 = arith.constant dense<0.000000e+00> : vector<8x256xf32>
    %24 = tpu.matmul %11, %23, %cst_13 {dimension_numbers = #tpu.dot_dimension_numbers<[1], [1], [0], [0], [0, 0, 1, 0], [], []>} : vector<8x256xf32>, vector<256x256xf32>, vector<8x256xf32> -> vector<8x256xf32>
    %25 = vector.broadcast %2 : f32 to vector<8x256xf32>
    %26 = arith.mulf %25, %24 : vector<8x256xf32>
    %27 = arith.addf %26, %1 : vector<8x256xf32>
    %cst_14 = arith.constant dense<0.000000e+00> : vector<12x256xf32>
    %28 = tpu.matmul %3, %27, %cst_14 {dimension_numbers = #tpu.dot_dimension_numbers<[1], [0], [0], [1], [0, 0, 1, 1], [], []>} : vector<12x8xf32>, vector<8x256xf32>, vector<12x256xf32> -> vector<12x256xf32>
    %29 = vector.broadcast %4 : vector<12x1xf32> to vector<12x256xf32>
    %30 = arith.addf %28, %29 : vector<12x256xf32>
    %31 = vector.extract_strided_slice %30 {offsets = [0, 0], sizes = [2, 256], strides = [1, 1]} : vector<12x256xf32> to vector<2x256xf32>
    %32 = vector.extract_strided_slice %30 {offsets = [2, 0], sizes = [2, 256], strides = [1, 1]} : vector<12x256xf32> to vector<2x256xf32>
    %33 = vector.extract_strided_slice %30 {offsets = [4, 0], sizes = [8, 256], strides = [1, 1]} : vector<12x256xf32> to vector<8x256xf32>
    %cst_15 = arith.constant dense<0.000000e+00> : vector<256x256xf32>
    %34 = tpu.matmul %31, %32, %cst_15 {dimension_numbers = #tpu.dot_dimension_numbers<[0], [0], [1], [1], [0, 1, 1, 1], [], []>} : vector<2x256xf32>, vector<2x256xf32>, vector<256x256xf32> -> vector<256x256xf32>
    %35 = arith.addf %34, %5 : vector<256x256xf32>
    %cst_16 = arith.constant dense<0xFF800000> : vector<256xf32>
    %36 = vector.multi_reduction <maximumf>, %35, %cst_16 [1] : vector<256x256xf32> to vector<256xf32>
    %37 = vector.shape_cast %36 : vector<256xf32> to vector<256x1xf32>
    %38 = vector.broadcast %37 : vector<256x1xf32> to vector<256x256xf32>
    %39 = arith.subf %35, %38 : vector<256x256xf32>
    %40 = math.exp %39 : vector<256x256xf32>
    %cst_17 = arith.constant dense<0.000000e+00> : vector<256xf32>
    %41 = vector.multi_reduction <add>, %40, %cst_17 [1] : vector<256x256xf32> to vector<256xf32>
    %42 = vector.shape_cast %41 : vector<256xf32> to vector<256x1xf32>
    %43 = tpu.reciprocal %42 {approx = true} : vector<256x1xf32> -> vector<256x1xf32>
    %44 = vector.broadcast %43 : vector<256x1xf32> to vector<256x256xf32>
    %45 = arith.mulf %40, %44 : vector<256x256xf32>
    %cst_18 = arith.constant dense<0.000000e+00> : vector<8x256xf32>
    %46 = tpu.matmul %33, %45, %cst_18 {dimension_numbers = #tpu.dot_dimension_numbers<[1], [1], [0], [0], [0, 0, 1, 0], [], []>} : vector<8x256xf32>, vector<256x256xf32>, vector<8x256xf32> -> vector<8x256xf32>
    %47 = vector.broadcast %2 : f32 to vector<8x256xf32>
    %48 = arith.mulf %47, %46 : vector<8x256xf32>
    %49 = arith.addf %48, %1 : vector<8x256xf32>
    %cst_19 = arith.constant dense<0.000000e+00> : vector<12x256xf32>
    %50 = tpu.matmul %3, %49, %cst_19 {dimension_numbers = #tpu.dot_dimension_numbers<[1], [0], [0], [1], [0, 0, 1, 1], [], []>} : vector<12x8xf32>, vector<8x256xf32>, vector<12x256xf32> -> vector<12x256xf32>
    %51 = vector.broadcast %4 : vector<12x1xf32> to vector<12x256xf32>
    %52 = arith.addf %50, %51 : vector<12x256xf32>
    %53 = vector.extract_strided_slice %52 {offsets = [0, 0], sizes = [2, 256], strides = [1, 1]} : vector<12x256xf32> to vector<2x256xf32>
    %54 = vector.extract_strided_slice %52 {offsets = [2, 0], sizes = [2, 256], strides = [1, 1]} : vector<12x256xf32> to vector<2x256xf32>
    %55 = vector.extract_strided_slice %52 {offsets = [4, 0], sizes = [8, 256], strides = [1, 1]} : vector<12x256xf32> to vector<8x256xf32>
    %cst_20 = arith.constant dense<0.000000e+00> : vector<256x256xf32>
    %56 = tpu.matmul %53, %54, %cst_20 {dimension_numbers = #tpu.dot_dimension_numbers<[0], [0], [1], [1], [0, 1, 1, 1], [], []>} : vector<2x256xf32>, vector<2x256xf32>, vector<256x256xf32> -> vector<256x256xf32>
    %57 = arith.addf %56, %5 : vector<256x256xf32>
    %cst_21 = arith.constant dense<0xFF800000> : vector<256xf32>
    %58 = vector.multi_reduction <maximumf>, %57, %cst_21 [1] : vector<256x256xf32> to vector<256xf32>
    %59 = vector.shape_cast %58 : vector<256xf32> to vector<256x1xf32>
    %60 = vector.broadcast %59 : vector<256x1xf32> to vector<256x256xf32>
    %61 = arith.subf %57, %60 : vector<256x256xf32>
    %62 = math.exp %61 : vector<256x256xf32>
    %cst_22 = arith.constant dense<0.000000e+00> : vector<256xf32>
    %63 = vector.multi_reduction <add>, %62, %cst_22 [1] : vector<256x256xf32> to vector<256xf32>
    %64 = vector.shape_cast %63 : vector<256xf32> to vector<256x1xf32>
    %65 = tpu.reciprocal %64 {approx = true} : vector<256x1xf32> -> vector<256x1xf32>
    %66 = vector.broadcast %65 : vector<256x1xf32> to vector<256x256xf32>
    %67 = arith.mulf %62, %66 : vector<256x256xf32>
    %cst_23 = arith.constant dense<0.000000e+00> : vector<8x256xf32>
    %68 = tpu.matmul %55, %67, %cst_23 {dimension_numbers = #tpu.dot_dimension_numbers<[1], [1], [0], [0], [0, 0, 1, 0], [], []>} : vector<8x256xf32>, vector<256x256xf32>, vector<8x256xf32> -> vector<8x256xf32>
    %69 = vector.broadcast %2 : f32 to vector<8x256xf32>
    %70 = arith.mulf %69, %68 : vector<8x256xf32>
    %71 = arith.addf %70, %1 : vector<8x256xf32>
    %c0_24 = arith.constant 0 : index
    %c0_25 = arith.constant 0 : index
    %c0_26 = arith.constant 0 : index
    %72 = vector.load %arg6[%c0_24, %c0_25, %c0_26] : memref<1x8x256xf32, #tpu.memory_space<vmem>>, vector<1x8x256xf32>
    %73 = vector.shape_cast %72 : vector<1x8x256xf32> to vector<8x256xf32>
    %74 = vector.shape_cast %71 : vector<8x256xf32> to vector<1x8x256xf32>
    tpu.vector_store %arg6[%c0_24, %c0_25, %c0_26], %74 {strides = array<i32>} : memref<1x8x256xf32, #tpu.memory_space<vmem>>, vector<1x8x256xf32>,
    return
  }
  func.func @transform_0(%arg0: i32) -> (i32, i32) {
    %c0_i32 = arith.constant 0 : i32
    %c0_i32_0 = arith.constant 0 : i32
    %c0_i32_1 = arith.constant 0 : i32
    return %c0_i32, %c0_i32_0 : i32, i32
  }
  func.func @transform_1(%arg0: i32) -> (i32, i32) {
    %c0_i32 = arith.constant 0 : i32
    %c0_i32_0 = arith.constant 0 : i32
    %c0_i32_1 = arith.constant 0 : i32
    return %c0_i32, %c0_i32_0 : i32, i32
  }
  func.func @transform_2(%arg0: i32) -> (i32, i32) {
    %c0_i32 = arith.constant 0 : i32
    %c0_i32_0 = arith.constant 0 : i32
    %c0_i32_1 = arith.constant 0 : i32
    return %c0_i32, %c0_i32_0 : i32, i32
  }
  func.func @transform_3(%arg0: i32) -> (i32, i32) {
    %c0_i32 = arith.constant 0 : i32
    %c0_i32_0 = arith.constant 0 : i32
    %c0_i32_1 = arith.constant 0 : i32
    return %c0_i32, %c0_i32_0 : i32, i32
  }
  func.func @transform_4(%arg0: i32) -> (i32, i32, i32) {
    %c0_i32 = arith.constant 0 : i32
    %c0_i32_0 = arith.constant 0 : i32
    %c0_i32_1 = arith.constant 0 : i32
    return %arg0, %c0_i32, %c0_i32_0 : i32, i32, i32
  }
  func.func @transform_5(%arg0: i32) -> (i32, i32, i32) {
    %c0_i32 = arith.constant 0 : i32
    %c0_i32_0 = arith.constant 0 : i32
    %c0_i32_1 = arith.constant 0 : i32
    return %arg0, %c0_i32, %c0_i32_0 : i32, i32, i32
  }
}

</mosaic_0001>

<bundles_post_ra>
// kernel: tpu_custom_call.1
= control target key start
LH: loop header
LB: loop body
LE: loop exit
PB: predicated region body
PF: predicated region fallthrough
CT: control target
= control target key end

     0   :  { %s6916_s0 = inlined_call_operand.<no memory space> [shape: f32[1,1], index: 0, kind: input, shape index: {}]   ;;  %s6917_s1 = inlined_call_operand.vmem [shape: f32[12,8], index: 1, kind: input, shape index: {}]   ;;  %s6918_s2 = inlined_call_operand.vmem [shape: f32[12,1], index: 2, kind: input, shape index: {}]   ;;  %s6919_s3 = inlined_call_operand.hbm [shape: f32[256,256], index: 3, kind: input, shape index: {}]   ;;  %s6920_s4 = inlined_call_operand.vmem [shape: f32[2,8,256], index: 4, kind: input, shape index: {}]   ;;  %s6921_s5 = inlined_call_operand.hbm [shape: f32[2,8,256], index: 5, kind: output, shape index: {}]  }
   0x1   :  { %10 = sst [smem:[#allocation2]] %s6916_s0 }
   0x2   :  { %11 = vsyncpa [#allocation4], 0 }
   0x3   :  { %12 = vsyncpa [#allocation5], 0 }
   0x4   :  { %14 = vsyncpa [#allocation5 + $0x1], 0  ;;  %s4841_s20 = smov 0   ;;  %s4843_s21 = smov 0  }
   0x5   :  { %s4845_s22 = smov 0   ;;  %s4847_s23 = smov 0  }
   0x6 LB: > { %s4862_s0 = sadd.s32 4294967295, %s4800_s23   ;;  %s3620_s24 = sadd.s32 4294967294, %s4800_s23   ;;  %s4800_s23 = sphi %s4847_s23, %s7211_s23   ;;  %s4796_s22 = sphi %s4845_s22, %s7210_s22   ;;  %s4792_s21 = sphi %s4843_s21, %s7209_s21   ;;  %s4788_s20 = sphi %s4841_s20, %s7208_s20  }
   0x7   : > { %s4866_s25 = sadd.s32 1, %s4800_s23   ;;  %s137_s26 = sadd.s32 1, %s4796_s22 }
   0x8   : > { %s134_s27 = ssub.s32 %s4800_s23, %s4866_s25  ;;  %p147_p0 = scmp.ne.s32.totalorder %s4796_s22, %s4792_s21 }
   0x9   : > { %p135_p1 = scmp.eq.s32.totalorder %s134_s27, 0  ;;  %p148_p2 = scmp.eq.s32.totalorder %s4862_s0, 1 }
   0xa   : > { %p153_p3 = scmp.ne.s32.totalorder %s4792_s21, %s4788_s20  ;;  %p154_p4 = scmp.eq.s32.totalorder %s3620_s24, 1 }
   0xb   : > { %s4877_s28 = scalar_select %p135_p1, %s4796_s22, %s137_s26  }
   0xc   : > { %p4879_p5 = por %p148_p2, %p147_p0  ;;  %p4883_p6 = por %p154_p4, %p153_p3 }
   0xd   : > { %p3621_p7 = scmp.ge.s32.totalorder %s4800_s23, 1  ;;  %p161_p8 = scmp.lt.s32.totalorder %s4800_s23, 3 }
   0xe   : > { %s7019_s29 = scalar_select %p4879_p5, 1, 0 }
   0xf   : > { %s7020_s30 = scalar_select %p4883_p6, 1, 0 }
  0x10   : > { %p6922_p9 = scmp.eq.s32.totalorder %s4862_s0, 0  ;;  %p4890_p10 = pnand %p3621_p7, %p161_p8 }
  0x11   : > { %s4802_s7 = smov [#allocation3]   ;;  %s4706_s12 = scalar_lea.hbm %s6919_s3, 8192 }
  0x12   : > { %s7021_s6 = scalar_select %p4890_p10, 1, 0 }
  0x13   : > { %s182_s8 = sshll.u32 %s4802_s7, 4  ;;  %p3942_p11 = pneg %p4890_p10  ;;  %s183_s8 = int_to_ptr.vmem [resolvable:$true] %s182_s8 }
  0x14   : > { %p4707_p13 = scmp.ne.s32.totalorder %s6919_s3, %s4706_s12  ;;  %p4713_p3 = scmp.lt.u32.totalorder %s4706_s12, %s6919_s3 }
  0x15   : > { %p4898_p12 = pnand %p6922_p9, %p3942_p11 }
  0x17   : > { %p4708_p0 = pneg %p4898_p12 }
  0x19   : > { %p4709_p1 = pnand %p4708_p0, %p4707_p13 }
  0x1b   : > { %p4710_p2 = pneg %p4709_p1 }
  0x1d   : > { %p4715_p4 = pnand %p4713_p3, %p4710_p2 }
  0x1f   : > { %4718 = shalt.err (!%p4715_p4)
}
  0x20   : > { %s4719_s17 = scalar_lea.vmem %s183_s8, 8192  ;;  %p4727_p9 = scmp.lt.s32.totalorder %s183_s8, %s183_s8 }
  0x21   : > { %p4720_p7 = scmp.ne.s32.totalorder %s183_s8, %s4719_s17  ;;  %p4728_p6 = scmp.lt.s32.totalorder %s4719_s17, %s4719_s17 }
  0x23   : > { %p4722_p8 = pnand %p4720_p7, %p4708_p0  ;;  %p4729_p5 = por %p4728_p6, %p4727_p9 }
  0x25   : > { %p4723_p11 = pneg %p4722_p8 }
  0x27   : > { %p4730_p10 = pnand %p4729_p5, %p4723_p11 }
  0x29   : > { %4733 = shalt.err (!%p4730_p10)
}
  0x2a   : > { %s4803_s18 = smov 256   ;;  %s4804_s19 = smov 16  }
  0x2b   : > { %3945 = dma.hbm_to_vmem [thread:$0]  (!%p4898_p12), %s6919_s3, 8192, %s183_s8, [#allocation4], %s4803_s18, %s4803_s18, %s4804_s19  }
  0x2c   : > { %p7023_p13 = scmp.ne.s32.totalorder %s7021_s6, 0 }
  0x2e   : > { %206 = sbr.rel (%p7023_p13) target bundleno = 3965 (0xf7d), region = 40 }
  0x35   : > { %p7024_p1 = scmp.eq.s32.totalorder %s4862_s0, 0 }
  0x37   : > { %4779 = dma.done.wait (%p7024_p1), [#allocation4], 8192   ;;  %p7025_p0 = pmov %p7024_p1 }
  0x38   : > { %p234_p5 = scmp.lt.s32.totalorder %s4862_s0, 1  ;;  %v6925_v0 = vmov 0.0   ;;  %v4806_v1 = vmov 0   ;;  %v242_v4 = vld [vmem:[%s6917_s1] sm:$0xff]  ;;  %vm320_vm0 = vcmask 64512   ;;  %vm569_vm1 = vcmask 1041408  }
  0x39   : > { %4781 = vsyncadd (%p7025_p0), [#allocation4], 4294959104  ;;  %391 = vmatprep.mubr.f32.mxu0 %v6925_v0  ;;  %3990 = vset.pattern.permute.xlu0 %v4806_v1  ;;  %v244_v5 = vld [vmem:[%s6918_s2] sm:$0xff]  ;;  %vm472_vm2 = vcmask 15360   ;;  %v247_v46 = vld [vmem:[#allocation3 + $0x8] sm:$0xff]  ;;  %vm1313_vm3 = vcmask 1043456  }
  0x3a   : > { %s235_s27 = scalar_select %p234_p5, %s4862_s0, 1  ;;  %638 = vmatprep.mubr.f32.mxu1 %v6925_v0  ;;  %312 = vperm.xlu0 %3990, %v244_v5   ;;  %v246_v45 = vld [vmem:[#allocation3] sm:$0xff]  ;;  %v248_v51 = vld [vmem:[#allocation3 + $0x10] sm:$0xff]  ;;  %v249_v52 = vld [vmem:[#allocation3 + $0x18] sm:$0xff] }
  0x3b   : > { %v250_v58 = vld [vmem:[#allocation3 + $0x20] sm:$0xff]  ;;  %v251_v59 = vld [vmem:[#allocation3 + $0x28] sm:$0xff]  ;;  %s241_s18 = sld [smem:[#allocation2]]  ;;  %s231_s11 = sand.u32 1, %s4792_s21  }
  0x3c   : > { %s3742_s7 = sshll.u32 %s235_s27, 4  ;;  %s3626_s12 = sshll.u32 %s231_s11, 4 }
  0x3d   : > { %s4931_s9 = scalar_lea.vmem %s6920_s4, %s3742_s7  ;;  %s3743_s13 = sshll.u32 %s4862_s0, 8 }
  0x3e   : > { %v240_v2 = vld [vmem:[%s4931_s9 + $0x8] sm:$0xff]  ;;  %v239_v3 = vld [vmem:[%s4931_s9] sm:$0xff]  ;;  %s233_s14 = scalar_lea.vmem [#allocation6], %s3626_s12  ;;  %s3535_s0 = scalar_lea.sflag [#allocation5], %s231_s11 }
  0x3f   : > { %327 = vmatprep.subr.mxu0 %v240_v2  ;;  %v252_v2 = vld [vmem:[#allocation3 + $0x30] sm:$0xff]  ;;  %s3549_s15 = sshll.u32 %s233_s14, 4  ;;  %p7206_p9 = scmp.ne.s32.totalorder %s7019_s29, 0  ;;  %s6876_s15 = int_to_ptr.vmem [resolvable:$true] %s3549_s15 }
  0x40   : > { %328 = vmatpush1.msra.mxu0 %v239_v3  ;;  %v253_v3 = vld [vmem:[#allocation3 + $0x38] sm:$0xff]  ;;  %s4734_s19 = scalar_lea.vmem %s6876_s15, 256 }
  0x41   : > { %3629 = vmatmul.mubr.msk.f32.vlgmr.msra.gmra.mrb[0].mxu0 %vm320_vm0, %v242_v4  ;;  %p4735_p6 = scmp.ne.s32.totalorder %s6876_s15, %s4734_s19 }
  0x42   : > { %397 = vmatprep.mubr.f32.mxu0 %v6925_v0 }
  0x43   : > { %p4736_p10 = pnand %p4735_p6, %p7206_p9 }
  0x45   : > { %p4737_p12 = pneg %p4736_p10 }
  0xb9   : > { %v4943_v6 = vpop.permute.xlu0 %312 }
  0xba   : > { %7026 = vst [vmem:[#allocation9_spill] sm:$0xff] %v4943_v6 }
 0x114   : > { %v393_v7 = vpop.f32.mrb[0].mxu0 }
 0x115   : > { %v4946_v8 = vadd.f32 %v393_v7, %v4943_v6  ;;  %v395_v9 = vpop.f32.mrb[1].mxu0 }
 0x116   : > { %v4949_v10 = vadd.f32 %v395_v9, %v4943_v6 }
 0x117   : > { %7027 = vst [vmem:[#allocation10_spill] sm:$0xff] %v4946_v8  ;;  %404 = vxpose.xlu0.b32.start.end [1/1] (short) %v4946_v8, 128  ;;  %v470_v12 = vrot.slane %v4946_v8, 2 }
 0x118   : > { %7028 = vst [vmem:[#allocation11_spill] sm:$0xff] %v4949_v10  ;;  %436 = vxpose.xlu1.b32.start.end [1/1] (short) %v4949_v10, 128  ;;  %v471_v11 = vrot.slane %v4949_v10, 2 }
 0x11a   : > { %3631 = vmatprep.subr.msk.mxu1 %vm569_vm1, %v471_v11 }
 0x11b   : > { %3632 = vmatpush1.msk.msra.mxu1 %vm569_vm1, %v470_v12  ;;  %v254_v12 = vld [vmem:[#allocation3 + $0x40] sm:$0xff] }
 0x136   : > { %3991 = vset.pattern.permute.xlu1 %v4806_v1 }
 0x197   : > { %v420_v13 = vpop.trf.xlu0 }
 0x198   : > { %3633 = vmatmul.mubr.msk.f32.vlgmr.msra.gmra.mrb[0].mxu1 %vm472_vm2, %v420_v13  ;;  %v452_v22 = vpop.trf.xlu1  ;;  %v255_v13 = vld [vmem:[#allocation3 + $0x48] sm:$0xff] }
 0x199   : > { %644 = vmatprep.mubr.f32.mxu1 %v6925_v0 }
 0x19b   : > { %v421_v14 = vpop.trf.xlu0 }
 0x19c   : > { %3634 = vmatmul.mubr.msk.f32.gmra.mrb[2].mxu1 %vm472_vm2, %v421_v14  ;;  %v453_v25 = vpop.trf.xlu1 }
 0x19d   : > { %650 = vmatprep.mubr.f32.mxu1 %v6925_v0 }
 0x19f   : > { %v422_v15 = vpop.trf.xlu0 }
 0x1a0   : > { %3635 = vmatmul.mubr.msk.f32.gmra.mrb[4].mxu1 %vm472_vm2, %v422_v15  ;;  %v454_v27 = vpop.trf.xlu1 }
 0x1a1   : > { %656 = vmatprep.mubr.f32.mxu1 %v6925_v0 }
 0x1a3   : > { %v423_v16 = vpop.trf.xlu0 }
 0x1a4   : > { %3636 = vmatmul.mubr.msk.f32.gmra.mrb[6].mxu1 %vm472_vm2, %v423_v16  ;;  %v455_v30 = vpop.trf.xlu1 }
 0x1a5   : > { %662 = vmatprep.mubr.f32.mxu1 %v6925_v0 }
 0x1a7   : > { %v424_v17 = vpop.trf.xlu0 }
 0x1a8   : > { %3637 = vmatmul.mubr.msk.f32.gmra.mrb[8].mxu1 %vm472_vm2, %v424_v17  ;;  %v456_v32 = vpop.trf.xlu1 }
 0x1a9   : > { %668 = vmatprep.mubr.f32.mxu1 %v6925_v0 }
 0x1ab   : > { %v425_v18 = vpop.trf.xlu0 }
 0x1ac   : > { %3638 = vmatmul.mubr.msk.f32.gmra.mrb[10].mxu1 %vm472_vm2, %v425_v18  ;;  %v457_v34 = vpop.trf.xlu1 }
 0x1ad   : > { %674 = vmatprep.mubr.f32.mxu1 %v6925_v0 }
 0x1af   : > { %v426_v19 = vpop.trf.xlu0 }
 0x1b0   : > { %3639 = vmatmul.mubr.msk.f32.gmra.mrb[12].mxu1 %vm472_vm2, %v426_v19  ;;  %v458_v35 = vpop.trf.xlu1  ;;  %v256_v19 = vld [vmem:[#allocation3 + $0x50] sm:$0xff] }
 0x1b1   : > { %680 = vmatprep.mubr.f32.mxu1 %v6925_v0 }
 0x1b3   : > { %v427_v20 = vpop.trf.xlu0 }
 0x1b4   : > { %3640 = vmatmul.mubr.msk.f32.gmra.mrb[14].mxu1 %vm472_vm2, %v427_v20  ;;  %v459_v36 = vpop.trf.xlu1  ;;  %v257_v20 = vld [vmem:[#allocation3 + $0x58] sm:$0xff] }
 0x1b5   : > { %686 = vmatprep.mubr.f32.mxu1 %v6925_v0 }
 0x1b7   : > { %v428_v21 = vpop.trf.xlu0 }
 0x1b8   : > { %3641 = vmatmul.mubr.msk.f32.gmra.mrb[16].mxu1 %vm472_vm2, %v428_v21  ;;  %v460_v37 = vpop.trf.xlu1 }
 0x1b9   : > { %692 = vmatprep.mubr.f32.mxu1 %v6925_v0 }
 0x1bb   : > { %v429_v23 = vpop.trf.xlu0 }
 0x1bc   : > { %3642 = vmatmul.mubr.msk.f32.gmra.mrb[18].mxu1 %vm472_vm2, %v429_v23  ;;  %v461_v38 = vpop.trf.xlu1 }
 0x1bd   : > { %698 = vmatprep.mubr.f32.mxu1 %v6925_v0 }
 0x1bf   : > { %v430_v24 = vpop.trf.xlu0 }
 0x1c0   : > { %3643 = vmatmul.mubr.msk.f32.gmra.mrb[20].mxu1 %vm472_vm2, %v430_v24  ;;  %v462_v39 = vpop.trf.xlu1 }
 0x1c1   : > { %704 = vmatprep.mubr.f32.mxu1 %v6925_v0 }
 0x1c3   : > { %v431_v26 = vpop.trf.xlu0 }
 0x1c4   : > { %3644 = vmatmul.mubr.msk.f32.gmra.mrb[22].mxu1 %vm472_vm2, %v431_v26  ;;  %v463_v40 = vpop.trf.xlu1  ;;  %v258_v26 = vld [vmem:[#allocation3 + $0x60] sm:$0xff] }
 0x1c5   : > { %710 = vmatprep.mubr.f32.mxu1 %v6925_v0 }
 0x1c7   : > { %v432_v28 = vpop.trf.xlu0 }
 0x1c8   : > { %3645 = vmatmul.mubr.msk.f32.gmra.mrb[24].mxu1 %vm472_vm2, %v432_v28  ;;  %v464_v41 = vpop.trf.xlu1 }
 0x1c9   : > { %716 = vmatprep.mubr.f32.mxu1 %v6925_v0 }
 0x1cb   : > { %v433_v29 = vpop.trf.xlu0 }
 0x1cc   : > { %3646 = vmatmul.mubr.msk.f32.gmra.mrb[26].mxu1 %vm472_vm2, %v433_v29  ;;  %v465_v42 = vpop.trf.xlu1 }
 0x1cd   : > { %722 = vmatprep.mubr.f32.mxu1 %v6925_v0 }
 0x1cf   : > { %v434_v31 = vpop.trf.xlu0 }
 0x1d0   : > { %3647 = vmatmul.mubr.msk.f32.gmra.mrb[28].mxu1 %vm472_vm2, %v434_v31  ;;  %v466_v43 = vpop.trf.xlu1 }
 0x1d1   : > { %728 = vmatprep.mubr.f32.mxu1 %v6925_v0 }
 0x1d3   : > { %v435_v33 = vpop.trf.xlu0 }
 0x1d4   : > { %3648 = vmatmul.mubr.msk.f32.gmra.mrb[30].mxu1 %vm472_vm2, %v435_v33  ;;  %v467_v44 = vpop.trf.xlu1  ;;  %v260_v33 = vld [vmem:[#allocation3 + $0x70] sm:$0xff] }
 0x1d5   : > { %734 = vmatprep.mubr.f32.mxu1 %v6925_v0 }
 0x1d8   : > { %3649 = vmatmul.mubr.msk.f32.gmra.mrb[32].mxu1 %vm472_vm2, %v452_v22 }
 0x1d9   : > { %740 = vmatprep.mubr.f32.mxu1 %v6925_v0 }
 0x1dc   : > { %3650 = vmatmul.mubr.msk.f32.gmra.mrb[34].mxu1 %vm472_vm2, %v453_v25 }
 0x1dd   : > { %746 = vmatprep.mubr.f32.mxu1 %v6925_v0 }
 0x1e0   : > { %3651 = vmatmul.mubr.msk.f32.gmra.mrb[36].mxu1 %vm472_vm2, %v454_v27  ;;  %v259_v27 = vld [vmem:[#allocation3 + $0x68] sm:$0xff] }
 0x1e1   : > { %752 = vmatprep.mubr.f32.mxu1 %v6925_v0 }
 0x1e4   : > { %3652 = vmatmul.mubr.msk.f32.gmra.mrb[38].mxu1 %vm472_vm2, %v455_v30 }
 0x1e5   : > { %758 = vmatprep.mubr.f32.mxu1 %v6925_v0 }
 0x1e8   : > { %3653 = vmatmul.mubr.msk.f32.gmra.mrb[40].mxu1 %vm472_vm2, %v456_v32 }
 0x1e9   : > { %764 = vmatprep.mubr.f32.mxu1 %v6925_v0 }
 0x1ec   : > { %3654 = vmatmul.mubr.msk.f32.gmra.mrb[42].mxu1 %vm472_vm2, %v457_v34  ;;  %v261_v34 = vld [vmem:[#allocation3 + $0x78] sm:$0xff] }
 0x1ed   : > { %770 = vmatprep.mubr.f32.mxu1 %v6925_v0 }
 0x1f0   : > { %3655 = vmatmul.mubr.msk.f32.gmra.mrb[44].mxu1 %vm472_vm2, %v458_v35 }
 0x1f1   : > { %776 = vmatprep.mubr.f32.mxu1 %v6925_v0 }
 0x1f4   : > { %3656 = vmatmul.mubr.msk.f32.gmra.mrb[46].mxu1 %vm472_vm2, %v459_v36 }
 0x1f5   : > { %782 = vmatprep.mubr.f32.mxu1 %v6925_v0 }
 0x1f8   : > { %3657 = vmatmul.mubr.msk.f32.gmra.mrb[48].mxu1 %vm472_vm2, %v460_v37 }
 0x1f9   : > { %788 = vmatprep.mubr.f32.mxu1 %v6925_v0 }
 0x1fc   : > { %3658 = vmatmul.mubr.msk.f32.gmra.mrb[50].mxu1 %vm472_vm2, %v461_v38 }
 0x1fd   : > { %794 = vmatprep.mubr.f32.mxu1 %v6925_v0 }
 0x200   : > { %3659 = vmatmul.mubr.msk.f32.gmra.mrb[52].mxu1 %vm472_vm2, %v462_v39 }
 0x201   : > { %800 = vmatprep.mubr.f32.mxu1 %v6925_v0 }
 0x204   : > { %3660 = vmatmul.mubr.msk.f32.gmra.mrb[54].mxu1 %vm472_vm2, %v463_v40  ;;  %v262_v40 = vld [vmem:[#allocation3 + $0x80] sm:$0xff] }
 0x205   : > { %806 = vmatprep.mubr.f32.mxu1 %v6925_v0 }
 0x208   : > { %3661 = vmatmul.mubr.msk.f32.gmra.mrb[56].mxu1 %vm472_vm2, %v464_v41  ;;  %v263_v41 = vld [vmem:[#allocation3 + $0x88] sm:$0xff] }
 0x209   : > { %812 = vmatprep.mubr.f32.mxu1 %v6925_v0 }
 0x20c   : > { %3662 = vmatmul.mubr.msk.f32.gmra.mrb[58].mxu1 %vm472_vm2, %v465_v42 }
 0x20d   : > { %818 = vmatprep.mubr.f32.mxu1 %v6925_v0 }
 0x210   : > { %3663 = vmatmul.mubr.msk.f32.gmra.mrb[60].mxu1 %vm472_vm2, %v466_v43 }
 0x211   : > { %824 = vmatprep.mubr.f32.mxu1 %v6925_v0 }
 0x214   : > { %3664 = vmatmul.mubr.msk.f32.gmra.mrb[62].mxu1 %vm472_vm2, %v467_v44 }
 0x215   : > { %1462 = vmatprep.mubr.f32.mxu1 %v6925_v0 }
 0x26b   : > { %v640_v47 = vpop.f32.mrb[0].mxu1 }
 0x26c   : > { %v5021_v48 = vadd.f32 %v640_v47, %v246_v45  ;;  %v642_v49 = vpop.f32.mrb[1].mxu1  ;;  %v264_v47 = vld [vmem:[#allocation3 + $0x90] sm:$0xff] }
 0x26d   : > { %v5023_v50 = vadd.f32 %v642_v49, %v247_v46  ;;  %v265_v49 = vld [vmem:[#allocation3 + $0x98] sm:$0xff] }
 0x26f   : > { %v646_v53 = vpop.f32.mrb[2].mxu1  ;;  %v831_v54 = vmax.f32 %v5021_v48, %v5023_v50 }
 0x270   : > { %v5027_v55 = vadd.f32 %v646_v53, %v248_v51  ;;  %v648_v56 = vpop.f32.mrb[3].mxu1 }
 0x271   : > { %v5029_v57 = vadd.f32 %v648_v56, %v249_v52  ;;  %832 = vmax.xlane.f32.xlu1 %v831_v54 }
 0x273   : > { %v652_v60 = vpop.f32.mrb[4].mxu1  ;;  %v834_v61 = vmax.f32 %v5027_v55, %v5029_v57 }
 0x274   : > { %v5033_v62 = vadd.f32 %v652_v60, %v250_v58  ;;  %v654_v63 = vpop.f32.mrb[5].mxu1  ;;  %v266_v58 = vld [vmem:[#allocation3 + $0xa0] sm:$0xff] }
 0x275   : > { %v5035_v1 = vadd.f32 %v654_v63, %v251_v59  ;;  %835 = vmax.xlane.f32.xlu0 %v834_v61  ;;  %v267_v59 = vld [vmem:[#allocation3 + $0xa8] sm:$0xff] }
 0x277   : > { %v658_v4 = vpop.f32.mrb[6].mxu1  ;;  %v837_v5 = vmax.f32 %v5033_v62, %v5035_v1 }
 0x278   : > { %v5039_v7 = vadd.f32 %v658_v4, %v252_v2  ;;  %v660_v9 = vpop.f32.mrb[7].mxu1  ;;  %v268_v4 = vld [vmem:[#allocation3 + $0xb0] sm:$0xff] }
 0x279   : > { %v5041_v11 = vadd.f32 %v660_v9, %v253_v3  ;;  %838 = vmax.xlane.f32.xlu1 %v837_v5  ;;  %v269_v5 = vld [vmem:[#allocation3 + $0xb8] sm:$0xff] }
 0x27b   : > { %v664_v14 = vpop.f32.mrb[8].mxu1  ;;  %v840_v15 = vmax.f32 %v5039_v7, %v5041_v11 }
 0x27c   : > { %v5045_v16 = vadd.f32 %v664_v14, %v254_v12  ;;  %v666_v17 = vpop.f32.mrb[9].mxu1 }
 0x27d   : > { %v5047_v18 = vadd.f32 %v666_v17, %v255_v13  ;;  %841 = vmax.xlane.f32.xlu1 %v840_v15  ;;  %v270_v17 = vld [vmem:[#allocation3 + $0xc0] sm:$0xff] }
 0x27f   : > { %v670_v21 = vpop.f32.mrb[10].mxu1  ;;  %v843_v22 = vmax.f32 %v5045_v16, %v5047_v18 }
 0x280   : > { %v5051_v23 = vadd.f32 %v670_v21, %v256_v19  ;;  %v672_v24 = vpop.f32.mrb[11].mxu1  ;;  %v271_v19 = vld [vmem:[#allocation3 + $0xc8] sm:$0xff] }
 0x281   : > { %v5053_v25 = vadd.f32 %v672_v24, %v257_v20  ;;  %844 = vmax.xlane.f32.xlu1 %v843_v22 }
 0x283   : > { %v676_v28 = vpop.f32.mrb[12].mxu1  ;;  %v846_v29 = vmax.f32 %v5051_v23, %v5053_v25 }
 0x284   : > { %v5057_v30 = vadd.f32 %v676_v28, %v258_v26  ;;  %v678_v31 = vpop.f32.mrb[13].mxu1  ;;  %v273_v28 = vld [vmem:[#allocation3 + $0xd8] sm:$0xff] }
 0x285   : > { %v5059_v32 = vadd.f32 %v678_v31, %v259_v27  ;;  %847 = vmax.xlane.f32.xlu1 %v846_v29  ;;  %v272_v27 = vld [vmem:[#allocation3 + $0xd0] sm:$0xff] }
 0x287   : > { %v682_v35 = vpop.f32.mrb[14].mxu1  ;;  %v849_v36 = vmax.f32 %v5057_v30, %v5059_v32 }
 0x288   : > { %v5063_v37 = vadd.f32 %v682_v35, %v260_v33  ;;  %v684_v38 = vpop.f32.mrb[15].mxu1 }
 0x289   : > { %v5065_v39 = vadd.f32 %v684_v38, %v261_v34  ;;  %850 = vmax.xlane.f32.xlu1 %v849_v36  ;;  %v274_v36 = vld [vmem:[#allocation3 + $0xe0] sm:$0xff]  ;;  %v275_v38 = vld [vmem:[#allocation3 + $0xe8] sm:$0xff] }
 0x28b   : > { %v688_v42 = vpop.f32.mrb[16].mxu1  ;;  %v852_v43 = vmax.f32 %v5063_v37, %v5065_v39 }
 0x28c   : > { %v5069_v44 = vadd.f32 %v688_v42, %v262_v40  ;;  %v690_v45 = vpop.f32.mrb[17].mxu1 }
 0x28d   : > { %v5071_v46 = vadd.f32 %v690_v45, %v263_v41  ;;  %853 = vmax.xlane.f32.xlu1 %v852_v43 }
 0x28f   : > { %v694_v51 = vpop.f32.mrb[18].mxu1  ;;  %v855_v52 = vmax.f32 %v5069_v44, %v5071_v46 }
 0x290   : > { %v5075_v53 = vadd.f32 %v694_v51, %v264_v47  ;;  %v696_v54 = vpop.f32.mrb[19].mxu1  ;;  %v276_v47 = vld [vmem:[#allocation3 + $0xf0] sm:$0xff] }
 0x291   : > { %v5077_v56 = vadd.f32 %v696_v54, %v265_v49  ;;  %856 = vmax.xlane.f32.xlu1 %v855_v52  ;;  %v277_v49 = vld [vmem:[#allocation3 + $0xf8] sm:$0xff] }
 0x293   : > { %v700_v60 = vpop.f32.mrb[20].mxu1  ;;  %v858_v61 = vmax.f32 %v5075_v53, %v5077_v56 }
 0x294   : > { %v5081_v63 = vadd.f32 %v700_v60, %v266_v58  ;;  %v702_v2 = vpop.f32.mrb[21].mxu1  ;;  %v278_v60 = vld [vmem:[#allocation3 + $0x100] sm:$0xff] }
 0x295   : > { %v5083_v3 = vadd.f32 %v702_v2, %v267_v59  ;;  %859 = vmax.xlane.f32.xlu1 %v858_v61  ;;  %v279_v61 = vld [vmem:[#allocation3 + $0x108] sm:$0xff] }
 0x297   : > { %v706_v9 = vpop.f32.mrb[22].mxu1  ;;  %v861_v12 = vmax.f32 %v5081_v63, %v5083_v3 }
 0x298   : > { %v5087_v13 = vadd.f32 %v706_v9, %v268_v4  ;;  %v708_v14 = vpop.f32.mrb[23].mxu1 }
 0x299   : > { %v5089_v15 = vadd.f32 %v708_v14, %v269_v5  ;;  %862 = vmax.xlane.f32.xlu1 %v861_v12  ;;  %v280_v14 = vld [vmem:[#allocation3 + $0x110] sm:$0xff] }
 0x29b   : > { %v712_v20 = vpop.f32.mrb[24].mxu1  ;;  %v864_v21 = vmax.f32 %v5087_v13, %v5089_v15 }
 0x29c   : > { %v5093_v22 = vadd.f32 %v712_v20, %v270_v17  ;;  %v714_v24 = vpop.f32.mrb[25].mxu1  ;;  %v281_v17 = vld [vmem:[#allocation3 + $0x118] sm:$0xff] }
 0x29d   : > { %v5095_v26 = vadd.f32 %v714_v24, %v271_v19  ;;  %865 = vmax.xlane.f32.xlu0 %v864_v21 }
 0x29f   : > { %v718_v29 = vpop.f32.mrb[26].mxu1  ;;  %v867_v31 = vmax.f32 %v5093_v22, %v5095_v26 }
 0x2a0   : > { %v5099_v33 = vadd.f32 %v718_v29, %v272_v27  ;;  %v720_v34 = vpop.f32.mrb[27].mxu1  ;;  %v283_v29 = vld [vmem:[#allocation3 + $0x128] sm:$0xff] }
 0x2a1   : > { %v5101_v35 = vadd.f32 %v720_v34, %v273_v28  ;;  %868 = vmax.xlane.f32.xlu1 %v867_v31  ;;  %v282_v28 = vld [vmem:[#allocation3 + $0x120] sm:$0xff] }
 0x2a3   : > { %v724_v40 = vpop.f32.mrb[28].mxu1  ;;  %v870_v41 = vmax.f32 %v5099_v33, %v5101_v35 }
 0x2a4   : > { %v5105_v42 = vadd.f32 %v724_v40, %v274_v36  ;;  %v726_v43 = vpop.f32.mrb[29].mxu1 }
 0x2a5   : > { %v5107_v45 = vadd.f32 %v726_v43, %v275_v38  ;;  %871 = vmax.xlane.f32.xlu0 %v870_v41  ;;  %v284_v41 = vld [vmem:[#allocation3 + $0x130] sm:$0xff]  ;;  %v285_v43 = vld [vmem:[#allocation3 + $0x138] sm:$0xff] }
 0x2a7   : > { %v730_v51 = vpop.f32.mrb[30].mxu1  ;;  %v873_v52 = vmax.f32 %v5105_v42, %v5107_v45 }
 0x2a8   : > { %v5111_v54 = vadd.f32 %v730_v51, %v276_v47  ;;  %v732_v58 = vpop.f32.mrb[31].mxu1 }
 0x2a9   : > { %v5113_v59 = vadd.f32 %v732_v58, %v277_v49  ;;  %874 = vmax.xlane.f32.xlu1 %v873_v52 }
 0x2ab   : > { %v736_v2 = vpop.f32.mrb[32].mxu1  ;;  %v876_v4 = vmax.f32 %v5111_v54, %v5113_v59 }
 0x2ac   : > { %v5117_v5 = vadd.f32 %v736_v2, %v278_v60  ;;  %v738_v9 = vpop.f32.mrb[33].mxu1  ;;  %v286_v60 = vld [vmem:[#allocation3 + $0x140] sm:$0xff] }
 0x2ad   : > { %v5119_v12 = vadd.f32 %v738_v9, %v279_v61  ;;  %877 = vmax.xlane.f32.xlu0 %v876_v4  ;;  %v287_v61 = vld [vmem:[#allocation3 + $0x148] sm:$0xff] }
 0x2af   : > { %v742_v19 = vpop.f32.mrb[34].mxu1  ;;  %v879_v20 = vmax.f32 %v5117_v5, %v5119_v12 }
 0x2b0   : > { %v5123_v21 = vadd.f32 %v742_v19, %v280_v14  ;;  %v744_v24 = vpop.f32.mrb[35].mxu1  ;;  %v288_v19 = vld [vmem:[#allocation3 + $0x150] sm:$0xff] }
 0x2b1   : > { %v5125_v27 = vadd.f32 %v744_v24, %v281_v17  ;;  %880 = vmax.xlane.f32.xlu1 %v879_v20  ;;  %v289_v20 = vld [vmem:[#allocation3 + $0x158] sm:$0xff] }
 0x2b3   : > { %7029 = vst [vmem:[#allocation12_spill] sm:$0xff] %v5125_v27  ;;  %v748_v31 = vpop.f32.mrb[36].mxu1  ;;  %v882_v34 = vmax.f32 %v5123_v21, %v5125_v27 }
 0x2b4   : > { %v5129_v36 = vadd.f32 %v748_v31, %v282_v28  ;;  %v750_v38 = vpop.f32.mrb[37].mxu1 }
 0x2b5   : > { %v5131_v40 = vadd.f32 %v750_v38, %v283_v29  ;;  %883 = vmax.xlane.f32.xlu0 %v882_v34  ;;  %v290_v38 = vld [vmem:[#allocation3 + $0x160] sm:$0xff] }
 0x2b6   : > { %7030 = vst [vmem:[#allocation13_spill] sm:$0xff] %v5129_v36 }
 0x2b7   : > { %7031 = vst [vmem:[#allocation14_spill] sm:$0xff] %v5131_v40  ;;  %v754_v47 = vpop.f32.mrb[38].mxu1  ;;  %v885_v49 = vmax.f32 %v5129_v36, %v5131_v40 }
 0x2b8   : > { %v5135_v51 = vadd.f32 %v754_v47, %v284_v41  ;;  %v756_v52 = vpop.f32.mrb[39].mxu1  ;;  %v291_v41 = vld [vmem:[#allocation3 + $0x168] sm:$0xff] }
 0x2b9   : > { %v5137_v58 = vadd.f32 %v756_v52, %v285_v43  ;;  %886 = vmax.xlane.f32.xlu1 %v885_v49 }
 0x2ba   : > { %7032 = vst [vmem:[#allocation15_spill] sm:$0xff] %v5135_v51 }
 0x2bb   : > { %7033 = vst [vmem:[#allocation16_spill] sm:$0xff] %v5137_v58  ;;  %v760_v2 = vpop.f32.mrb[40].mxu1  ;;  %v888_v4 = vmax.f32 %v5135_v51, %v5137_v58 }
 0x2bc   : > { %v5141_v9 = vadd.f32 %v760_v2, %v286_v60  ;;  %v762_v14 = vpop.f32.mrb[41].mxu1  ;;  %v293_v2 = vld [vmem:[#allocation3 + $0x178] sm:$0xff] }
 0x2bd   : > { %v5143_v17 = vadd.f32 %v762_v14, %v287_v61  ;;  %889 = vmax.xlane.f32.xlu0 %v888_v4  ;;  %v292_v61 = vld [vmem:[#allocation3 + $0x170] sm:$0xff] }
 0x2be   : > { %7034 = vst [vmem:[#allocation17_spill] sm:$0xff] %v5141_v9 }
 0x2bf   : > { %7035 = vst [vmem:[#allocation18_spill] sm:$0xff] %v5143_v17  ;;  %v766_v24 = vpop.f32.mrb[42].mxu1  ;;  %v891_v28 = vmax.f32 %v5141_v9, %v5143_v17 }
 0x2c0   : > { %v5147_v29 = vadd.f32 %v766_v24, %v288_v19  ;;  %v768_v31 = vpop.f32.mrb[43].mxu1 }
 0x2c1   : > { %v5149_v34 = vadd.f32 %v768_v31, %v289_v20  ;;  %892 = vmax.xlane.f32.xlu1 %v891_v28 }
 0x2c2   : > { %7036 = vst [vmem:[#allocation19_spill] sm:$0xff] %v5147_v29 }
 0x2c3   : > { %7037 = vst [vmem:[#allocation20_spill] sm:$0xff] %v5149_v34  ;;  %v772_v43 = vpop.f32.mrb[44].mxu1  ;;  %v894_v47 = vmax.f32 %v5147_v29, %v5149_v34 }
 0x2c4   : > { %v5153_v49 = vadd.f32 %v772_v43, %v290_v38  ;;  %v774_v52 = vpop.f32.mrb[45].mxu1 }
 0x2c5   : > { %v5155_v60 = vadd.f32 %v774_v52, %v291_v41  ;;  %895 = vmax.xlane.f32.xlu0 %v894_v47 }
 0x2c6   : > { %7038 = vst [vmem:[#allocation21_spill] sm:$0xff] %v5153_v49 }
 0x2c7   : > { %7039 = vst [vmem:[#allocation22_spill] sm:$0xff] %v5155_v60  ;;  %v778_v4 = vpop.f32.mrb[46].mxu1  ;;  %v897_v14 = vmax.f32 %v5153_v49, %v5155_v60 }
 0x2c8   : > { %v5159_v19 = vadd.f32 %v778_v4, %v292_v61  ;;  %v780_v20 = vpop.f32.mrb[47].mxu1 }
 0x2c9   : > { %v5161_v24 = vadd.f32 %v780_v20, %v293_v2  ;;  %898 = vmax.xlane.f32.xlu1 %v897_v14 }
 0x2ca   : > { %7040 = vst [vmem:[#allocation23_spill] sm:$0xff] %v5159_v19 }
 0x2cb   : > { %7041 = vst [vmem:[#allocation24_spill] sm:$0xff] %v5161_v24  ;;  %v900_v28 = vmax.f32 %v5159_v19, %v5161_v24  ;;  %v784_v31 = vpop.f32.mrb[48].mxu1  ;;  %v243_v24 = vld [vmem:[%s6917_s1 + $0x8] sm:$0xf] }
 0x2cc   : > { %v786_v38 = vpop.f32.mrb[49].mxu1  ;;  %3630 = vmatmul.mubr.msk.f32.gmra.mrb[2].mxu0 %vm320_vm0, %v243_v24 }
 0x2cd   : > { %901 = vmax.xlane.f32.xlu0 %v900_v28 }
 0x2cf   : > { %v790_v41 = vpop.f32.mrb[50].mxu1 }
 0x2d0   : > { %v792_v43 = vpop.f32.mrb[51].mxu1 }
 0x2d3   : > { %v5165_v47 = vpop.f32.mrb[52].mxu1 }
 0x2d4   : > { %v5167_v52 = vpop.f32.mrb[53].mxu1 }
 0x2d7   : > { %v5169_v0 = vpop.f32.mrb[54].mxu1 }
 0x2d8   : > { %v5171_v61 = vpop.f32.mrb[55].mxu1 }
 0x2db   : > { %v5173_v4 = vpop.f32.mrb[56].mxu1 }
 0x2dc   : > { %v5175_v2 = vpop.f32.mrb[57].mxu1 }
 0x2df   : > { %v5177_v14 = vpop.f32.mrb[58].mxu1 }
 0x2e0   : > { %v5179_v20 = vpop.f32.mrb[59].mxu1 }
 0x2e3   : > { %v5181_v6 = vpop.f32.mrb[60].mxu1 }
 0x2e4   : > { %v5183_v28 = vpop.f32.mrb[61].mxu1 }
 0x2e7   : > { %v5185_v10 = vpop.f32.mrb[62].mxu1 }
 0x2e8   : > { %v5187_v8 = vpop.f32.mrb[63].mxu1 }
 0x2fe   : > { %v833_v19 = vpop.xlane.xlu1 %832 }
 0x2ff   : > { %v927_v60 = vsub.f32 %v5021_v48, %v833_v19  ;;  %v928_v49 = vsub.f32 %v5023_v50, %v833_v19 }
 0x301   : > { %v991_v34 = vmul.f32 1.442695, %v927_v60  ;;  %v993_v29 = vmul.f32 1.442695, %v928_v49  ;;  %v294_v60 = vld [vmem:[#allocation3 + $0x180] sm:$0xff]  ;;  %v295_v49 = vld [vmem:[#allocation3 + $0x188] sm:$0xff] }
 0x302   : > { %v836_v17 = vpop.xlane.xlu0 %835 }
 0x303   : > { %3992 = vpow2.f32 %v991_v34  ;;  %v929_v9 = vsub.f32 %v5027_v55, %v836_v17  ;;  %v930_v58 = vsub.f32 %v5029_v57, %v836_v17  ;;  %v297_v17 = vld [vmem:[#allocation3 + $0x198] sm:$0xff] }
 0x304   : > { %3994 = vpow2.f32 %v993_v29 }
 0x305   : > { %v995_v51 = vmul.f32 1.442695, %v929_v9  ;;  %v997_v40 = vmul.f32 1.442695, %v930_v58  ;;  %v5201_v9 = vadd.f32 %v784_v31, %v294_v60  ;;  %v5203_v58 = vadd.f32 %v786_v38, %v295_v49  ;;  %v298_v60 = vld [vmem:[#allocation3 + $0x1a0] sm:$0xff] }
 0x306   : > { %v839_v36 = vpop.xlane.xlu1 %838 }
 0x307   : > { %3996 = vpow2.f32 %v995_v51  ;;  %v931_v24 = vsub.f32 %v5033_v62, %v839_v36  ;;  %v932_v27 = vsub.f32 %v5035_v1, %v839_v36  ;;  %v903_v34 = vmax.f32 %v5201_v9, %v5203_v58 }
 0x308   : > { %3998 = vpow2.f32 %v997_v40  ;;  %v296_v40 = vld [vmem:[#allocation3 + $0x190] sm:$0xff] }
 0x309   : > { %v999_v48 = vmul.f32 1.442695, %v931_v24  ;;  %v1001_v50 = vmul.f32 1.442695, %v932_v27 }
 0x30a   : > { %v842_v19 = vpop.xlane.xlu1 %841 }
 0x30b   : > { %4000 = vpow2.f32 %v999_v48  ;;  %v933_v55 = vsub.f32 %v5039_v7, %v842_v19  ;;  %v934_v57 = vsub.f32 %v5041_v11, %v842_v19  ;;  %v5217_v48 = vadd.f32 %v790_v41, %v296_v40 }
 0x30c   : > { %4002 = vpow2.f32 %v1001_v50  ;;  %v5219_v50 = vadd.f32 %v792_v43, %v297_v17  ;;  %v300_v17 = vld [vmem:[#allocation3 + $0x1b0] sm:$0xff] }
 0x30d   : > { %v5205_v51 = vpop.eup %3992  ;;  %v1003_v62 = vmul.f32 1.442695, %v933_v55  ;;  %v1005_v1 = vmul.f32 1.442695, %v934_v57 }
 0x30e   : > { %v5207_v36 = vpop.eup %3994  ;;  %v845_v27 = vpop.xlane.xlu1 %844 }
 0x30f   : > { %4004 = vpow2.f32 %v1003_v62  ;;  %v935_v29 = vsub.f32 %v5045_v16, %v845_v27  ;;  %v936_v7 = vsub.f32 %v5047_v18, %v845_v27  ;;  %v1119_v11 = vadd.f32 %v5207_v36, %v5205_v51  ;;  %v299_v16 = vld [vmem:[#allocation3 + $0x1a8] sm:$0xff] }
 0x310   : > { %4006 = vpow2.f32 %v1005_v1  ;;  %v5228_v62 = vadd.f32 %v5165_v47, %v298_v60  ;;  %v5231_v41 = vadd.f32 %v5167_v52, %v299_v16  ;;  %v5248_v60 = vadd.f32 %v5169_v0, %v300_v17  ;;  %v303_v16 = vld [vmem:[#allocation3 + $0x1c8] sm:$0xff] }
 0x311   : > { %v5215_v31 = vpop.eup %3996  ;;  %v1007_v38 = vmul.f32 1.442695, %v935_v29  ;;  %v1009_v24 = vmul.f32 1.442695, %v936_v7  ;;  %1120 = vadd.xlane.f32.xlu1 %v1119_v11  ;;  %v301_v29 = vld [vmem:[#allocation3 + $0x1b8] sm:$0xff] }
 0x312   : > { %v5221_v49 = vpop.eup %3998  ;;  %v848_v18 = vpop.xlane.xlu1 %847  ;;  %v909_v11 = vmax.f32 %v5228_v62, %v5231_v41 }
 0x313   : > { %4008 = vpow2.f32 %v1007_v38  ;;  %v937_v19 = vsub.f32 %v5051_v23, %v848_v18  ;;  %v938_v55 = vsub.f32 %v5053_v25, %v848_v18  ;;  %v1122_v57 = vadd.f32 %v5221_v49, %v5215_v31 }
 0x314   : > { %4010 = vpow2.f32 %v1009_v24  ;;  %v906_v23 = vmax.f32 %v5217_v48, %v5219_v50 }
 0x315   : > { %v5233_v43 = vpop.eup %4000  ;;  %v1011_v1 = vmul.f32 1.442695, %v937_v19  ;;  %v1013_v27 = vmul.f32 1.442695, %v938_v55  ;;  %1123 = vadd.xlane.f32.xlu0 %v1122_v57  ;;  %904 = vmax.xlane.f32.xlu1 %v903_v34 }
 0x316   : > { %v5237_v25 = vpop.eup %4002  ;;  %v851_v40 = vpop.xlane.xlu1 %850 }
 0x317   : > { %4012 = vpow2.f32 %v1011_v1  ;;  %v939_v47 = vsub.f32 %v5057_v30, %v851_v40  ;;  %v940_v52 = vsub.f32 %v5059_v32, %v851_v40  ;;  %v1125_v7 = vadd.f32 %v5237_v25, %v5233_v43  ;;  %v302_v32 = vld [vmem:[#allocation3 + $0x1c0] sm:$0xff] }
 0x318   : > { %4014 = vpow2.f32 %v1013_v27  ;;  %v5251_v30 = vadd.f32 %v5171_v61, %v301_v29  ;;  %v5260_v0 = vadd.f32 %v5173_v4, %v302_v32  ;;  %v5263_v61 = vadd.f32 %v5175_v2, %v303_v16  ;;  %v304_v29 = vld [vmem:[#allocation3 + $0x1d0] sm:$0xff]  ;;  %v307_v16 = vld [vmem:[#allocation3 + $0x1e8] sm:$0xff] }
 0x319   : > { %v5245_v34 = vpop.eup %4004  ;;  %v1015_v38 = vmul.f32 1.442695, %v939_v47  ;;  %v1017_v24 = vmul.f32 1.442695, %v940_v52  ;;  %907 = vmax.xlane.f32.xlu0 %v906_v23  ;;  %1126 = vadd.xlane.f32.xlu1 %v1125_v7  ;;  %v305_v47 = vld [vmem:[#allocation3 + $0x1d8] sm:$0xff]  ;;  %v5280_v32 = vadd.f32 %v5177_v14, %v304_v29 }
 0x31a   : > { %v5253_v18 = vpop.eup %4006  ;;  %v854_v19 = vpop.xlane.xlu1 %853  ;;  %v915_v7 = vmax.f32 %v5260_v0, %v5263_v61 }
 0x31b   : > { %4016 = vpow2.f32 %v1015_v38  ;;  %v941_v55 = vsub.f32 %v5063_v37, %v854_v19  ;;  %v942_v57 = vsub.f32 %v5065_v39, %v854_v19  ;;  %v1128_v1 = vadd.f32 %v5253_v18, %v5245_v34 }
 0x31c   : > { %4018 = vpow2.f32 %v1017_v24  ;;  %v912_v37 = vmax.f32 %v5248_v60, %v5251_v30 }
 0x31d   : > { %v5265_v27 = vpop.eup %4008  ;;  %v1019_v23 = vmul.f32 1.442695, %v941_v55  ;;  %v1021_v40 = vmul.f32 1.442695, %v942_v57  ;;  %910 = vmax.xlane.f32.xlu1 %v909_v11  ;;  %1129 = vadd.xlane.f32.xlu0 %v1128_v1 }
 0x31e   : > { %v5269_v39 = vpop.eup %4010  ;;  %v857_v17 = vpop.xlane.xlu1 %856 }
 0x31f   : > { %4020 = vpow2.f32 %v1019_v23  ;;  %v943_v4 = vsub.f32 %v5069_v44, %v857_v17  ;;  %v944_v2 = vsub.f32 %v5071_v46, %v857_v17  ;;  %v1131_v52 = vadd.f32 %v5269_v39, %v5265_v27  ;;  %v306_v46 = vld [vmem:[#allocation3 + $0x1e0] sm:$0xff] }
 0x320   : > { %4022 = vpow2.f32 %v1021_v40  ;;  %v5283_v44 = vadd.f32 %v5179_v20, %v305_v47  ;;  %v5292_v14 = vadd.f32 %v5181_v6, %v306_v46  ;;  %v5295_v20 = vadd.f32 %v5183_v28, %v307_v16  ;;  %v308_v47 = vld [vmem:[#allocation3 + $0x1f0] sm:$0xff] }
 0x321   : > { %v5277_v11 = vpop.eup %4012  ;;  %v1023_v38 = vmul.f32 1.442695, %v943_v4  ;;  %v1025_v24 = vmul.f32 1.442695, %v944_v2  ;;  %913 = vmax.xlane.f32.xlu0 %v912_v37  ;;  %1132 = vadd.xlane.f32.xlu1 %v1131_v52  ;;  %v309_v4 = vld [vmem:[#allocation3 + $0x1f8] sm:$0xff]  ;;  %v5312_v46 = vadd.f32 %v5185_v10, %v308_v47 }
 0x322   : > { %v5285_v19 = vpop.eup %4014  ;;  %v860_v55 = vpop.xlane.xlu1 %859  ;;  %v921_v52 = vmax.f32 %v5292_v14, %v5295_v20 }
 0x323   : > { %4024 = vpow2.f32 %v1023_v38  ;;  %v945_v57 = vsub.f32 %v5075_v53, %v860_v55  ;;  %v946_v1 = vsub.f32 %v5077_v56, %v860_v55  ;;  %v1134_v23 = vadd.f32 %v5285_v19, %v5277_v11 }
 0x324   : > { %4026 = vpow2.f32 %v1025_v24  ;;  %v918_v53 = vmax.f32 %v5280_v32, %v5283_v44 }
 0x325   : > { %v5297_v40 = vpop.eup %4016  ;;  %v1027_v37 = vmul.f32 1.442695, %v945_v57  ;;  %v1029_v17 = vmul.f32 1.442695, %v946_v1  ;;  %916 = vmax.xlane.f32.xlu1 %v915_v7  ;;  %1135 = vadd.xlane.f32.xlu0 %v1134_v23 }
 0x326   : > { %v5301_v56 = vpop.eup %4018  ;;  %v863_v29 = vpop.xlane.xlu1 %862 }
 0x327   : > { %4028 = vpow2.f32 %v1027_v37  ;;  %v947_v6 = vsub.f32 %v5081_v63, %v863_v29  ;;  %v948_v28 = vsub.f32 %v5083_v3, %v863_v29  ;;  %v1137_v2 = vadd.f32 %v5301_v56, %v5297_v40 }
 0x328   : > { %4030 = vpow2.f32 %v1029_v17  ;;  %v5315_v63 = vadd.f32 %v5187_v8, %v309_v4 }
 0x329   : > { %v5309_v7 = vpop.eup %4020  ;;  %v1031_v38 = vmul.f32 1.442695, %v947_v6  ;;  %v1033_v24 = vmul.f32 1.442695, %v948_v28  ;;  %919 = vmax.xlane.f32.xlu0 %v918_v53  ;;  %1138 = vadd.xlane.f32.xlu1 %v1137_v2 }
 0x32a   : > { %v5317_v3 = vpop.eup %4022  ;;  %v866_v16 = vpop.xlane.xlu0 %865  ;;  %v924_v8 = vmax.f32 %v5312_v46, %v5315_v63 }
 0x32b   : > { %4032 = vpow2.f32 %v1031_v38  ;;  %v949_v55 = vsub.f32 %v5087_v13, %v866_v16  ;;  %v950_v57 = vsub.f32 %v5089_v15, %v866_v16  ;;  %v1140_v1 = vadd.f32 %v5317_v3, %v5309_v7 }
 0x32c   : > { %4034 = vpow2.f32 %v1033_v24 }
 0x32d   : > { %v5323_v23 = vpop.eup %4024  ;;  %v1035_v37 = vmul.f32 1.442695, %v949_v55  ;;  %v1037_v10 = vmul.f32 1.442695, %v950_v57  ;;  %922 = vmax.xlane.f32.xlu1 %v921_v52  ;;  %1141 = vadd.xlane.f32.xlu0 %v1140_v1 }
 0x32e   : > { %v5327_v17 = vpop.eup %4026  ;;  %v869_v53 = vpop.xlane.xlu1 %868 }
 0x32f   : > { %4036 = vpow2.f32 %v1035_v37  ;;  %v951_v13 = vsub.f32 %v5093_v22, %v869_v53  ;;  %v952_v15 = vsub.f32 %v5095_v26, %v869_v53  ;;  %v1143_v29 = vadd.f32 %v5327_v17, %v5323_v23 }
 0x330   : > { %4038 = vpow2.f32 %v1037_v10 }
 0x331   : > { %v5333_v47 = vpop.eup %4028  ;;  %v1039_v4 = vmul.f32 1.442695, %v951_v13  ;;  %v1041_v6 = vmul.f32 1.442695, %v952_v15  ;;  %925 = vmax.xlane.f32.xlu0 %v924_v8  ;;  %1144 = vadd.xlane.f32.xlu1 %v1143_v29 }
 0x332   : > { %v5335_v28 = vpop.eup %4030  ;;  %v872_v2 = vpop.xlane.xlu0 %871 }
 0x333   : > { %4040 = vpow2.f32 %v1039_v4  ;;  %v953_v52 = vsub.f32 %v5099_v33, %v872_v2  ;;  %v954_v22 = vsub.f32 %v5101_v35, %v872_v2  ;;  %v1146_v26 = vadd.f32 %v5335_v28, %v5333_v47 }
 0x334   : > { %4042 = vpow2.f32 %v1041_v6 }
 0x335   : > { %v5341_v38 = vpop.eup %4032  ;;  %v1043_v24 = vmul.f32 1.442695, %v953_v52  ;;  %v1045_v16 = vmul.f32 1.442695, %v954_v22  ;;  %1147 = vadd.xlane.f32.xlu0 %v1146_v26 }
 0x336   : > { %v5343_v55 = vpop.eup %4034  ;;  %v875_v57 = vpop.xlane.xlu1 %874 }
 0x337   : > { %4044 = vpow2.f32 %v1043_v24  ;;  %v955_v1 = vsub.f32 %v5105_v42, %v875_v57  ;;  %v956_v37 = vsub.f32 %v5107_v45, %v875_v57  ;;  %v1149_v33 = vadd.f32 %v5343_v55, %v5341_v38 }
 0x338   : > { %4046 = vpow2.f32 %v1045_v16 }
 0x339   : > { %v5349_v35 = vpop.eup %4036  ;;  %v1047_v10 = vmul.f32 1.442695, %v955_v1  ;;  %v1049_v8 = vmul.f32 1.442695, %v956_v37  ;;  %1150 = vadd.xlane.f32.xlu1 %v1149_v33  ;;  %v7042_v33 = vld [vmem:[#allocation12_spill] sm:$0xff] }
 0x33a   : > { %v5351_v53 = vpop.eup %4038  ;;  %v878_v13 = vpop.xlane.xlu0 %877 }
 0x33b   : > { %4048 = vpow2.f32 %v1047_v10  ;;  %v957_v15 = vsub.f32 %v5111_v54, %v878_v13  ;;  %v958_v29 = vsub.f32 %v5113_v59, %v878_v13  ;;  %v1152_v42 = vadd.f32 %v5351_v53, %v5349_v35 }
 0x33c   : > { %4050 = vpow2.f32 %v1049_v8 }
 0x33d   : > { %v5357_v45 = vpop.eup %4040  ;;  %v1051_v4 = vmul.f32 1.442695, %v957_v15  ;;  %v1053_v6 = vmul.f32 1.442695, %v958_v29  ;;  %1153 = vadd.xlane.f32.xlu0 %v1152_v42  ;;  %v7044_v42 = vld [vmem:[#allocation13_spill] sm:$0xff] }
 0x33e   : > { %v5359_v2 = vpop.eup %4042  ;;  %v881_v52 = vpop.xlane.xlu1 %880 }
 0x33f   : > { %4052 = vpow2.f32 %v1051_v4  ;;  %v959_v22 = vsub.f32 %v5117_v5, %v881_v52  ;;  %v960_v26 = vsub.f32 %v5119_v12, %v881_v52  ;;  %v1155_v54 = vadd.f32 %v5359_v2, %v5357_v45 }
 0x340   : > { %4054 = vpow2.f32 %v1053_v6  ;;  %v7045_v6 = vld [vmem:[#allocation14_spill] sm:$0xff] }
 0x341   : > { %v5365_v59 = vpop.eup %4044  ;;  %v1055_v24 = vmul.f32 1.442695, %v959_v22  ;;  %v1057_v16 = vmul.f32 1.442695, %v960_v26  ;;  %1156 = vadd.xlane.f32.xlu1 %v1155_v54 }
 0x342   : > { %v5367_v57 = vpop.eup %4046  ;;  %v884_v1 = vpop.xlane.xlu0 %883 }
 0x343   : > { %4056 = vpow2.f32 %v1055_v24  ;;  %v961_v37 = vsub.f32 %v5123_v21, %v884_v1  ;;  %v962_v10 = vsub.f32 %v7042_v33, %v884_v1  ;;  %v1158_v5 = vadd.f32 %v5367_v57, %v5365_v59  ;;  %v7047_v1 = vld [vmem:[#allocation15_spill] sm:$0xff]  ;;  %v7048_v33 = vld [vmem:[#allocation16_spill] sm:$0xff] }
 0x344   : > { %4058 = vpow2.f32 %v1057_v16 }
 0x345   : > { %v5373_v12 = vpop.eup %4048  ;;  %v1059_v8 = vmul.f32 1.442695, %v961_v37  ;;  %v1061_v13 = vmul.f32 1.442695, %v962_v10  ;;  %1159 = vadd.xlane.f32.xlu0 %v1158_v5 }
 0x346   : > { %7043 = vst [vmem:[#allocation12_spill] sm:$0xff] %v5373_v12  ;;  %v5375_v15 = vpop.eup %4050  ;;  %v887_v29 = vpop.xlane.xlu1 %886 }
 0x347   : > { %4060 = vpow2.f32 %v1059_v8  ;;  %v963_v4 = vsub.f32 %v7044_v42, %v887_v29  ;;  %v964_v52 = vsub.f32 %v7045_v6, %v887_v29  ;;  %v1161_v21 = vadd.f32 %v5375_v15, %v5373_v12  ;;  %v7051_v6 = vld [vmem:[#allocation17_spill] sm:$0xff] }
 0x348   : > { %4062 = vpow2.f32 %v1061_v13 }
 0x349   : > { %v5381_v22 = vpop.eup %4052  ;;  %v1063_v26 = vmul.f32 1.442695, %v963_v4  ;;  %v1065_v54 = vmul.f32 1.442695, %v964_v52  ;;  %1162 = vadd.xlane.f32.xlu1 %v1161_v21  ;;  %v7052_v21 = vld [vmem:[#allocation18_spill] sm:$0xff] }
 0x34a   : > { %7046 = vst [vmem:[#allocation13_spill] sm:$0xff] %v5381_v22  ;;  %v5383_v24 = vpop.eup %4054  ;;  %v890_v16 = vpop.xlane.xlu0 %889 }
 0x34b   : > { %4064 = vpow2.f32 %v1063_v26  ;;  %v965_v37 = vsub.f32 %v7047_v1, %v890_v16  ;;  %v966_v10 = vsub.f32 %v7048_v33, %v890_v16  ;;  %v1164_v5 = vadd.f32 %v5383_v24, %v5381_v22 }
 0x34c   : > { %4066 = vpow2.f32 %v1065_v54 }
 0x34d   : > { %v5389_v8 = vpop.eup %4056  ;;  %v1067_v13 = vmul.f32 1.442695, %v965_v37  ;;  %v1069_v29 = vmul.f32 1.442695, %v966_v10  ;;  %1165 = vadd.xlane.f32.xlu0 %v1164_v5  ;;  %v7055_v5 = vld [vmem:[#allocation19_spill] sm:$0xff] }
 0x34e   : > { %7049 = vst [vmem:[#allocation14_spill] sm:$0xff] %v5389_v8  ;;  %v5391_v42 = vpop.eup %4058  ;;  %v893_v4 = vpop.xlane.xlu1 %892 }
 0x34f   : > { %7050 = vst [vmem:[#allocation15_spill] sm:$0xff] %v5391_v42  ;;  %4068 = vpow2.f32 %v1067_v13  ;;  %v967_v52 = vsub.f32 %v7051_v6, %v893_v4  ;;  %v968_v26 = vsub.f32 %v7052_v21, %v893_v4  ;;  %v1167_v16 = vadd.f32 %v5391_v42, %v5389_v8  ;;  %v7056_v13 = vld [vmem:[#allocation20_spill] sm:$0xff] }
 0x350   : > { %4070 = vpow2.f32 %v1069_v29 }
 0x351   : > { %v5397_v1 = vpop.eup %4060  ;;  %v1071_v54 = vmul.f32 1.442695, %v967_v52  ;;  %v1073_v33 = vmul.f32 1.442695, %v968_v26  ;;  %1168 = vadd.xlane.f32.xlu1 %v1167_v16  ;;  %v7057_v16 = vld [vmem:[#allocation21_spill] sm:$0xff] }
 0x352   : > { %7053 = vst [vmem:[#allocation16_spill] sm:$0xff] %v5397_v1  ;;  %v5399_v37 = vpop.eup %4062  ;;  %v896_v10 = vpop.xlane.xlu0 %895 }
 0x353   : > { %7054 = vst [vmem:[#allocation17_spill] sm:$0xff] %v5399_v37  ;;  %4072 = vpow2.f32 %v1071_v54  ;;  %v969_v12 = vsub.f32 %v7055_v5, %v896_v10  ;;  %v970_v22 = vsub.f32 %v7056_v13, %v896_v10  ;;  %v1170_v4 = vadd.f32 %v5399_v37, %v5397_v1  ;;  %v7058_v54 = vld [vmem:[#allocation22_spill] sm:$0xff] }
 0x354   : > { %4074 = vpow2.f32 %v1073_v33 }
 0x355   : > { %v5405_v6 = vpop.eup %4064  ;;  %v1075_v29 = vmul.f32 1.442695, %v969_v12  ;;  %v1077_v21 = vmul.f32 1.442695, %v970_v22  ;;  %1171 = vadd.xlane.f32.xlu0 %v1170_v4  ;;  %v7059_v4 = vld [vmem:[#allocation23_spill] sm:$0xff] }
 0x356   : > { %v5407_v52 = vpop.eup %4066  ;;  %v899_v26 = vpop.xlane.xlu1 %898 }
 0x357   : > { %4076 = vpow2.f32 %v1075_v29  ;;  %v971_v8 = vsub.f32 %v7057_v16, %v899_v26  ;;  %v972_v42 = vsub.f32 %v7058_v54, %v899_v26  ;;  %v1173_v10 = vadd.f32 %v5407_v52, %v5405_v6  ;;  %v7060_v29 = vld [vmem:[#allocation24_spill] sm:$0xff] }
 0x358   : > { %4078 = vpow2.f32 %v1077_v21 }
 0x359   : > { %v5413_v5 = vpop.eup %4068  ;;  %v1079_v33 = vmul.f32 1.442695, %v971_v8  ;;  %v1081_v13 = vmul.f32 1.442695, %v972_v42  ;;  %1174 = vadd.xlane.f32.xlu1 %v1173_v10 }
 0x35a   : > { %v5415_v12 = vpop.eup %4070  ;;  %v902_v22 = vpop.xlane.xlu0 %901 }
 0x35b   : > { %4080 = vpow2.f32 %v1079_v33  ;;  %v973_v1 = vsub.f32 %v7059_v4, %v902_v22  ;;  %v974_v37 = vsub.f32 %v7060_v29, %v902_v22  ;;  %v1176_v26 = vadd.f32 %v5415_v12, %v5413_v5 }
 0x35c   : > { %4082 = vpow2.f32 %v1081_v13 }
 0x35d   : > { %v5421_v16 = vpop.eup %4072  ;;  %v1083_v21 = vmul.f32 1.442695, %v973_v1  ;;  %v1085_v54 = vmul.f32 1.442695, %v974_v37  ;;  %1177 = vadd.xlane.f32.xlu0 %v1176_v26 }
 0x35e   : > { %7061 = vst [vmem:[#allocation18_spill] sm:$0xff] %v5421_v16  ;;  %v5423_v8 = vpop.eup %4074 }
 0x35f   : > { %7062 = vst [vmem:[#allocation19_spill] sm:$0xff] %v5423_v8  ;;  %4084 = vpow2.f32 %v1083_v21  ;;  %v1179_v42 = vadd.f32 %v5423_v8, %v5421_v16 }
 0x360   : > { %4086 = vpow2.f32 %v1085_v54 }
 0x361   : > { %v5427_v10 = vpop.eup %4076  ;;  %1180 = vadd.xlane.f32.xlu1 %v1179_v42 }
 0x362   : > { %7063 = vst [vmem:[#allocation20_spill] sm:$0xff] %v5427_v10  ;;  %v5429_v33 = vpop.eup %4078 }
 0x363   : > { %7064 = vst [vmem:[#allocation21_spill] sm:$0xff] %v5429_v33  ;;  %v1182_v13 = vadd.f32 %v5429_v33, %v5427_v10 }
 0x365   : > { %v5433_v22 = vpop.eup %4080  ;;  %1183 = vadd.xlane.f32.xlu0 %v1182_v13 }
 0x366   : > { %7065 = vst [vmem:[#allocation22_spill] sm:$0xff] %v5433_v22  ;;  %v5435_v1 = vpop.eup %4082 }
 0x367   : > { %7066 = vst [vmem:[#allocation23_spill] sm:$0xff] %v5435_v1  ;;  %v1185_v37 = vadd.f32 %v5435_v1, %v5433_v22 }
 0x369   : > { %v5439_v4 = vpop.eup %4084  ;;  %1186 = vadd.xlane.f32.xlu1 %v1185_v37 }
 0x36a   : > { %7067 = vst [vmem:[#allocation24_spill] sm:$0xff] %v5439_v4  ;;  %v5441_v29 = vpop.eup %4086 }
 0x36b   : > { %7068 = vst [vmem:[#allocation25_spill] sm:$0xff] %v5441_v29  ;;  %v1188_v26 = vadd.f32 %v5441_v29, %v5439_v4 }
 0x36d   : > { %1189 = vadd.xlane.f32.xlu0 %v1188_v26 }
 0x39e   : > { %v1121_v21 = vpop.xlane.xlu1 %1120 }
 0x39f   : > { %4088 = vrcp.f32 %v1121_v21 }
 0x3a2   : > { %v1124_v54 = vpop.xlane.xlu0 %1123  ;;  %v905_v42 = vpop.xlane.xlu1 %904 }
 0x3a3   : > { %4090 = vrcp.f32 %v1124_v54  ;;  %v975_v13 = vsub.f32 %v5201_v9, %v905_v42  ;;  %v976_v16 = vsub.f32 %v5203_v58, %v905_v42 }
 0x3a5   : > { %v1087_v10 = vmul.f32 1.442695, %v975_v13  ;;  %v1089_v22 = vmul.f32 1.442695, %v976_v16 }
 0x3a6   : > { %v908_v1 = vpop.xlane.xlu0 %907  ;;  %v1127_v33 = vpop.xlane.xlu1 %1126 }
 0x3a7   : > { %4092 = vpow2.f32 %v1087_v10  ;;  %v977_v37 = vsub.f32 %v5217_v48, %v908_v1  ;;  %v978_v8 = vsub.f32 %v5219_v50, %v908_v1 }
 0x3a8   : > { %4094 = vpow2.f32 %v1089_v22 }
 0x3a9   : > { %v1091_v26 = vmul.f32 1.442695, %v977_v37  ;;  %v1093_v4 = vmul.f32 1.442695, %v978_v8  ;;  %4096 = vrcp.f32 %v1127_v33  ;;  %v4089_v54 = vpop.eup %4088 }
 0x3aa   : > { %v1130_v21 = vpop.xlane.xlu0 %1129  ;;  %v911_v29 = vpop.xlane.xlu1 %910  ;;  %v1248_v50 = vmul.f32 %v4089_v54, %v5207_v36  ;;  %v1247_v33 = vmul.f32 %v4089_v54, %v5205_v51 }
 0x3ab   : > { %4098 = vpow2.f32 %v1091_v26  ;;  %v979_v9 = vsub.f32 %v5228_v62, %v911_v29  ;;  %v980_v58 = vsub.f32 %v5231_v41, %v911_v29 }
 0x3ac   : > { %4100 = vpow2.f32 %v1093_v4 }
 0x3ad   : > { %v4091_v16 = vpop.eup %4090  ;;  %4102 = vrcp.f32 %v1130_v21  ;;  %v1095_v10 = vmul.f32 1.442695, %v979_v9  ;;  %v1097_v42 = vmul.f32 1.442695, %v980_v58 }
 0x3ae   : > { %v914_v48 = vpop.xlane.xlu0 %913  ;;  %v1133_v13 = vpop.xlane.xlu1 %1132  ;;  %v1250_v8 = vmul.f32 %v4091_v16, %v5221_v49  ;;  %v1249_v22 = vmul.f32 %v4091_v16, %v5215_v31 }
 0x3af   : > { %4104 = vpow2.f32 %v1095_v10  ;;  %v981_v62 = vsub.f32 %v5248_v60, %v914_v48  ;;  %v982_v41 = vsub.f32 %v5251_v30, %v914_v48 }
 0x3b0   : > { %4106 = vpow2.f32 %v1097_v42  ;;  %v3744_v1 = vpack.c.bf16 %v1250_v8, %v1248_v50  ;;  %v3746_v4 = vpack.c.bf16 %v1249_v22, %v1247_v33 }
 0x3b1   : > { %v5457_v29 = vpop.eup %4092  ;;  %v1099_v37 = vmul.f32 1.442695, %v981_v62  ;;  %v1101_v26 = vmul.f32 1.442695, %v982_v41  ;;  %4108 = vrcp.f32 %v1133_v13 }
 0x3b2   : > { %v5459_v36 = vpop.eup %4094  ;;  %v1136_v49 = vpop.xlane.xlu0 %1135  ;;  %3745 = vmatprep.subr.bf16.mxu0 %v3744_v1 }
 0x3b3   : > { %v917_v51 = vpop.xlane.xlu1 %916  ;;  %v4097_v21 = vpop.eup %4096  ;;  %4110 = vpow2.f32 %v1099_v37  ;;  %3747 = vmatpush1.bf16.xpose.msra.mxu0 %v3746_v4  ;;  %v1191_v30 = vadd.f32 %v5459_v36, %v5457_v29 }
 0x3b4   : > { %v983_v31 = vsub.f32 %v5260_v0, %v917_v51  ;;  %v984_v60 = vsub.f32 %v5263_v61, %v917_v51  ;;  %4112 = vpow2.f32 %v1101_v26  ;;  %v1252_v48 = vmul.f32 %v4097_v21, %v5237_v25 }
 0x3b5   : > { %v5465_v54 = vpop.eup %4098  ;;  %4114 = vrcp.f32 %v1136_v49  ;;  %1192 = vadd.xlane.f32.xlu1 %v1191_v30  ;;  %v1251_v33 = vmul.f32 %v4097_v21, %v5233_v43 }
 0x3b6   : > { %v1103_v9 = vmul.f32 1.442695, %v983_v31  ;;  %v1105_v58 = vmul.f32 1.442695, %v984_v60  ;;  %v5467_v16 = vpop.eup %4100  ;;  %v920_v10 = vpop.xlane.xlu0 %919 }
 0x3b7   : > { %v1139_v42 = vpop.xlane.xlu1 %1138  ;;  %v4103_v0 = vpop.eup %4102  ;;  %v985_v61 = vsub.f32 %v5280_v32, %v920_v10  ;;  %v986_v13 = vsub.f32 %v5283_v44, %v920_v10  ;;  %v1194_v50 = vadd.f32 %v5467_v16, %v5465_v54 }
 0x3b8   : > { %4116 = vpow2.f32 %v1103_v9  ;;  %v1254_v8 = vmul.f32 %v4103_v0, %v5253_v18  ;;  %v1253_v22 = vmul.f32 %v4103_v0, %v5245_v34 }
 0x3b9   : > { %4118 = vpow2.f32 %v1105_v58  ;;  %v5477_v62 = vpop.eup %4104  ;;  %v1107_v41 = vmul.f32 1.442695, %v985_v61  ;;  %v1109_v25 = vmul.f32 1.442695, %v986_v13  ;;  %1195 = vadd.xlane.f32.xlu0 %v1194_v50 }
 0x3ba   : > { %v5479_v1 = vpop.eup %4106  ;;  %4120 = vrcp.f32 %v1139_v42  ;;  %v1142_v32 = vpop.xlane.xlu0 %1141  ;;  %v3748_v44 = vpack.c.bf16 %v1254_v8, %v1252_v48  ;;  %v3750_v37 = vpack.c.bf16 %v1253_v22, %v1251_v33 }
 0x3bb   : > { %v923_v4 = vpop.xlane.xlu1 %922  ;;  %v4109_v26 = vpop.eup %4108  ;;  %4122 = vpow2.f32 %v1107_v41  ;;  %v1197_v34 = vadd.f32 %v5479_v1, %v5477_v62 }
 0x3bc   : > { %v987_v18 = vsub.f32 %v5292_v14, %v923_v4  ;;  %v988_v43 = vsub.f32 %v5295_v20, %v923_v4  ;;  %4124 = vpow2.f32 %v1109_v25  ;;  %3749 = vmatprep.subr.bf16.mxu0 %v3748_v44  ;;  %v1256_v30 = vmul.f32 %v4109_v26, %v5269_v39 }
 0x3bd   : > { %v5485_v49 = vpop.eup %4110  ;;  %4126 = vrcp.f32 %v1142_v32  ;;  %3751 = vmatpush1.bf16.xpose.msra.mxu0 %v3750_v37  ;;  %1198 = vadd.xlane.f32.xlu1 %v1197_v34  ;;  %v1255_v48 = vmul.f32 %v4109_v26, %v5265_v27 }
 0x3be   : > { %v1111_v51 = vmul.f32 1.442695, %v987_v18  ;;  %v1113_v21 = vmul.f32 1.442695, %v988_v43  ;;  %v5487_v31 = vpop.eup %4112  ;;  %v926_v60 = vpop.xlane.xlu0 %925 }
 0x3bf   : > { %v4115_v14 = vpop.eup %4114  ;;  %v989_v20 = vsub.f32 %v5312_v46, %v926_v60  ;;  %v990_v9 = vsub.f32 %v5315_v63, %v926_v60  ;;  %v1145_v58 = vpop.xlane.xlu1 %1144  ;;  %v1200_v10 = vadd.f32 %v5487_v31, %v5485_v49 }
 0x3c0   : > { %4128 = vpow2.f32 %v1111_v51  ;;  %v1258_v42 = vmul.f32 %v4115_v14, %v5285_v19  ;;  %v1257_v0 = vmul.f32 %v4115_v14, %v5277_v11 }
 0x3c1   : > { %4130 = vpow2.f32 %v1113_v21  ;;  %v1115_v39 = vmul.f32 1.442695, %v989_v20  ;;  %v1117_v13 = vmul.f32 1.442695, %v990_v9  ;;  %1201 = vadd.xlane.f32.xlu0 %v1200_v10 }
 0x3c2   : > { %v5497_v61 = vpop.eup %4116  ;;  %4132 = vrcp.f32 %v1145_v58  ;;  %v1148_v46 = vpop.xlane.xlu0 %1147  ;;  %v3752_v63 = vpack.c.bf16 %v1258_v42, %v1256_v30  ;;  %v3754_v8 = vpack.c.bf16 %v1257_v0, %v1255_v48 }
 0x3c3   : > { %v5499_v50 = vpop.eup %4118  ;;  %4134 = vpow2.f32 %v1115_v39 }
 0x3c4   : > { %v1203_v33 = vadd.f32 %v5499_v50, %v5497_v61  ;;  %v4121_v19 = vpop.eup %4120  ;;  %4136 = vpow2.f32 %v1117_v13  ;;  %3753 = vmatprep.subr.bf16.mxu0 %v3752_v63 }
 0x3c5   : > { %v5503_v27 = vpop.eup %4122  ;;  %4138 = vrcp.f32 %v1148_v46  ;;  %3755 = vmatpush1.bf16.xpose.msra.mxu0 %v3754_v8  ;;  %v1260_v32 = vmul.f32 %v4121_v19, %v5301_v56  ;;  %v1259_v4 = vmul.f32 %v4121_v19, %v5297_v40  ;;  %v245_v19 = vld [vmem:[%s6918_s2 + $0x8] sm:$0xf] }
 0x3c6   : > { %1204 = vadd.xlane.f32.xlu1 %v1203_v33  ;;  %v5505_v11 = vpop.eup %4124  ;;  %v1151_v22 = vpop.xlane.xlu1 %1150 }
 0x3c7   : > { %v4127_v41 = vpop.eup %4126  ;;  %v1206_v25 = vadd.f32 %v5505_v11, %v5503_v27  ;;  %4140 = vrcp.f32 %v1151_v22  ;;  %v5536_v22 = vpop.f32.mrb[2].mxu0 }
 0x3c8   : > { %v1262_v44 = vmul.f32 %v4127_v41, %v5317_v3  ;;  %v1261_v37 = vmul.f32 %v4127_v41, %v5309_v7 }
 0x3c9   : > { %1207 = vadd.xlane.f32.xlu0 %v1206_v25 }
 0x3ca   : > { %v5513_v26 = vpop.eup %4128  ;;  %v1154_v43 = vpop.xlane.xlu0 %1153  ;;  %v3756_v34 = vpack.c.bf16 %v1262_v44, %v1260_v32  ;;  %v3758_v51 = vpack.c.bf16 %v1261_v37, %v1259_v4 }
 0x3cb   : > { %v5515_v18 = vpop.eup %4130  ;;  %4142 = vrcp.f32 %v1154_v43 }
 0x3cc   : > { %v1209_v21 = vadd.f32 %v5515_v18, %v5513_v26  ;;  %v4133_v56 = vpop.eup %4132  ;;  %3757 = vmatprep.subr.bf16.mxu0 %v3756_v34 }
 0x3cd   : > { %v5519_v3 = vpop.eup %4134  ;;  %3759 = vmatpush1.bf16.xpose.msra.mxu0 %v3758_v51  ;;  %v1264_v14 = vmul.f32 %v4133_v56, %v5327_v17  ;;  %v1263_v9 = vmul.f32 %v4133_v56, %v5323_v23  ;;  %v7069_v56 = vld [vmem:[#allocation13_spill] sm:$0xff] }
 0x3ce   : > { %1210 = vadd.xlane.f32.xlu1 %v1209_v21  ;;  %v5521_v40 = vpop.eup %4136  ;;  %v1157_v7 = vpop.xlane.xlu1 %1156 }
 0x3cf   : > { %v4139_v60 = vpop.eup %4138  ;;  %v1212_v30 = vadd.f32 %v5521_v40, %v5519_v3  ;;  %4144 = vrcp.f32 %v1157_v7  ;;  %v7070_v7 = vld [vmem:[#allocation12_spill] sm:$0xff] }
 0x3d0   : > { %v1266_v20 = vmul.f32 %v4139_v60, %v5335_v28  ;;  %v1265_v58 = vmul.f32 %v4139_v60, %v5333_v47 }
 0x3d1   : > { %1213 = vadd.xlane.f32.xlu0 %v1212_v30  ;;  %v4141_v0 = vpop.eup %4140 }
 0x3d2   : > { %v1160_v10 = vpop.xlane.xlu0 %1159  ;;  %v3760_v42 = vpack.c.bf16 %v1266_v20, %v1264_v14  ;;  %v3762_v48 = vpack.c.bf16 %v1265_v58, %v1263_v9  ;;  %v1268_v46 = vmul.f32 %v4141_v0, %v5343_v55  ;;  %v1267_v23 = vmul.f32 %v4141_v0, %v5341_v38  ;;  %v5538_v55 = vpop.f32.mrb[3].mxu0  ;;  %v7071_v58 = vld [vmem:[#allocation15_spill] sm:$0xff]  ;;  %v7074_v0 = vld [vmem:[#allocation14_spill] sm:$0xff] }
 0x3d3   : > { %4146 = vrcp.f32 %v1160_v10 }
 0x3d4   : > { %3761 = vmatprep.subr.bf16.mxu0 %v3760_v42  ;;  %v7072_v42 = vld [vmem:[#allocation17_spill] sm:$0xff] }
 0x3d5   : > { %v4143_v39 = vpop.eup %4142  ;;  %3763 = vmatpush1.bf16.xpose.msra.mxu0 %v3762_v48  ;;  %v7073_v48 = vld [vmem:[#allocation16_spill] sm:$0xff] }
 0x3d6   : > { %v1163_v13 = vpop.xlane.xlu1 %1162  ;;  %v1270_v17 = vmul.f32 %v4143_v39, %v5351_v53  ;;  %v1269_v28 = vmul.f32 %v4143_v39, %v5349_v35 }
 0x3d7   : > { %4148 = vrcp.f32 %v1163_v13 }
 0x3d8   : > { %v3764_v47 = vpack.c.bf16 %v1270_v17, %v1268_v46  ;;  %v3766_v63 = vpack.c.bf16 %v1269_v28, %v1267_v23 }
 0x3d9   : > { %v4145_v33 = vpop.eup %4144 }
 0x3da   : > { %v1166_v8 = vpop.xlane.xlu0 %1165  ;;  %3765 = vmatprep.subr.bf16.mxu0 %v3764_v47  ;;  %v1272_v38 = vmul.f32 %v4145_v33, %v5359_v2  ;;  %v1271_v32 = vmul.f32 %v4145_v33, %v5357_v45 }
 0x3db   : > { %4150 = vrcp.f32 %v1166_v8 }
 0x3dd   : > { %v4147_v53 = vpop.eup %4146  ;;  %3767 = vmatpush1.bf16.xpose.msra.mxu0 %v3766_v63 }
 0x3de   : > { %v1169_v35 = vpop.xlane.xlu1 %1168  ;;  %v1274_v41 = vmul.f32 %v4147_v53, %v5367_v57  ;;  %v1273_v25 = vmul.f32 %v4147_v53, %v5365_v59 }
 0x3df   : > { %317 = vperm.xlu1 %3991, %v245_v19   ;;  %4152 = vrcp.f32 %v1169_v35 }
 0x3e0   : > { %v3768_v44 = vpack.c.bf16 %v1274_v41, %v1272_v38  ;;  %v3770_v4 = vpack.c.bf16 %v1273_v25, %v1271_v32  ;;  %v7075_v32 = vld [vmem:[#allocation19_spill] sm:$0xff] }
 0x3e1   : > { %v4149_v43 = vpop.eup %4148 }
 0x3e2   : > { %v1172_v37 = vpop.xlane.xlu0 %1171  ;;  %3769 = vmatprep.subr.bf16.mxu0 %v3768_v44  ;;  %v1276_v21 = vmul.f32 %v4149_v43, %v5375_v15  ;;  %v1275_v59 = vmul.f32 %v4149_v43, %v7070_v7 }
 0x3e3   : > { %4154 = vrcp.f32 %v1172_v37 }
 0x3e5   : > { %v4151_v34 = vpop.eup %4150  ;;  %3771 = vmatpush1.bf16.xpose.msra.mxu0 %v3770_v4  ;;  %v7076_v4 = vld [vmem:[#allocation21_spill] sm:$0xff] }
 0x3e6   : > { %v1175_v51 = vpop.xlane.xlu1 %1174  ;;  %v1278_v2 = vmul.f32 %v4151_v34, %v5383_v24  ;;  %v1277_v57 = vmul.f32 %v4151_v34, %v7069_v56 }
 0x3e7   : > { %4156 = vrcp.f32 %v1175_v51 }
 0x3e8   : > { %v3772_v60 = vpack.c.bf16 %v1278_v2, %v1276_v21  ;;  %v3774_v45 = vpack.c.bf16 %v1277_v57, %v1275_v59  ;;  %v7079_v2 = vld [vmem:[#allocation23_spill] sm:$0xff]  ;;  %v7080_v57 = vld [vmem:[#allocation25_spill] sm:$0xff]  ;;  %v7081_v59 = vld [vmem:[#allocation24_spill] sm:$0xff] }
 0x3e9   : > { %v4153_v14 = vpop.eup %4152 }
 0x3ea   : > { %v1178_v30 = vpop.xlane.xlu0 %1177  ;;  %3773 = vmatprep.subr.bf16.mxu0 %v3772_v60  ;;  %v1280_v10 = vmul.f32 %v4153_v14, %v7071_v58  ;;  %v1279_v39 = vmul.f32 %v4153_v14, %v7074_v0 }
 0x3eb   : > { %4158 = vrcp.f32 %v1178_v30 }
 0x3ed   : > { %v4155_v20 = vpop.eup %4154  ;;  %3775 = vmatpush1.bf16.xpose.msra.mxu0 %v3774_v45  ;;  %v7082_v45 = vld [vmem:[#allocation22_spill] sm:$0xff] }
 0x3ee   : > { %v1181_v9 = vpop.xlane.xlu1 %1180  ;;  %v1282_v15 = vmul.f32 %v4155_v20, %v7072_v42  ;;  %v1281_v24 = vmul.f32 %v4155_v20, %v7073_v48 }
 0x3ef   : > { %4160 = vrcp.f32 %v1181_v9 }
 0x3f0   : > { %v3776_v13 = vpack.c.bf16 %v1282_v15, %v1280_v10  ;;  %v3778_v46 = vpack.c.bf16 %v1281_v24, %v1279_v39 }
 0x3f1   : > { %v4157_v28 = vpop.eup %4156 }
 0x3f2   : > { %v1184_v17 = vpop.xlane.xlu0 %1183  ;;  %3777 = vmatprep.subr.bf16.mxu0 %v3776_v13  ;;  %v1284_v63 = vmul.f32 %v4157_v28, %v5407_v52  ;;  %v1283_v19 = vmul.f32 %v4157_v28, %v5405_v6  ;;  %v7077_v52 = vld [vmem:[#allocation20_spill] sm:$0xff] }
 0x3f3   : > { %4162 = vrcp.f32 %v1184_v17 }
 0x3f5   : > { %v4159_v23 = vpop.eup %4158  ;;  %3779 = vmatpush1.bf16.xpose.msra.mxu0 %v3778_v46 }
 0x3f6   : > { %v1187_v47 = vpop.xlane.xlu1 %1186  ;;  %v1286_v8 = vmul.f32 %v4159_v23, %v5415_v12  ;;  %v1285_v33 = vmul.f32 %v4159_v23, %v5413_v5  ;;  %v7078_v12 = vld [vmem:[#allocation18_spill] sm:$0xff] }
 0x3f7   : > { %4164 = vrcp.f32 %v1187_v47 }
 0x3f8   : > { %v3780_v53 = vpack.c.bf16 %v1286_v8, %v1284_v63  ;;  %v3782_v35 = vpack.c.bf16 %v1285_v33, %v1283_v19 }
 0x3f9   : > { %v4161_v41 = vpop.eup %4160 }
 0x3fa   : > { %v1190_v38 = vpop.xlane.xlu0 %1189  ;;  %3781 = vmatprep.subr.bf16.mxu0 %v3780_v53  ;;  %v1288_v44 = vmul.f32 %v4161_v41, %v7075_v32  ;;  %v1287_v34 = vmul.f32 %v4161_v41, %v7078_v12 }
 0x3fb   : > { %4166 = vrcp.f32 %v1190_v38 }
 0x3fd   : > { %v4163_v25 = vpop.eup %4162  ;;  %3783 = vmatpush1.bf16.xpose.msra.mxu0 %v3782_v35 }
 0x3fe   : > { %v1290_v37 = vmul.f32 %v4163_v25, %v7076_v4  ;;  %v1289_v43 = vmul.f32 %v4163_v25, %v7077_v52  ;;  %v7085_v25 = vld [vmem:[#allocation11_spill] sm:$0xff] }
 0x3ff   : > { %v1317_v32 = vrot.slane %v7085_v25, 4 }
 0x400   : > { %v3784_v5 = vpack.c.bf16 %v1290_v37, %v1288_v44  ;;  %v3786_v51 = vpack.c.bf16 %v1289_v43, %v1287_v34 }
 0x401   : > { %v4165_v6 = vpop.eup %4164 }
 0x402   : > { %3785 = vmatprep.subr.bf16.mxu0 %v3784_v5  ;;  %v1292_v56 = vmul.f32 %v4165_v6, %v7079_v2  ;;  %v1291_v30 = vmul.f32 %v4165_v6, %v7082_v45  ;;  %v4569_v45 = vld [vmem:[%s4931_s9] sm:$0xff] }
 0x405   : > { %v4167_v21 = vpop.eup %4166  ;;  %3787 = vmatpush1.bf16.xpose.msra.mxu0 %v3786_v51 }
 0x406   : > { %v1294_v7 = vmul.f32 %v4167_v21, %v7080_v57  ;;  %v1293_v60 = vmul.f32 %v4167_v21, %v7081_v59  ;;  %v5591_v57 = vstv %s241_s18  ;;  %s6874_s18 = scalar_lea.hbm %s6921_s5, %s3743_s13 }
 0x407   : > { %7087 = vst [vmem:[#allocation12_spill] sm:$0xff] %v5591_v57 }
 0x408   : > { %v3788_v14 = vpack.c.bf16 %v1294_v7, %v1292_v56  ;;  %v3790_v20 = vpack.c.bf16 %v1293_v60, %v1291_v30  ;;  %v7086_v56 = vmov 0.0   ;;  %v4570_v30 = vld [vmem:[%s6917_s1] sm:$0xff] }
 0x40a   : > { %3789 = vmatprep.subr.bf16.mxu0 %v3788_v14  ;;  %v4571_v14 = vld [vmem:[%s6917_s1 + $0x8] sm:$0xf] }
 0x40d   : > { %3791 = vmatpush1.bf16.xpose.msra.mxu0 %v3790_v20 }
 0x442   : > { %v1193_v9 = vpop.xlane.xlu1 %1192 }
 0x443   : > { %4168 = vrcp.f32 %v1193_v9  ;;  %v7088_v9 = vld [vmem:[#allocation9_spill] sm:$0xff] }
 0x446   : > { %v1196_v58 = vpop.xlane.xlu0 %1195 }
 0x447   : > { %4170 = vrcp.f32 %v1196_v58 }
 0x44a   : > { %v1199_v10 = vpop.xlane.xlu1 %1198 }
 0x44b   : > { %4172 = vrcp.f32 %v1199_v10 }
 0x44d   : > { %v4169_v15 = vpop.eup %4168 }
 0x44e   : > { %v1202_v42 = vpop.xlane.xlu0 %1201  ;;  %v1296_v0 = vmul.f32 %v4169_v15, %v5459_v36  ;;  %v1295_v13 = vmul.f32 %v4169_v15, %v5457_v29 }
 0x44f   : > { %4174 = vrcp.f32 %v1202_v42 }
 0x451   : > { %v4171_v48 = vpop.eup %4170 }
 0x452   : > { %v1298_v39 = vmul.f32 %v4171_v48, %v5467_v16  ;;  %v1297_v46 = vmul.f32 %v4171_v48, %v5465_v54 }
 0x453   : > { %v1205_v24 = vpop.xlane.xlu1 %1204 }
 0x454   : > { %v3792_v17 = vpack.c.bf16 %v1298_v39, %v1296_v0  ;;  %v3794_v28 = vpack.c.bf16 %v1297_v46, %v1295_v13  ;;  %4176 = vrcp.f32 %v1205_v24 }
 0x455   : > { %v4173_v47 = vpop.eup %4172 }
 0x456   : > { %v1208_v23 = vpop.xlane.xlu0 %1207  ;;  %3793 = vmatprep.subr.bf16.mxu0 %v3792_v17  ;;  %v1300_v33 = vmul.f32 %v4173_v47, %v5479_v1  ;;  %v1299_v16 = vmul.f32 %v4173_v47, %v5477_v62 }
 0x457   : > { %4178 = vrcp.f32 %v1208_v23  ;;  %3795 = vmatpush1.bf16.xpose.msra.mxu0 %v3794_v28 }
 0x459   : > { %v4175_v63 = vpop.eup %4174 }
 0x45a   : > { %v1302_v36 = vmul.f32 %v4175_v63, %v5487_v31  ;;  %v1301_v29 = vmul.f32 %v4175_v63, %v5485_v49  ;;  %v7084_v31 = vld [vmem:[#allocation10_spill] sm:$0xff] }
 0x45b   : > { %v1211_v8 = vpop.xlane.xlu1 %1210  ;;  %v1314_v49 = vrot.slane %v7084_v31, 4 }
 0x45c   : > { %v3796_v19 = vpack.c.bf16 %v1302_v36, %v1300_v33  ;;  %v3798_v54 = vpack.c.bf16 %v1301_v29, %v1299_v16  ;;  %4180 = vrcp.f32 %v1211_v8 }
 0x45e   : > { %v1214_v53 = vpop.xlane.xlu0 %1213  ;;  %3797 = vmatprep.subr.bf16.mxu0 %v3796_v19  ;;  %v4177_v38 = vpop.eup %4176 }
 0x45f   : > { %v5572_v35 = vpop.permute.xlu1 %317  ;;  %4182 = vrcp.f32 %v1214_v53  ;;  %3799 = vmatpush1.bf16.xpose.msra.mxu0 %v3798_v54  ;;  %v1304_v37 = vmul.f32 %v4177_v38, %v5499_v50  ;;  %v1303_v43 = vmul.f32 %v4177_v38, %v5497_v61 }
 0x460   : > { %7083 = vst [vmem:[#allocation13_spill] sm:$0xff] %v5572_v35  ;;  %v402_v41 = vadd.f32 %v5538_v55, %v5572_v35  ;;  %v400_v1 = vadd.f32 %v5536_v22, %v5572_v35 }
 0x461   : > { %v4179_v62 = vpop.eup %4178 }
 0x462   : > { %v1318_v44 = vrot.slane %v402_v41, 4  ;;  %v1315_v4 = vrot.slane %v400_v1, 4  ;;  %v1306_v52 = vmul.f32 %v4179_v62, %v5505_v11  ;;  %v1305_v12 = vmul.f32 %v4179_v62, %v5503_v27 }
 0x464   : > { %v1319_v55 = vsel %vm1313_vm3, %v1317_v32, %v1318_v44  ;;  %v1316_v22 = vsel %vm1313_vm3, %v1314_v49, %v1315_v4  ;;  %v3800_v34 = vpack.c.bf16 %v1306_v52, %v1304_v37  ;;  %v3802_v5 = vpack.c.bf16 %v1305_v12, %v1303_v43 }
 0x465   : > { %1386 = vmatprep.mubr.f32.mxu0 %v1319_v55 }
 0x466   : > { %3801 = vmatprep.subr.bf16.mxu0 %v3800_v34  ;;  %v4181_v51 = vpop.eup %4180 }
 0x467   : > { %3803 = vmatpush1.bf16.xpose.msra.mxu0 %v3802_v5  ;;  %v1308_v21 = vmul.f32 %v4181_v51, %v5515_v18  ;;  %v1307_v61 = vmul.f32 %v4181_v51, %v5513_v26  ;;  %v4568_v26 = vld [vmem:[%s4931_s9 + $0x8] sm:$0xff] }
 0x469   : > { %v4183_v6 = vpop.eup %4182 }
 0x46a   : > { %v1310_v50 = vmul.f32 %v4183_v6, %v5521_v40  ;;  %v1309_v27 = vmul.f32 %v4183_v6, %v5519_v3 }
 0x46c   : > { %v3804_v11 = vpack.c.bf16 %v1310_v50, %v1308_v21  ;;  %v3806_v2 = vpack.c.bf16 %v1309_v27, %v1307_v61 }
 0x46e   : > { %3805 = vmatprep.subr.bf16.mxu0 %v3804_v11 }
 0x46f   : > { %3807 = vmatpush1.bf16.xpose.msra.mxu0 %v3806_v2  ;;  %v4572_v2 = vld [vmem:[#allocation3] sm:$0xff] }
 0x476   : > { %1387 = vmatmul.mubr.f32.vlgmr.msra.gmra.mrb[4].mxu0 %v1316_v22 }
 0x477   : > { %1707 = vmatprep.mubr.f32.mxu0 %v7086_v56 }
 0x549   : > { %v1388_v7 = vpop.f32.mrb[4].mxu0 }
 0x54a   : > { %v1394_v18 = vmul.f32 %v5591_v57, %v1388_v7  ;;  %v1390_v59 = vpop.f32.mrb[5].mxu0 }
 0x54b   : > { %v1395_v40 = vmul.f32 %v5591_v57, %v1390_v59  ;;  %v4573_v59 = vld [vmem:[#allocation3 + $0x8] sm:$0xff] }
 0x54c   : > { %v1396_v3 = vadd.f32 %v4569_v45, %v1394_v18  ;;  %v4574_v45 = vld [vmem:[#allocation3 + $0x10] sm:$0xff] }
 0x54d   : > { %v1397_v60 = vadd.f32 %v4568_v26, %v1395_v40 }
 0x54f   : > { %1398 = vmatprep.subr.mxu1 %v1397_v60 }
 0x550   : > { %1399 = vmatpush1.msra.mxu1 %v1396_v3 }
 0x551   : > { %3665 = vmatmul.mubr.msk.f32.vlgmr.msra.gmra.mrb[64].mxu1 %vm320_vm0, %v4570_v30 }
 0x552   : > { %1468 = vmatprep.mubr.f32.mxu1 %v7086_v56 }
 0x555   : > { %3666 = vmatmul.mubr.msk.f32.gmra.mrb[66].mxu1 %vm320_vm0, %v4571_v14  ;;  %v4575_v14 = vld [vmem:[#allocation3 + $0x18] sm:$0xff] }
 0x624   : > { %v1464_v20 = vpop.f32.mrb[64].mxu1 }
 0x625   : > { %v1465_v58 = vadd.f32 %v1464_v20, %v7088_v9  ;;  %v1466_v10 = vpop.f32.mrb[65].mxu1 }
 0x626   : > { %v1467_v42 = vadd.f32 %v1466_v10, %v7088_v9 }
 0x627   : > { %1475 = vxpose.xlu0.b32.start.end [1/1] (short) %v1465_v58, 128  ;;  %v1541_v24 = vrot.slane %v1465_v58, 2  ;;  %v2382_v46 = vrot.slane %v1465_v58, 4 }
 0x628   : > { %v1542_v15 = vrot.slane %v1467_v42, 2  ;;  %v1470_v48 = vpop.f32.mrb[66].mxu1  ;;  %1507 = vxpose.xlu1.b32.start.end [1/1] (short) %v1467_v42, 128  ;;  %v2385_v28 = vrot.slane %v1467_v42, 4  ;;  %v4576_v42 = vld [vmem:[#allocation3 + $0x20] sm:$0xff] }
 0x629   : > { %v1471_v0 = vadd.f32 %v1470_v48, %v5572_v35  ;;  %v1472_v39 = vpop.f32.mrb[67].mxu1 }
 0x62a   : > { %v1473_v13 = vadd.f32 %v1472_v39, %v5572_v35  ;;  %3667 = vmatprep.subr.msk.mxu0 %vm569_vm1, %v1542_v15 }
 0x62b   : > { %v2383_v17 = vrot.slane %v1471_v0, 4  ;;  %3668 = vmatpush1.msk.msra.mxu0 %vm569_vm1, %v1541_v24  ;;  %v4577_v24 = vld [vmem:[#allocation3 + $0x28] sm:$0xff] }
 0x62c   : > { %v2386_v23 = vrot.slane %v1473_v13, 4 }
 0x62d   : > { %v5613_v47 = vsel %vm1313_vm3, %v2382_v46, %v2383_v17  ;;  %v4578_v46 = vld [vmem:[#allocation3 + $0x30] sm:$0xff] }
 0x62e   : > { %7089 = vst [vmem:[#allocation15_spill] sm:$0xff] %v5613_v47  ;;  %v2387_v63 = vsel %vm1313_vm3, %v2385_v28, %v2386_v23  ;;  %v4579_v23 = vld [vmem:[#allocation3 + $0x38] sm:$0xff] }
 0x62f   : > { %2454 = vmatprep.mubr.f32.mxu1 %v2387_v63 }
 0x6a7   : > { %v1491_v8 = vpop.trf.xlu0 }
 0x6a8   : > { %3669 = vmatmul.mubr.msk.f32.vlgmr.msra.gmra.mrb[6].mxu0 %vm472_vm2, %v1491_v8  ;;  %v1523_v41 = vpop.trf.xlu1 }
 0x6a9   : > { %1713 = vmatprep.mubr.f32.mxu0 %v7086_v56 }
 0x6ab   : > { %v1492_v33 = vpop.trf.xlu0 }
 0x6ac   : > { %3670 = vmatmul.mubr.msk.f32.gmra.mrb[8].mxu0 %vm472_vm2, %v1492_v33  ;;  %v1524_v31 = vpop.trf.xlu1 }
 0x6ad   : > { %1719 = vmatprep.mubr.f32.mxu0 %v7086_v56 }
 0x6af   : > { %v1493_v36 = vpop.trf.xlu0 }
 0x6b0   : > { %3671 = vmatmul.mubr.msk.f32.gmra.mrb[10].mxu0 %vm472_vm2, %v1493_v36  ;;  %v1525_v25 = vpop.trf.xlu1  ;;  %v4580_v36 = vld [vmem:[#allocation3 + $0x40] sm:$0xff] }
 0x6b1   : > { %1725 = vmatprep.mubr.f32.mxu0 %v7086_v56 }
 0x6b3   : > { %v1494_v16 = vpop.trf.xlu0 }
 0x6b4   : > { %3672 = vmatmul.mubr.msk.f32.gmra.mrb[12].mxu0 %vm472_vm2, %v1494_v16  ;;  %v1526_v4 = vpop.trf.xlu1 }
 0x6b5   : > { %1731 = vmatprep.mubr.f32.mxu0 %v7086_v56 }
 0x6b7   : > { %v1495_v29 = vpop.trf.xlu0 }
 0x6b8   : > { %3673 = vmatmul.mubr.msk.f32.gmra.mrb[14].mxu0 %vm472_vm2, %v1495_v29  ;;  %v1527_v52 = vpop.trf.xlu1 }
 0x6b9   : > { %1737 = vmatprep.mubr.f32.mxu0 %v7086_v56 }
 0x6bb   : > { %v1496_v19 = vpop.trf.xlu0 }
 0x6bc   : > { %3674 = vmatmul.mubr.msk.f32.gmra.mrb[16].mxu0 %vm472_vm2, %v1496_v19  ;;  %v1528_v12 = vpop.trf.xlu1  ;;  %v4581_v19 = vld [vmem:[#allocation3 + $0x48] sm:$0xff] }
 0x6bd   : > { %1743 = vmatprep.mubr.f32.mxu0 %v7086_v56 }
 0x6bf   : > { %v1497_v54 = vpop.trf.xlu0 }
 0x6c0   : > { %3675 = vmatmul.mubr.msk.f32.gmra.mrb[18].mxu0 %vm472_vm2, %v1497_v54  ;;  %v1529_v55 = vpop.trf.xlu1 }
 0x6c1   : > { %1749 = vmatprep.mubr.f32.mxu0 %v7086_v56 }
 0x6c3   : > { %v1498_v53 = vpop.trf.xlu0 }
 0x6c4   : > { %3676 = vmatmul.mubr.msk.f32.gmra.mrb[20].mxu0 %vm472_vm2, %v1498_v53  ;;  %v1530_v22 = vpop.trf.xlu1 }
 0x6c5   : > { %1755 = vmatprep.mubr.f32.mxu0 %v7086_v56 }
 0x6c7   : > { %v1499_v38 = vpop.trf.xlu0 }
 0x6c8   : > { %3677 = vmatmul.mubr.msk.f32.gmra.mrb[22].mxu0 %vm472_vm2, %v1499_v38  ;;  %v1531_v34 = vpop.trf.xlu1 }
 0x6c9   : > { %1761 = vmatprep.mubr.f32.mxu0 %v7086_v56 }
 0x6cb   : > { %v1500_v1 = vpop.trf.xlu0 }
 0x6cc   : > { %3678 = vmatmul.mubr.msk.f32.gmra.mrb[24].mxu0 %vm472_vm2, %v1500_v1  ;;  %v1532_v5 = vpop.trf.xlu1 }
 0x6cd   : > { %1767 = vmatprep.mubr.f32.mxu0 %v7086_v56 }
 0x6cf   : > { %v1501_v62 = vpop.trf.xlu0 }
 0x6d0   : > { %3679 = vmatmul.mubr.msk.f32.gmra.mrb[26].mxu0 %vm472_vm2, %v1501_v62  ;;  %v1533_v51 = vpop.trf.xlu1 }
 0x6d1   : > { %1773 = vmatprep.mubr.f32.mxu0 %v7086_v56 }
 0x6d3   : > { %v1502_v49 = vpop.trf.xlu0 }
 0x6d4   : > { %3680 = vmatmul.mubr.msk.f32.gmra.mrb[28].mxu0 %vm472_vm2, %v1502_v49  ;;  %v1534_v6 = vpop.trf.xlu1 }
 0x6d5   : > { %1779 = vmatprep.mubr.f32.mxu0 %v7086_v56 }
 0x6d7   : > { %v1503_v32 = vpop.trf.xlu0 }
 0x6d8   : > { %3681 = vmatmul.mubr.msk.f32.gmra.mrb[30].mxu0 %vm472_vm2, %v1503_v32  ;;  %v1535_v21 = vpop.trf.xlu1 }
 0x6d9   : > { %1785 = vmatprep.mubr.f32.mxu0 %v7086_v56 }
 0x6db   : > { %v1504_v44 = vpop.trf.xlu0 }
 0x6dc   : > { %3682 = vmatmul.mubr.msk.f32.gmra.mrb[32].mxu0 %vm472_vm2, %v1504_v44  ;;  %v1536_v50 = vpop.trf.xlu1  ;;  %v4584_v44 = vld [vmem:[#allocation3 + $0x60] sm:$0xff] }
 0x6dd   : > { %1791 = vmatprep.mubr.f32.mxu0 %v7086_v56 }
 0x6df   : > { %v1505_v37 = vpop.trf.xlu0 }
 0x6e0   : > { %3683 = vmatmul.mubr.msk.f32.gmra.mrb[34].mxu0 %vm472_vm2, %v1505_v37  ;;  %v1537_v61 = vpop.trf.xlu1 }
 0x6e1   : > { %1797 = vmatprep.mubr.f32.mxu0 %v7086_v56 }
 0x6e3   : > { %v1506_v43 = vpop.trf.xlu0 }
 0x6e4   : > { %3684 = vmatmul.mubr.msk.f32.gmra.mrb[36].mxu0 %vm472_vm2, %v1506_v43  ;;  %v1538_v27 = vpop.trf.xlu1 }
 0x6e5   : > { %1803 = vmatprep.mubr.f32.mxu0 %v7086_v56 }
 0x6e8   : > { %3685 = vmatmul.mubr.msk.f32.gmra.mrb[38].mxu0 %vm472_vm2, %v1523_v41  ;;  %v4582_v41 = vld [vmem:[#allocation3 + $0x50] sm:$0xff] }
 0x6e9   : > { %1809 = vmatprep.mubr.f32.mxu0 %v7086_v56 }
 0x6ec   : > { %3686 = vmatmul.mubr.msk.f32.gmra.mrb[40].mxu0 %vm472_vm2, %v1524_v31  ;;  %v4583_v31 = vld [vmem:[#allocation3 + $0x58] sm:$0xff] }
 0x6ed   : > { %1815 = vmatprep.mubr.f32.mxu0 %v7086_v56 }
 0x6f0   : > { %3687 = vmatmul.mubr.msk.f32.gmra.mrb[42].mxu0 %vm472_vm2, %v1525_v25 }
 0x6f1   : > { %1821 = vmatprep.mubr.f32.mxu0 %v7086_v56 }
 0x6f4   : > { %3688 = vmatmul.mubr.msk.f32.gmra.mrb[44].mxu0 %vm472_vm2, %v1526_v4 }
 0x6f5   : > { %1827 = vmatprep.mubr.f32.mxu0 %v7086_v56 }
 0x6f8   : > { %3689 = vmatmul.mubr.msk.f32.gmra.mrb[46].mxu0 %vm472_vm2, %v1527_v52  ;;  %v4585_v52 = vld [vmem:[#allocation3 + $0x68] sm:$0xff] }
 0x6f9   : > { %1833 = vmatprep.mubr.f32.mxu0 %v7086_v56 }
 0x6fc   : > { %3690 = vmatmul.mubr.msk.f32.gmra.mrb[48].mxu0 %vm472_vm2, %v1528_v12 }
 0x6fd   : > { %1839 = vmatprep.mubr.f32.mxu0 %v7086_v56 }
 0x700   : > { %3691 = vmatmul.mubr.msk.f32.gmra.mrb[50].mxu0 %vm472_vm2, %v1529_v55 }
 0x701   : > { %1845 = vmatprep.mubr.f32.mxu0 %v7086_v56 }
 0x704   : > { %3692 = vmatmul.mubr.msk.f32.gmra.mrb[52].mxu0 %vm472_vm2, %v1530_v22  ;;  %v4586_v22 = vld [vmem:[#allocation3 + $0x70] sm:$0xff] }
 0x705   : > { %1851 = vmatprep.mubr.f32.mxu0 %v7086_v56 }
 0x708   : > { %3693 = vmatmul.mubr.msk.f32.gmra.mrb[54].mxu0 %vm472_vm2, %v1531_v34 }
 0x709   : > { %1857 = vmatprep.mubr.f32.mxu0 %v7086_v56 }
 0x70c   : > { %3694 = vmatmul.mubr.msk.f32.gmra.mrb[56].mxu0 %vm472_vm2, %v1532_v5 }
 0x70d   : > { %1863 = vmatprep.mubr.f32.mxu0 %v7086_v56 }
 0x710   : > { %3695 = vmatmul.mubr.msk.f32.gmra.mrb[58].mxu0 %vm472_vm2, %v1533_v51  ;;  %v4587_v51 = vld [vmem:[#allocation3 + $0x78] sm:$0xff] }
 0x711   : > { %1869 = vmatprep.mubr.f32.mxu0 %v7086_v56 }
 0x714   : > { %3696 = vmatmul.mubr.msk.f32.gmra.mrb[60].mxu0 %vm472_vm2, %v1534_v6 }
 0x715   : > { %1875 = vmatprep.mubr.f32.mxu0 %v7086_v56 }
 0x718   : > { %3697 = vmatmul.mubr.msk.f32.gmra.mrb[62].mxu0 %vm472_vm2, %v1535_v21 }
 0x719   : > { %1881 = vmatprep.mubr.f32.mxu0 %v7086_v56 }
 0x71c   : > { %3698 = vmatmul.mubr.msk.f32.gmra.mrb[64].mxu0 %vm472_vm2, %v1536_v50 }
 0x71d   : > { %1887 = vmatprep.mubr.f32.mxu0 %v7086_v56 }
 0x720   : > { %3699 = vmatmul.mubr.msk.f32.gmra.mrb[66].mxu0 %vm472_vm2, %v1537_v61  ;;  %v4588_v61 = vld [vmem:[#allocation3 + $0x80] sm:$0xff] }
 0x721   : > { %1893 = vmatprep.mubr.f32.mxu0 %v7086_v56 }
 0x724   : > { %3700 = vmatmul.mubr.msk.f32.gmra.mrb[68].mxu0 %vm472_vm2, %v1538_v27 }
 0x725   : > { %2529 = vmatprep.mubr.f32.mxu0 %v7086_v56 }
 0x77b   : > { %v1709_v11 = vpop.f32.mrb[6].mxu0 }
 0x77c   : > { %v5680_v7 = vadd.f32 %v4572_v2, %v1709_v11  ;;  %v1711_v18 = vpop.f32.mrb[7].mxu0  ;;  %v4589_v2 = vld [vmem:[#allocation3 + $0x88] sm:$0xff] }
 0x77d   : > { %v5682_v40 = vadd.f32 %v4573_v59, %v1711_v18 }
 0x77f   : > { %v1900_v26 = vmax.f32 %v5680_v7, %v5682_v40  ;;  %v1715_v60 = vpop.f32.mrb[8].mxu0 }
 0x780   : > { %v5686_v3 = vadd.f32 %v4574_v45, %v1715_v60  ;;  %v1717_v30 = vpop.f32.mrb[9].mxu0  ;;  %v4590_v60 = vld [vmem:[#allocation3 + $0x90] sm:$0xff] }
 0x781   : > { %v5688_v20 = vadd.f32 %v4575_v14, %v1717_v30  ;;  %1901 = vmax.xlane.f32.xlu0 %v1900_v26  ;;  %v4591_v14 = vld [vmem:[#allocation3 + $0x98] sm:$0xff] }
 0x783   : > { %v1903_v58 = vmax.f32 %v5686_v3, %v5688_v20  ;;  %v1721_v10 = vpop.f32.mrb[10].mxu0 }
 0x784   : > { %v5692_v15 = vadd.f32 %v4576_v42, %v1721_v10  ;;  %v1723_v48 = vpop.f32.mrb[11].mxu0 }
 0x785   : > { %v5694_v0 = vadd.f32 %v4577_v24, %v1723_v48  ;;  %1904 = vmax.xlane.f32.xlu1 %v1903_v58  ;;  %v4592_v48 = vld [vmem:[#allocation3 + $0xa0] sm:$0xff] }
 0x787   : > { %v1906_v39 = vmax.f32 %v5692_v15, %v5694_v0  ;;  %v1727_v13 = vpop.f32.mrb[12].mxu0 }
 0x788   : > { %v5698_v17 = vadd.f32 %v4578_v46, %v1727_v13  ;;  %v1729_v28 = vpop.f32.mrb[13].mxu0  ;;  %v4593_v13 = vld [vmem:[#allocation3 + $0xa8] sm:$0xff] }
 0x789   : > { %v5700_v63 = vadd.f32 %v4579_v23, %v1729_v28  ;;  %1907 = vmax.xlane.f32.xlu0 %v1906_v39 }
 0x78b   : > { %v1909_v8 = vmax.f32 %v5698_v17, %v5700_v63  ;;  %v1733_v33 = vpop.f32.mrb[14].mxu0 }
 0x78c   : > { %v5704_v16 = vadd.f32 %v4580_v36, %v1733_v33  ;;  %v1735_v29 = vpop.f32.mrb[15].mxu0 }
 0x78d   : > { %v5706_v54 = vadd.f32 %v4581_v19, %v1735_v29  ;;  %1910 = vmax.xlane.f32.xlu1 %v1909_v8  ;;  %v4594_v8 = vld [vmem:[#allocation3 + $0xb0] sm:$0xff]  ;;  %v4595_v29 = vld [vmem:[#allocation3 + $0xb8] sm:$0xff] }
 0x78f   : > { %v1912_v53 = vmax.f32 %v5704_v16, %v5706_v54  ;;  %v1739_v38 = vpop.f32.mrb[16].mxu0 }
 0x790   : > { %v5710_v1 = vadd.f32 %v4582_v41, %v1739_v38  ;;  %v1741_v62 = vpop.f32.mrb[17].mxu0  ;;  %v4596_v41 = vld [vmem:[#allocation3 + $0xc0] sm:$0xff] }
 0x791   : > { %v5712_v49 = vadd.f32 %v4583_v31, %v1741_v62  ;;  %1913 = vmax.xlane.f32.xlu0 %v1912_v53 }
 0x793   : > { %v1915_v25 = vmax.f32 %v5710_v1, %v5712_v49  ;;  %v1745_v32 = vpop.f32.mrb[18].mxu0 }
 0x794   : > { %v5716_v4 = vadd.f32 %v4584_v44, %v1745_v32  ;;  %v1747_v37 = vpop.f32.mrb[19].mxu0 }
 0x795   : > { %v5718_v43 = vadd.f32 %v4585_v52, %v1747_v37  ;;  %1916 = vmax.xlane.f32.xlu1 %v1915_v25  ;;  %v4597_v25 = vld [vmem:[#allocation3 + $0xc8] sm:$0xff]  ;;  %v4598_v52 = vld [vmem:[#allocation3 + $0xd0] sm:$0xff] }
 0x797   : > { %v1918_v12 = vmax.f32 %v5716_v4, %v5718_v43  ;;  %v1751_v55 = vpop.f32.mrb[20].mxu0 }
 0x798   : > { %v5722_v34 = vadd.f32 %v4586_v22, %v1751_v55  ;;  %v1753_v5 = vpop.f32.mrb[21].mxu0  ;;  %v4599_v22 = vld [vmem:[#allocation3 + $0xd8] sm:$0xff] }
 0x799   : > { %v5724_v6 = vadd.f32 %v4587_v51, %v1753_v5  ;;  %1919 = vmax.xlane.f32.xlu0 %v1918_v12 }
 0x79b   : > { %v1921_v21 = vmax.f32 %v5722_v34, %v5724_v6  ;;  %v1757_v50 = vpop.f32.mrb[22].mxu0 }
 0x79c   : > { %v5728_v27 = vadd.f32 %v4588_v61, %v1757_v50  ;;  %v1759_v11 = vpop.f32.mrb[23].mxu0  ;;  %v4600_v50 = vld [vmem:[#allocation3 + $0xe0] sm:$0xff] }
 0x79d   : > { %v5730_v18 = vadd.f32 %v4589_v2, %v1759_v11  ;;  %1922 = vmax.xlane.f32.xlu1 %v1921_v21  ;;  %v4601_v2 = vld [vmem:[#allocation3 + $0xe8] sm:$0xff] }
 0x79f   : > { %v1924_v59 = vmax.f32 %v5728_v27, %v5730_v18  ;;  %v1763_v26 = vpop.f32.mrb[24].mxu0 }
 0x7a0   : > { %v5734_v45 = vadd.f32 %v4590_v60, %v1763_v26  ;;  %v1765_v30 = vpop.f32.mrb[25].mxu0 }
 0x7a1   : > { %v5736_v58 = vadd.f32 %v4591_v14, %v1765_v30  ;;  %1925 = vmax.xlane.f32.xlu0 %v1924_v59  ;;  %v4602_v30 = vld [vmem:[#allocation3 + $0xf0] sm:$0xff] }
 0x7a3   : > { %v1927_v10 = vmax.f32 %v5734_v45, %v5736_v58  ;;  %v1769_v42 = vpop.f32.mrb[26].mxu0 }
 0x7a4   : > { %v5740_v24 = vadd.f32 %v4592_v48, %v1769_v42  ;;  %v1771_v39 = vpop.f32.mrb[27].mxu0  ;;  %v4603_v42 = vld [vmem:[#allocation3 + $0xf8] sm:$0xff] }
 0x7a5   : > { %v5742_v46 = vadd.f32 %v4593_v13, %v1771_v39  ;;  %1928 = vmax.xlane.f32.xlu1 %v1927_v10 }
 0x7a7   : > { %v1930_v28 = vmax.f32 %v5740_v24, %v5742_v46  ;;  %v1775_v23 = vpop.f32.mrb[28].mxu0 }
 0x7a8   : > { %v5746_v33 = vadd.f32 %v4594_v8, %v1775_v23  ;;  %v1777_v36 = vpop.f32.mrb[29].mxu0 }
 0x7a9   : > { %v5748_v19 = vadd.f32 %v4595_v29, %v1777_v36  ;;  %1931 = vmax.xlane.f32.xlu0 %v1930_v28  ;;  %v4604_v28 = vld [vmem:[#allocation3 + $0x100] sm:$0xff]  ;;  %v4605_v36 = vld [vmem:[#allocation3 + $0x108] sm:$0xff] }
 0x7ab   : > { %v1933_v53 = vmax.f32 %v5746_v33, %v5748_v19  ;;  %v1781_v38 = vpop.f32.mrb[30].mxu0 }
 0x7ac   : > { %v5752_v62 = vadd.f32 %v4596_v41, %v1781_v38  ;;  %v1783_v31 = vpop.f32.mrb[31].mxu0  ;;  %v4606_v41 = vld [vmem:[#allocation3 + $0x110] sm:$0xff] }
 0x7ad   : > { %v5754_v32 = vadd.f32 %v4597_v25, %v1783_v31  ;;  %1934 = vmax.xlane.f32.xlu1 %v1933_v53 }
 0x7af   : > { %v1936_v44 = vmax.f32 %v5752_v62, %v5754_v32  ;;  %v1787_v37 = vpop.f32.mrb[32].mxu0 }
 0x7b0   : > { %v5758_v12 = vadd.f32 %v4598_v52, %v1787_v37  ;;  %v1789_v55 = vpop.f32.mrb[33].mxu0 }
 0x7b1   : > { %v5760_v5 = vadd.f32 %v4599_v22, %v1789_v55  ;;  %1937 = vmax.xlane.f32.xlu0 %v1936_v44  ;;  %v4607_v44 = vld [vmem:[#allocation3 + $0x118] sm:$0xff]  ;;  %v4608_v22 = vld [vmem:[#allocation3 + $0x120] sm:$0xff] }
 0x7b3   : > { %v1939_v51 = vmax.f32 %v5758_v12, %v5760_v5  ;;  %v1793_v21 = vpop.f32.mrb[34].mxu0 }
 0x7b4   : > { %v5764_v61 = vadd.f32 %v4600_v50, %v1793_v21  ;;  %v1795_v11 = vpop.f32.mrb[35].mxu0  ;;  %v4609_v50 = vld [vmem:[#allocation3 + $0x128] sm:$0xff] }
 0x7b5   : > { %v5766_v59 = vadd.f32 %v4601_v2, %v1795_v11  ;;  %1940 = vmax.xlane.f32.xlu1 %v1939_v51 }
 0x7b7   : > { %v1942_v26 = vmax.f32 %v5764_v61, %v5766_v59  ;;  %v1799_v60 = vpop.f32.mrb[36].mxu0 }
 0x7b8   : > { %v5770_v14 = vadd.f32 %v4602_v30, %v1799_v60  ;;  %v1801_v10 = vpop.f32.mrb[37].mxu0  ;;  %v4610_v60 = vld [vmem:[#allocation3 + $0x130] sm:$0xff] }
 0x7b9   : > { %v5772_v48 = vadd.f32 %v4603_v42, %v1801_v10  ;;  %1943 = vmax.xlane.f32.xlu0 %v1942_v26  ;;  %v4611_v42 = vld [vmem:[#allocation3 + $0x138] sm:$0xff] }
 0x7bb   : > { %v1945_v39 = vmax.f32 %v5770_v14, %v5772_v48  ;;  %v1805_v13 = vpop.f32.mrb[38].mxu0 }
 0x7bc   : > { %v5776_v23 = vadd.f32 %v4604_v28, %v1805_v13  ;;  %v1807_v8 = vpop.f32.mrb[39].mxu0 }
 0x7bd   : > { %v5778_v29 = vadd.f32 %v4605_v36, %v1807_v8  ;;  %1946 = vmax.xlane.f32.xlu1 %v1945_v39  ;;  %v4612_v8 = vld [vmem:[#allocation3 + $0x140] sm:$0xff] }
 0x7bf   : > { %v1948_v53 = vmax.f32 %v5776_v23, %v5778_v29  ;;  %v1811_v38 = vpop.f32.mrb[40].mxu0 }
 0x7c0   : > { %v5782_v31 = vadd.f32 %v4606_v41, %v1811_v38  ;;  %v1813_v25 = vpop.f32.mrb[41].mxu0  ;;  %v4613_v38 = vld [vmem:[#allocation3 + $0x148] sm:$0xff] }
 0x7c1   : > { %v5784_v37 = vadd.f32 %v4607_v44, %v1813_v25  ;;  %1949 = vmax.xlane.f32.xlu0 %v1948_v53 }
 0x7c3   : > { %7090 = vst [vmem:[#allocation17_spill] sm:$0xff] %v5784_v37  ;;  %v1951_v52 = vmax.f32 %v5782_v31, %v5784_v37  ;;  %v1817_v55 = vpop.f32.mrb[42].mxu0 }
 0x7c4   : > { %v5788_v51 = vadd.f32 %v4608_v22, %v1817_v55  ;;  %v1819_v21 = vpop.f32.mrb[43].mxu0 }
 0x7c5   : > { %v5790_v11 = vadd.f32 %v4609_v50, %v1819_v21  ;;  %1952 = vmax.xlane.f32.xlu1 %v1951_v52  ;;  %v4614_v52 = vld [vmem:[#allocation3 + $0x150] sm:$0xff]  ;;  %v4615_v21 = vld [vmem:[#allocation3 + $0x158] sm:$0xff] }
 0x7c6   : > { %7091 = vst [vmem:[#allocation16_spill] sm:$0xff] %v5788_v51 }
 0x7c7   : > { %7092 = vst [vmem:[#allocation14_spill] sm:$0xff] %v5790_v11  ;;  %v1954_v2 = vmax.f32 %v5788_v51, %v5790_v11  ;;  %v1823_v26 = vpop.f32.mrb[44].mxu0 }
 0x7c8   : > { %v5794_v30 = vadd.f32 %v4610_v60, %v1823_v26  ;;  %v1825_v10 = vpop.f32.mrb[45].mxu0  ;;  %v4616_v60 = vld [vmem:[#allocation3 + $0x160] sm:$0xff] }
 0x7c9   : > { %v5796_v39 = vadd.f32 %v4611_v42, %v1825_v10  ;;  %1955 = vmax.xlane.f32.xlu0 %v1954_v2 }
 0x7ca   : > { %7093 = vst [vmem:[#allocation19_spill] sm:$0xff] %v5794_v30 }
 0x7cb   : > { %7094 = vst [vmem:[#allocation21_spill] sm:$0xff] %v5796_v39  ;;  %v1957_v13 = vmax.f32 %v5794_v30, %v5796_v39  ;;  %v1829_v28 = vpop.f32.mrb[46].mxu0 }
 0x7cc   : > { %v5800_v36 = vadd.f32 %v4612_v8, %v1829_v28  ;;  %v1831_v53 = vpop.f32.mrb[47].mxu0 }
 0x7cd   : > { %v5802_v41 = vadd.f32 %v4613_v38, %v1831_v53  ;;  %1958 = vmax.xlane.f32.xlu1 %v1957_v13  ;;  %v4617_v13 = vld [vmem:[#allocation3 + $0x168] sm:$0xff]  ;;  %v4618_v38 = vld [vmem:[#allocation3 + $0x170] sm:$0xff] }
 0x7ce   : > { %7095 = vst [vmem:[#allocation20_spill] sm:$0xff] %v5800_v36 }
 0x7cf   : > { %7096 = vst [vmem:[#allocation18_spill] sm:$0xff] %v5802_v41  ;;  %v1960_v25 = vmax.f32 %v5800_v36, %v5802_v41  ;;  %v1835_v44 = vpop.f32.mrb[48].mxu0 }
 0x7d0   : > { %v5806_v55 = vadd.f32 %v4614_v52, %v1835_v44  ;;  %v1837_v22 = vpop.f32.mrb[49].mxu0  ;;  %v4619_v52 = vld [vmem:[#allocation3 + $0x178] sm:$0xff] }
 0x7d1   : > { %v5808_v50 = vadd.f32 %v4615_v21, %v1837_v22  ;;  %1961 = vmax.xlane.f32.xlu0 %v1960_v25 }
 0x7d2   : > { %7097 = vst [vmem:[#allocation23_spill] sm:$0xff] %v5806_v55 }
 0x7d3   : > { %7098 = vst [vmem:[#allocation25_spill] sm:$0xff] %v5808_v50  ;;  %v1963_v2 = vmax.f32 %v5806_v55, %v5808_v50  ;;  %v1841_v26 = vpop.f32.mrb[50].mxu0 }
 0x7d4   : > { %v5812_v10 = vadd.f32 %v4616_v60, %v1841_v26  ;;  %v1843_v42 = vpop.f32.mrb[51].mxu0 }
 0x7d5   : > { %v5814_v28 = vadd.f32 %v4617_v13, %v1843_v42  ;;  %1964 = vmax.xlane.f32.xlu1 %v1963_v2 }
 0x7d6   : > { %7099 = vst [vmem:[#allocation24_spill] sm:$0xff] %v5812_v10 }
 0x7d7   : > { %7100 = vst [vmem:[#allocation22_spill] sm:$0xff] %v5814_v28  ;;  %v1966_v8 = vmax.f32 %v5812_v10, %v5814_v28  ;;  %v1847_v53 = vpop.f32.mrb[52].mxu0 }
 0x7d8   : > { %v5818_v44 = vadd.f32 %v4618_v38, %v1847_v53  ;;  %v1849_v25 = vpop.f32.mrb[53].mxu0 }
 0x7d9   : > { %v5820_v22 = vadd.f32 %v4619_v52, %v1849_v25  ;;  %1967 = vmax.xlane.f32.xlu0 %v1966_v8 }
 0x7da   : > { %7101 = vst [vmem:[#allocation10_spill] sm:$0xff] %v5818_v44 }
 0x7db   : > { %7102 = vst [vmem:[#allocation11_spill] sm:$0xff] %v5820_v22  ;;  %v1969_v21 = vmax.f32 %v5818_v44, %v5820_v22  ;;  %v1853_v26 = vpop.f32.mrb[54].mxu0 }
 0x7dc   : > { %v1855_v60 = vpop.f32.mrb[55].mxu0 }
 0x7dd   : > { %1970 = vmax.xlane.f32.xlu1 %v1969_v21 }
 0x7df   : > { %v1859_v42 = vpop.f32.mrb[56].mxu0 }
 0x7e0   : > { %v1861_v2 = vpop.f32.mrb[57].mxu0 }
 0x7e3   : > { %v5824_v13 = vpop.f32.mrb[58].mxu0 }
 0x7e4   : > { %v5826_v35 = vpop.f32.mrb[59].mxu0 }
 0x7e7   : > { %v5828_v9 = vpop.f32.mrb[60].mxu0 }
 0x7e8   : > { %v5830_v53 = vpop.f32.mrb[61].mxu0 }
 0x7eb   : > { %v5832_v38 = vpop.f32.mrb[62].mxu0 }
 0x7ec   : > { %v5834_v25 = vpop.f32.mrb[63].mxu0 }
 0x7ef   : > { %v5836_v8 = vpop.f32.mrb[64].mxu0 }
 0x7f0   : > { %v5838_v52 = vpop.f32.mrb[65].mxu0 }
 0x7f3   : > { %v5840_v57 = vpop.f32.mrb[66].mxu0 }
 0x7f4   : > { %v5842_v21 = vpop.f32.mrb[67].mxu0 }
 0x7f7   : > { %v5844_v56 = vpop.f32.mrb[68].mxu0 }
 0x7f8   : > { %v5846_v47 = vpop.f32.mrb[69].mxu0 }
 0x80e   : > { %v1902_v22 = vpop.xlane.xlu0 %1901 }
 0x80f   : > { %v1996_v44 = vsub.f32 %v5680_v7, %v1902_v22  ;;  %v1997_v28 = vsub.f32 %v5682_v40, %v1902_v22 }
 0x811   : > { %v2060_v10 = vmul.f32 1.442695, %v1996_v44  ;;  %v2062_v50 = vmul.f32 1.442695, %v1997_v28 }
 0x812   : > { %v1905_v55 = vpop.xlane.xlu1 %1904 }
 0x813   : > { %4184 = vpow2.f32 %v2060_v10  ;;  %v1998_v41 = vsub.f32 %v5686_v3, %v1905_v55  ;;  %v1999_v36 = vsub.f32 %v5688_v20, %v1905_v55  ;;  %v4620_v20 = vld [vmem:[#allocation3 + $0x180] sm:$0xff] }
 0x814   : > { %4186 = vpow2.f32 %v2062_v50  ;;  %v5856_v55 = vadd.f32 %v4620_v20, %v1853_v26  ;;  %v4622_v26 = vld [vmem:[#allocation3 + $0x190] sm:$0xff]  ;;  %v4624_v20 = vld [vmem:[#allocation3 + $0x1a0] sm:$0xff] }
 0x815   : > { %v2064_v39 = vmul.f32 1.442695, %v1998_v41  ;;  %v2066_v30 = vmul.f32 1.442695, %v1999_v36  ;;  %v4621_v36 = vld [vmem:[#allocation3 + $0x188] sm:$0xff] }
 0x816   : > { %v1908_v11 = vpop.xlane.xlu0 %1907  ;;  %v5858_v41 = vadd.f32 %v4621_v36, %v1855_v60  ;;  %v5872_v60 = vadd.f32 %v4622_v26, %v1859_v42  ;;  %v5883_v36 = vadd.f32 %v4624_v20, %v5824_v13  ;;  %v4625_v42 = vld [vmem:[#allocation3 + $0x1a8] sm:$0xff] }
 0x817   : > { %4188 = vpow2.f32 %v2064_v39  ;;  %v2000_v51 = vsub.f32 %v5692_v15, %v1908_v11  ;;  %v2001_v37 = vsub.f32 %v5694_v0, %v1908_v11 }
 0x818   : > { %4190 = vpow2.f32 %v2066_v30  ;;  %v1972_v30 = vmax.f32 %v5856_v55, %v5858_v41 }
 0x819   : > { %v2068_v7 = vmul.f32 1.442695, %v2000_v51  ;;  %v2070_v40 = vmul.f32 1.442695, %v2001_v37 }
 0x81a   : > { %v1911_v44 = vpop.xlane.xlu1 %1910 }
 0x81b   : > { %4192 = vpow2.f32 %v2068_v7  ;;  %v2002_v10 = vsub.f32 %v5698_v17, %v1911_v44  ;;  %v2003_v3 = vsub.f32 %v5700_v63, %v1911_v44  ;;  %v4623_v7 = vld [vmem:[#allocation3 + $0x198] sm:$0xff] }
 0x81c   : > { %4194 = vpow2.f32 %v2070_v40  ;;  %v5874_v40 = vadd.f32 %v4623_v7, %v1861_v2  ;;  %v5886_v2 = vadd.f32 %v4625_v42, %v5826_v35  ;;  %v4628_v42 = vld [vmem:[#allocation3 + $0x1c0] sm:$0xff] }
 0x81d   : > { %v5860_v39 = vpop.eup %4184  ;;  %v2072_v15 = vmul.f32 1.442695, %v2002_v10  ;;  %v2074_v0 = vmul.f32 1.442695, %v2003_v3 }
 0x81e   : > { %v5862_v11 = vpop.eup %4186  ;;  %v1914_v37 = vpop.xlane.xlu0 %1913 }
 0x81f   : > { %4196 = vpow2.f32 %v2072_v15  ;;  %v2004_v51 = vsub.f32 %v5704_v16, %v1914_v37  ;;  %v2005_v17 = vsub.f32 %v5706_v54, %v1914_v37  ;;  %v2188_v63 = vadd.f32 %v5862_v11, %v5860_v39 }
 0x820   : > { %4198 = vpow2.f32 %v2074_v0  ;;  %v1975_v0 = vmax.f32 %v5872_v60, %v5874_v40 }
 0x821   : > { %v5870_v50 = vpop.eup %4188  ;;  %v2076_v28 = vmul.f32 1.442695, %v2004_v51  ;;  %v2078_v22 = vmul.f32 1.442695, %v2005_v17  ;;  %2189 = vadd.xlane.f32.xlu0 %v2188_v63  ;;  %v1978_v63 = vmax.f32 %v5883_v36, %v5886_v2 }
 0x822   : > { %v5876_v16 = vpop.eup %4190  ;;  %v1917_v54 = vpop.xlane.xlu1 %1916 }
 0x823   : > { %4200 = vpow2.f32 %v2076_v28  ;;  %v2006_v44 = vsub.f32 %v5710_v1, %v1917_v54  ;;  %v2007_v10 = vsub.f32 %v5712_v49, %v1917_v54  ;;  %v2191_v3 = vadd.f32 %v5876_v16, %v5870_v50 }
 0x824   : > { %4202 = vpow2.f32 %v2078_v22 }
 0x825   : > { %v5888_v15 = vpop.eup %4192  ;;  %v2080_v1 = vmul.f32 1.442695, %v2006_v44  ;;  %v2082_v37 = vmul.f32 1.442695, %v2007_v10  ;;  %2192 = vadd.xlane.f32.xlu1 %v2191_v3  ;;  %1973 = vmax.xlane.f32.xlu0 %v1972_v30  ;;  %v4626_v30 = vld [vmem:[#allocation3 + $0x1b0] sm:$0xff] }
 0x826   : > { %v5892_v49 = vpop.eup %4194  ;;  %v1920_v51 = vpop.xlane.xlu0 %1919  ;;  %v5903_v7 = vadd.f32 %v4626_v30, %v5828_v9  ;;  %v5915_v9 = vadd.f32 %v4628_v42, %v5832_v38 }
 0x827   : > { %4204 = vpow2.f32 %v2080_v1  ;;  %v2008_v13 = vsub.f32 %v5716_v4, %v1920_v51  ;;  %v2009_v17 = vsub.f32 %v5718_v43, %v1920_v51  ;;  %v2194_v35 = vadd.f32 %v5892_v49, %v5888_v15  ;;  %v4627_v4 = vld [vmem:[#allocation3 + $0x1b8] sm:$0xff] }
 0x828   : > { %4206 = vpow2.f32 %v2082_v37  ;;  %v5906_v43 = vadd.f32 %v4627_v4, %v5830_v53 }
 0x829   : > { %v5900_v28 = vpop.eup %4196  ;;  %v2084_v22 = vmul.f32 1.442695, %v2008_v13  ;;  %v2086_v26 = vmul.f32 1.442695, %v2009_v17  ;;  %1976 = vmax.xlane.f32.xlu1 %v1975_v0  ;;  %2195 = vadd.xlane.f32.xlu0 %v2194_v35  ;;  %v4629_v0 = vld [vmem:[#allocation3 + $0x1c8] sm:$0xff] }
 0x82a   : > { %v5908_v54 = vpop.eup %4198  ;;  %v1923_v44 = vpop.xlane.xlu1 %1922  ;;  %v5918_v53 = vadd.f32 %v4629_v0, %v5834_v25  ;;  %v1981_v37 = vmax.f32 %v5903_v7, %v5906_v43  ;;  %v4632_v0 = vld [vmem:[#allocation3 + $0x1e0] sm:$0xff] }
 0x82b   : > { %4208 = vpow2.f32 %v2084_v22  ;;  %v2010_v10 = vsub.f32 %v5722_v34, %v1923_v44  ;;  %v2011_v3 = vsub.f32 %v5724_v6, %v1923_v44  ;;  %v2197_v20 = vadd.f32 %v5908_v54, %v5900_v28 }
 0x82c   : > { %4210 = vpow2.f32 %v2086_v26  ;;  %v1984_v35 = vmax.f32 %v5915_v9, %v5918_v53 }
 0x82d   : > { %v5920_v1 = vpop.eup %4200  ;;  %v2088_v34 = vmul.f32 1.442695, %v2010_v10  ;;  %v2090_v51 = vmul.f32 1.442695, %v2011_v3  ;;  %2198 = vadd.xlane.f32.xlu1 %v2197_v20  ;;  %1979 = vmax.xlane.f32.xlu0 %v1978_v63  ;;  %v4630_v63 = vld [vmem:[#allocation3 + $0x1d0] sm:$0xff] }
 0x82e   : > { %v5924_v6 = vpop.eup %4202  ;;  %v1926_v13 = vpop.xlane.xlu0 %1925  ;;  %v5935_v4 = vadd.f32 %v4630_v63, %v5836_v8  ;;  %v5947_v8 = vadd.f32 %v4632_v0, %v5840_v57 }
 0x82f   : > { %4212 = vpow2.f32 %v2088_v34  ;;  %v2012_v38 = vsub.f32 %v5728_v27, %v1926_v13  ;;  %v2013_v17 = vsub.f32 %v5730_v18, %v1926_v13  ;;  %v2200_v25 = vadd.f32 %v5924_v6, %v5920_v1  ;;  %v4631_v27 = vld [vmem:[#allocation3 + $0x1d8] sm:$0xff] }
 0x830   : > { %4214 = vpow2.f32 %v2090_v51  ;;  %v5938_v18 = vadd.f32 %v4631_v27, %v5838_v52 }
 0x831   : > { %v5932_v22 = vpop.eup %4204  ;;  %v2092_v26 = vmul.f32 1.442695, %v2012_v38  ;;  %v2094_v30 = vmul.f32 1.442695, %v2013_v17  ;;  %1982 = vmax.xlane.f32.xlu1 %v1981_v37  ;;  %2201 = vadd.xlane.f32.xlu0 %v2200_v25  ;;  %v4633_v37 = vld [vmem:[#allocation3 + $0x1e8] sm:$0xff] }
 0x832   : > { %v5940_v44 = vpop.eup %4206  ;;  %v1929_v10 = vpop.xlane.xlu1 %1928  ;;  %v5950_v52 = vadd.f32 %v4633_v37, %v5842_v21  ;;  %v1987_v51 = vmax.f32 %v5935_v4, %v5938_v18 }
 0x833   : > { %4216 = vpow2.f32 %v2092_v26  ;;  %v2014_v3 = vsub.f32 %v5734_v45, %v1929_v10  ;;  %v2015_v20 = vsub.f32 %v5736_v58, %v1929_v10  ;;  %v2203_v42 = vadd.f32 %v5940_v44, %v5932_v22 }
 0x834   : > { %4218 = vpow2.f32 %v2094_v30  ;;  %v1990_v25 = vmax.f32 %v5947_v8, %v5950_v52 }
 0x835   : > { %v5952_v34 = vpop.eup %4208  ;;  %v2096_v45 = vmul.f32 1.442695, %v2014_v3  ;;  %v2098_v13 = vmul.f32 1.442695, %v2015_v20  ;;  %2204 = vadd.xlane.f32.xlu1 %v2203_v42  ;;  %1985 = vmax.xlane.f32.xlu0 %v1984_v35  ;;  %v4634_v35 = vld [vmem:[#allocation3 + $0x1f0] sm:$0xff] }
 0x836   : > { %v5956_v58 = vpop.eup %4210  ;;  %v1932_v38 = vpop.xlane.xlu0 %1931  ;;  %v5967_v27 = vadd.f32 %v4634_v35, %v5844_v56 }
 0x837   : > { %4220 = vpow2.f32 %v2096_v45  ;;  %v2016_v57 = vsub.f32 %v5740_v24, %v1932_v38  ;;  %v2017_v17 = vsub.f32 %v5742_v46, %v1932_v38  ;;  %v2206_v21 = vadd.f32 %v5956_v58, %v5952_v34  ;;  %v4635_v24 = vld [vmem:[#allocation3 + $0x1f8] sm:$0xff] }
 0x838   : > { %4222 = vpow2.f32 %v2098_v13  ;;  %v5970_v46 = vadd.f32 %v4635_v24, %v5846_v47 }
 0x839   : > { %v5964_v26 = vpop.eup %4212  ;;  %v2100_v30 = vmul.f32 1.442695, %v2016_v57  ;;  %v2102_v63 = vmul.f32 1.442695, %v2017_v17  ;;  %1988 = vmax.xlane.f32.xlu1 %v1987_v51  ;;  %2207 = vadd.xlane.f32.xlu0 %v2206_v21 }
 0x83a   : > { %v5972_v10 = vpop.eup %4214  ;;  %v1935_v3 = vpop.xlane.xlu1 %1934  ;;  %v1993_v56 = vmax.f32 %v5967_v27, %v5970_v46 }
 0x83b   : > { %4224 = vpow2.f32 %v2100_v30  ;;  %v2018_v20 = vsub.f32 %v5746_v33, %v1935_v3  ;;  %v2019_v42 = vsub.f32 %v5748_v19, %v1935_v3  ;;  %v2209_v0 = vadd.f32 %v5972_v10, %v5964_v26 }
 0x83c   : > { %4226 = vpow2.f32 %v2102_v63 }
 0x83d   : > { %v5978_v37 = vpop.eup %4216  ;;  %v2104_v51 = vmul.f32 1.442695, %v2018_v20  ;;  %v2106_v47 = vmul.f32 1.442695, %v2019_v42  ;;  %2210 = vadd.xlane.f32.xlu1 %v2209_v0  ;;  %1991 = vmax.xlane.f32.xlu0 %v1990_v25 }
 0x83e   : > { %v5982_v45 = vpop.eup %4218  ;;  %v1938_v13 = vpop.xlane.xlu0 %1937 }
 0x83f   : > { %4228 = vpow2.f32 %v2104_v51  ;;  %v2020_v33 = vsub.f32 %v5752_v62, %v1938_v13  ;;  %v2021_v19 = vsub.f32 %v5754_v32, %v1938_v13  ;;  %v2212_v38 = vadd.f32 %v5982_v45, %v5978_v37 }
 0x840   : > { %4230 = vpow2.f32 %v2106_v47 }
 0x841   : > { %v5988_v57 = vpop.eup %4220  ;;  %v2108_v17 = vmul.f32 1.442695, %v2020_v33  ;;  %v2110_v21 = vmul.f32 1.442695, %v2021_v19  ;;  %1994 = vmax.xlane.f32.xlu1 %v1993_v56  ;;  %2213 = vadd.xlane.f32.xlu0 %v2212_v38 }
 0x842   : > { %v5990_v30 = vpop.eup %4222  ;;  %v1941_v25 = vpop.xlane.xlu1 %1940 }
 0x843   : > { %4232 = vpow2.f32 %v2108_v17  ;;  %v2022_v63 = vsub.f32 %v5758_v12, %v1941_v25  ;;  %v2023_v62 = vsub.f32 %v5760_v5, %v1941_v25  ;;  %v2215_v32 = vadd.f32 %v5990_v30, %v5988_v57 }
 0x844   : > { %4234 = vpow2.f32 %v2110_v21 }
 0x845   : > { %v5996_v35 = vpop.eup %4224  ;;  %v2112_v24 = vmul.f32 1.442695, %v2022_v63  ;;  %v2114_v3 = vmul.f32 1.442695, %v2023_v62  ;;  %2216 = vadd.xlane.f32.xlu1 %v2215_v32 }
 0x846   : > { %v5998_v20 = vpop.eup %4226  ;;  %v1944_v42 = vpop.xlane.xlu0 %1943 }
 0x847   : > { %4236 = vpow2.f32 %v2112_v24  ;;  %v2024_v0 = vsub.f32 %v5764_v61, %v1944_v42  ;;  %v2025_v56 = vsub.f32 %v5766_v59, %v1944_v42  ;;  %v2218_v12 = vadd.f32 %v5998_v20, %v5996_v35 }
 0x848   : > { %4238 = vpow2.f32 %v2114_v3 }
 0x849   : > { %v6004_v5 = vpop.eup %4228  ;;  %v2116_v51 = vmul.f32 1.442695, %v2024_v0  ;;  %v2118_v47 = vmul.f32 1.442695, %v2025_v56  ;;  %2219 = vadd.xlane.f32.xlu0 %v2218_v12  ;;  %v7103_v12 = vld [vmem:[#allocation17_spill] sm:$0xff] }
 0x84a   : > { %v6006_v13 = vpop.eup %4230  ;;  %v1947_v33 = vpop.xlane.xlu1 %1946 }
 0x84b   : > { %4240 = vpow2.f32 %v2116_v51  ;;  %v2026_v19 = vsub.f32 %v5770_v14, %v1947_v33  ;;  %v2027_v38 = vsub.f32 %v5772_v48, %v1947_v33  ;;  %v2221_v61 = vadd.f32 %v6006_v13, %v6004_v5 }
 0x84c   : > { %4242 = vpow2.f32 %v2118_v47 }
 0x84d   : > { %v6012_v59 = vpop.eup %4232  ;;  %v2120_v17 = vmul.f32 1.442695, %v2026_v19  ;;  %v2122_v21 = vmul.f32 1.442695, %v2027_v38  ;;  %2222 = vadd.xlane.f32.xlu1 %v2221_v61  ;;  %v7105_v61 = vld [vmem:[#allocation16_spill] sm:$0xff] }
 0x84e   : > { %v6014_v25 = vpop.eup %4234  ;;  %v1950_v63 = vpop.xlane.xlu0 %1949 }
 0x84f   : > { %4244 = vpow2.f32 %v2120_v17  ;;  %v2028_v62 = vsub.f32 %v5776_v23, %v1950_v63  ;;  %v2029_v32 = vsub.f32 %v5778_v29, %v1950_v63  ;;  %v2224_v14 = vadd.f32 %v6014_v25, %v6012_v59 }
 0x850   : > { %4246 = vpow2.f32 %v2122_v21  ;;  %v7106_v21 = vld [vmem:[#allocation14_spill] sm:$0xff] }
 0x851   : > { %v6020_v48 = vpop.eup %4236  ;;  %v2124_v24 = vmul.f32 1.442695, %v2028_v62  ;;  %v2126_v3 = vmul.f32 1.442695, %v2029_v32  ;;  %2225 = vadd.xlane.f32.xlu0 %v2224_v14 }
 0x852   : > { %v6022_v42 = vpop.eup %4238  ;;  %v1953_v0 = vpop.xlane.xlu1 %1952 }
 0x853   : > { %4248 = vpow2.f32 %v2124_v24  ;;  %v2030_v56 = vsub.f32 %v5782_v31, %v1953_v0  ;;  %v2031_v51 = vsub.f32 %v7103_v12, %v1953_v0  ;;  %v2227_v23 = vadd.f32 %v6022_v42, %v6020_v48  ;;  %v7108_v0 = vld [vmem:[#allocation19_spill] sm:$0xff]  ;;  %v7109_v12 = vld [vmem:[#allocation21_spill] sm:$0xff] }
 0x854   : > { %4250 = vpow2.f32 %v2126_v3 }
 0x855   : > { %v6028_v29 = vpop.eup %4240  ;;  %v2128_v47 = vmul.f32 1.442695, %v2030_v56  ;;  %v2130_v33 = vmul.f32 1.442695, %v2031_v51  ;;  %2228 = vadd.xlane.f32.xlu1 %v2227_v23 }
 0x856   : > { %7104 = vst [vmem:[#allocation17_spill] sm:$0xff] %v6028_v29  ;;  %v6030_v19 = vpop.eup %4242  ;;  %v1956_v38 = vpop.xlane.xlu0 %1955 }
 0x857   : > { %4252 = vpow2.f32 %v2128_v47  ;;  %v2032_v17 = vsub.f32 %v7105_v61, %v1956_v38  ;;  %v2033_v63 = vsub.f32 %v7106_v21, %v1956_v38  ;;  %v2230_v31 = vadd.f32 %v6030_v19, %v6028_v29  ;;  %v7112_v21 = vld [vmem:[#allocation20_spill] sm:$0xff] }
 0x858   : > { %4254 = vpow2.f32 %v2130_v33 }
 0x859   : > { %v6036_v62 = vpop.eup %4244  ;;  %v2132_v32 = vmul.f32 1.442695, %v2032_v17  ;;  %v2134_v14 = vmul.f32 1.442695, %v2033_v63  ;;  %2231 = vadd.xlane.f32.xlu0 %v2230_v31  ;;  %v7113_v31 = vld [vmem:[#allocation18_spill] sm:$0xff] }
 0x85a   : > { %7107 = vst [vmem:[#allocation16_spill] sm:$0xff] %v6036_v62  ;;  %v6038_v24 = vpop.eup %4246  ;;  %v1959_v3 = vpop.xlane.xlu1 %1958 }
 0x85b   : > { %4256 = vpow2.f32 %v2132_v32  ;;  %v2034_v56 = vsub.f32 %v7108_v0, %v1959_v3  ;;  %v2035_v51 = vsub.f32 %v7109_v12, %v1959_v3  ;;  %v2233_v23 = vadd.f32 %v6038_v24, %v6036_v62 }
 0x85c   : > { %4258 = vpow2.f32 %v2134_v14 }
 0x85d   : > { %v6044_v47 = vpop.eup %4248  ;;  %v2136_v33 = vmul.f32 1.442695, %v2034_v56  ;;  %v2138_v38 = vmul.f32 1.442695, %v2035_v51  ;;  %2234 = vadd.xlane.f32.xlu1 %v2233_v23  ;;  %v7116_v23 = vld [vmem:[#allocation23_spill] sm:$0xff] }
 0x85e   : > { %7110 = vst [vmem:[#allocation14_spill] sm:$0xff] %v6044_v47  ;;  %v6046_v61 = vpop.eup %4250  ;;  %v1962_v17 = vpop.xlane.xlu0 %1961 }
 0x85f   : > { %7111 = vst [vmem:[#allocation19_spill] sm:$0xff] %v6046_v61  ;;  %4260 = vpow2.f32 %v2136_v33  ;;  %v2036_v63 = vsub.f32 %v7112_v21, %v1962_v17  ;;  %v2037_v32 = vsub.f32 %v7113_v31, %v1962_v17  ;;  %v2236_v3 = vadd.f32 %v6046_v61, %v6044_v47  ;;  %v7117_v33 = vld [vmem:[#allocation25_spill] sm:$0xff] }
 0x860   : > { %4262 = vpow2.f32 %v2138_v38 }
 0x861   : > { %v6052_v0 = vpop.eup %4252  ;;  %v2140_v14 = vmul.f32 1.442695, %v2036_v63  ;;  %v2142_v12 = vmul.f32 1.442695, %v2037_v32  ;;  %2237 = vadd.xlane.f32.xlu0 %v2236_v3  ;;  %v7118_v3 = vld [vmem:[#allocation24_spill] sm:$0xff] }
 0x862   : > { %7114 = vst [vmem:[#allocation21_spill] sm:$0xff] %v6052_v0  ;;  %v6054_v56 = vpop.eup %4254  ;;  %v1965_v51 = vpop.xlane.xlu1 %1964 }
 0x863   : > { %7115 = vst [vmem:[#allocation20_spill] sm:$0xff] %v6054_v56  ;;  %4264 = vpow2.f32 %v2140_v14  ;;  %v2038_v29 = vsub.f32 %v7116_v23, %v1965_v51  ;;  %v2039_v62 = vsub.f32 %v7117_v33, %v1965_v51  ;;  %v2239_v17 = vadd.f32 %v6054_v56, %v6052_v0  ;;  %v7119_v14 = vld [vmem:[#allocation22_spill] sm:$0xff] }
 0x864   : > { %4266 = vpow2.f32 %v2142_v12 }
 0x865   : > { %v6060_v21 = vpop.eup %4256  ;;  %v2144_v38 = vmul.f32 1.442695, %v2038_v29  ;;  %v2146_v31 = vmul.f32 1.442695, %v2039_v62  ;;  %2240 = vadd.xlane.f32.xlu1 %v2239_v17  ;;  %v7120_v17 = vld [vmem:[#allocation10_spill] sm:$0xff] }
 0x866   : > { %v6062_v63 = vpop.eup %4258  ;;  %v1968_v32 = vpop.xlane.xlu0 %1967 }
 0x867   : > { %4268 = vpow2.f32 %v2144_v38  ;;  %v2040_v47 = vsub.f32 %v7118_v3, %v1968_v32  ;;  %v2041_v61 = vsub.f32 %v7119_v14, %v1968_v32  ;;  %v2242_v51 = vadd.f32 %v6062_v63, %v6060_v21  ;;  %v7121_v38 = vld [vmem:[#allocation11_spill] sm:$0xff] }
 0x868   : > { %4270 = vpow2.f32 %v2146_v31 }
 0x869   : > { %v6068_v23 = vpop.eup %4260  ;;  %v2148_v12 = vmul.f32 1.442695, %v2040_v47  ;;  %v2150_v33 = vmul.f32 1.442695, %v2041_v61  ;;  %2243 = vadd.xlane.f32.xlu0 %v2242_v51 }
 0x86a   : > { %v6070_v29 = vpop.eup %4262  ;;  %v1971_v62 = vpop.xlane.xlu1 %1970 }
 0x86b   : > { %4272 = vpow2.f32 %v2148_v12  ;;  %v2042_v0 = vsub.f32 %v7120_v17, %v1971_v62  ;;  %v2043_v56 = vsub.f32 %v7121_v38, %v1971_v62  ;;  %v2245_v32 = vadd.f32 %v6070_v29, %v6068_v23 }
 0x86c   : > { %4274 = vpow2.f32 %v2150_v33 }
 0x86d   : > { %v6076_v3 = vpop.eup %4264  ;;  %v2152_v31 = vmul.f32 1.442695, %v2042_v0  ;;  %v2154_v14 = vmul.f32 1.442695, %v2043_v56  ;;  %2246 = vadd.xlane.f32.xlu1 %v2245_v32 }
 0x86e   : > { %7122 = vst [vmem:[#allocation18_spill] sm:$0xff] %v6076_v3  ;;  %v6078_v47 = vpop.eup %4266 }
 0x86f   : > { %7123 = vst [vmem:[#allocation23_spill] sm:$0xff] %v6078_v47  ;;  %4276 = vpow2.f32 %v2152_v31  ;;  %v2248_v61 = vadd.f32 %v6078_v47, %v6076_v3 }
 0x870   : > { %4278 = vpow2.f32 %v2154_v14 }
 0x871   : > { %v6082_v51 = vpop.eup %4268  ;;  %2249 = vadd.xlane.f32.xlu0 %v2248_v61 }
 0x872   : > { %7124 = vst [vmem:[#allocation25_spill] sm:$0xff] %v6082_v51  ;;  %v6084_v12 = vpop.eup %4270 }
 0x873   : > { %7125 = vst [vmem:[#allocation24_spill] sm:$0xff] %v6084_v12  ;;  %v2251_v33 = vadd.f32 %v6084_v12, %v6082_v51 }
 0x875   : > { %v6088_v62 = vpop.eup %4272  ;;  %2252 = vadd.xlane.f32.xlu1 %v2251_v33 }
 0x876   : > { %7126 = vst [vmem:[#allocation22_spill] sm:$0xff] %v6088_v62  ;;  %v6090_v0 = vpop.eup %4274 }
 0x877   : > { %7127 = vst [vmem:[#allocation10_spill] sm:$0xff] %v6090_v0  ;;  %v2254_v56 = vadd.f32 %v6090_v0, %v6088_v62 }
 0x879   : > { %v6094_v17 = vpop.eup %4276  ;;  %2255 = vadd.xlane.f32.xlu0 %v2254_v56 }
 0x87a   : > { %7128 = vst [vmem:[#allocation11_spill] sm:$0xff] %v6094_v17  ;;  %v6096_v38 = vpop.eup %4278 }
 0x87b   : > { %7129 = vst [vmem:[#allocation26_spill] sm:$0xff] %v6096_v38  ;;  %v2257_v32 = vadd.f32 %v6096_v38, %v6094_v17 }
 0x87d   : > { %2258 = vadd.xlane.f32.xlu1 %v2257_v32 }
 0x8ae   : > { %v2190_v31 = vpop.xlane.xlu0 %2189 }
 0x8af   : > { %4280 = vrcp.f32 %v2190_v31 }
 0x8b2   : > { %v2193_v14 = vpop.xlane.xlu1 %2192  ;;  %v1974_v61 = vpop.xlane.xlu0 %1973 }
 0x8b3   : > { %4282 = vrcp.f32 %v2193_v14  ;;  %v2044_v33 = vsub.f32 %v5856_v55, %v1974_v61  ;;  %v2045_v3 = vsub.f32 %v5858_v41, %v1974_v61 }
 0x8b5   : > { %v2156_v51 = vmul.f32 1.442695, %v2044_v33  ;;  %v2158_v62 = vmul.f32 1.442695, %v2045_v3 }
 0x8b6   : > { %v1977_v0 = vpop.xlane.xlu1 %1976  ;;  %v2196_v12 = vpop.xlane.xlu0 %2195 }
 0x8b7   : > { %4284 = vpow2.f32 %v2156_v51  ;;  %v2046_v56 = vsub.f32 %v5872_v60, %v1977_v0  ;;  %v2047_v47 = vsub.f32 %v5874_v40, %v1977_v0 }
 0x8b8   : > { %4286 = vpow2.f32 %v2158_v62 }
 0x8b9   : > { %v2160_v32 = vmul.f32 1.442695, %v2046_v56  ;;  %v2162_v17 = vmul.f32 1.442695, %v2047_v47  ;;  %4288 = vrcp.f32 %v2196_v12  ;;  %v4281_v14 = vpop.eup %4280 }
 0x8ba   : > { %v2199_v31 = vpop.xlane.xlu1 %2198  ;;  %v1980_v38 = vpop.xlane.xlu0 %1979  ;;  %v2317_v40 = vmul.f32 %v4281_v14, %v5862_v11  ;;  %v2316_v12 = vmul.f32 %v4281_v14, %v5860_v39 }
 0x8bb   : > { %4290 = vpow2.f32 %v2160_v32  ;;  %v2048_v55 = vsub.f32 %v5883_v36, %v1980_v38  ;;  %v2049_v41 = vsub.f32 %v5886_v2, %v1980_v38 }
 0x8bc   : > { %4292 = vpow2.f32 %v2162_v17 }
 0x8bd   : > { %v4283_v3 = vpop.eup %4282  ;;  %4294 = vrcp.f32 %v2199_v31  ;;  %v2164_v51 = vmul.f32 1.442695, %v2048_v55  ;;  %v2166_v61 = vmul.f32 1.442695, %v2049_v41 }
 0x8be   : > { %v1983_v60 = vpop.xlane.xlu1 %1982  ;;  %v2202_v33 = vpop.xlane.xlu0 %2201  ;;  %v2319_v47 = vmul.f32 %v4283_v3, %v5876_v16  ;;  %v2318_v62 = vmul.f32 %v4283_v3, %v5870_v50 }
 0x8bf   : > { %4296 = vpow2.f32 %v2164_v51  ;;  %v2050_v36 = vsub.f32 %v5903_v7, %v1983_v60  ;;  %v2051_v2 = vsub.f32 %v5906_v43, %v1983_v60 }
 0x8c0   : > { %4298 = vpow2.f32 %v2166_v61  ;;  %v3808_v0 = vpack.c.bf16 %v2319_v47, %v2317_v40  ;;  %v3810_v17 = vpack.c.bf16 %v2318_v62, %v2316_v12 }
 0x8c1   : > { %v6112_v38 = vpop.eup %4284  ;;  %v2168_v56 = vmul.f32 1.442695, %v2050_v36  ;;  %v2170_v32 = vmul.f32 1.442695, %v2051_v2  ;;  %4300 = vrcp.f32 %v2202_v33 }
 0x8c2   : > { %v6114_v11 = vpop.eup %4286  ;;  %v2205_v16 = vpop.xlane.xlu1 %2204  ;;  %3809 = vmatprep.subr.bf16.mxu1 %v3808_v0 }
 0x8c3   : > { %v1986_v39 = vpop.xlane.xlu0 %1985  ;;  %v4289_v31 = vpop.eup %4288  ;;  %4302 = vpow2.f32 %v2168_v56  ;;  %3811 = vmatpush1.bf16.xpose.msra.mxu1 %v3810_v17  ;;  %v2260_v43 = vadd.f32 %v6114_v11, %v6112_v38 }
 0x8c4   : > { %v2052_v50 = vsub.f32 %v5915_v9, %v1986_v39  ;;  %v2053_v7 = vsub.f32 %v5918_v53, %v1986_v39  ;;  %4304 = vpow2.f32 %v2170_v32  ;;  %v2321_v60 = vmul.f32 %v4289_v31, %v5892_v49 }
 0x8c5   : > { %v6120_v14 = vpop.eup %4290  ;;  %4306 = vrcp.f32 %v2205_v16  ;;  %2261 = vadd.xlane.f32.xlu0 %v2260_v43  ;;  %v2320_v12 = vmul.f32 %v4289_v31, %v5888_v15 }
 0x8c6   : > { %v2172_v55 = vmul.f32 1.442695, %v2052_v50  ;;  %v2174_v41 = vmul.f32 1.442695, %v2053_v7  ;;  %v6122_v3 = vpop.eup %4292  ;;  %v1989_v51 = vpop.xlane.xlu1 %1988 }
 0x8c7   : > { %v2208_v61 = vpop.xlane.xlu0 %2207  ;;  %v4295_v9 = vpop.eup %4294  ;;  %v2054_v53 = vsub.f32 %v5935_v4, %v1989_v51  ;;  %v2055_v33 = vsub.f32 %v5938_v18, %v1989_v51  ;;  %v2263_v40 = vadd.f32 %v6122_v3, %v6120_v14 }
 0x8c8   : > { %4308 = vpow2.f32 %v2172_v55  ;;  %v2323_v47 = vmul.f32 %v4295_v9, %v5908_v54  ;;  %v2322_v62 = vmul.f32 %v4295_v9, %v5900_v28 }
 0x8c9   : > { %4310 = vpow2.f32 %v2174_v41  ;;  %v6132_v36 = vpop.eup %4296  ;;  %v2176_v2 = vmul.f32 1.442695, %v2054_v53  ;;  %v2178_v49 = vmul.f32 1.442695, %v2055_v33  ;;  %2264 = vadd.xlane.f32.xlu1 %v2263_v40 }
 0x8ca   : > { %v6134_v0 = vpop.eup %4298  ;;  %4312 = vrcp.f32 %v2208_v61  ;;  %v2211_v4 = vpop.xlane.xlu1 %2210  ;;  %v3812_v18 = vpack.c.bf16 %v2323_v47, %v2321_v60  ;;  %v3814_v56 = vpack.c.bf16 %v2322_v62, %v2320_v12 }
 0x8cb   : > { %v1992_v17 = vpop.xlane.xlu0 %1991  ;;  %v4301_v32 = vpop.eup %4300  ;;  %4314 = vpow2.f32 %v2176_v2  ;;  %v2266_v28 = vadd.f32 %v6134_v0, %v6132_v36 }
 0x8cc   : > { %v2056_v54 = vsub.f32 %v5947_v8, %v1992_v17  ;;  %v2057_v15 = vsub.f32 %v5950_v52, %v1992_v17  ;;  %4316 = vpow2.f32 %v2178_v49  ;;  %3813 = vmatprep.subr.bf16.mxu1 %v3812_v18  ;;  %v2325_v43 = vmul.f32 %v4301_v32, %v5924_v6 }
 0x8cd   : > { %v6140_v16 = vpop.eup %4302  ;;  %4318 = vrcp.f32 %v2211_v4  ;;  %3815 = vmatpush1.bf16.xpose.msra.mxu1 %v3814_v56  ;;  %2267 = vadd.xlane.f32.xlu0 %v2266_v28  ;;  %v2324_v60 = vmul.f32 %v4301_v32, %v5920_v1 }
 0x8ce   : > { %v2180_v39 = vmul.f32 1.442695, %v2056_v54  ;;  %v2182_v31 = vmul.f32 1.442695, %v2057_v15  ;;  %v6142_v50 = vpop.eup %4304  ;;  %v1995_v7 = vpop.xlane.xlu1 %1994 }
 0x8cf   : > { %v4307_v8 = vpop.eup %4306  ;;  %v2058_v52 = vsub.f32 %v5967_v27, %v1995_v7  ;;  %v2059_v55 = vsub.f32 %v5970_v46, %v1995_v7  ;;  %v2214_v41 = vpop.xlane.xlu0 %2213  ;;  %v2269_v51 = vadd.f32 %v6142_v50, %v6140_v16 }
 0x8d0   : > { %4320 = vpow2.f32 %v2180_v39  ;;  %v2327_v61 = vmul.f32 %v4307_v8, %v5940_v44  ;;  %v2326_v9 = vmul.f32 %v4307_v8, %v5932_v22 }
 0x8d1   : > { %4322 = vpow2.f32 %v2182_v31  ;;  %v2184_v6 = vmul.f32 1.442695, %v2058_v52  ;;  %v2186_v33 = vmul.f32 1.442695, %v2059_v55  ;;  %2270 = vadd.xlane.f32.xlu1 %v2269_v51 }
 0x8d2   : > { %v6152_v53 = vpop.eup %4308  ;;  %4324 = vrcp.f32 %v2214_v41  ;;  %v2217_v27 = vpop.xlane.xlu1 %2216  ;;  %v3816_v46 = vpack.c.bf16 %v2327_v61, %v2325_v43  ;;  %v3818_v47 = vpack.c.bf16 %v2326_v9, %v2324_v60 }
 0x8d3   : > { %v6154_v40 = vpop.eup %4310  ;;  %4326 = vpow2.f32 %v2184_v6 }
 0x8d4   : > { %v2272_v12 = vadd.f32 %v6154_v40, %v6152_v53  ;;  %v4313_v44 = vpop.eup %4312  ;;  %4328 = vpow2.f32 %v2186_v33  ;;  %3817 = vmatprep.subr.bf16.mxu1 %v3816_v46 }
 0x8d5   : > { %v6158_v1 = vpop.eup %4314  ;;  %4330 = vrcp.f32 %v2217_v27  ;;  %3819 = vmatpush1.bf16.xpose.msra.mxu1 %v3818_v47  ;;  %v2329_v4 = vmul.f32 %v4313_v44, %v5956_v58  ;;  %v2328_v17 = vmul.f32 %v4313_v44, %v5952_v34 }
 0x8d6   : > { %2273 = vadd.xlane.f32.xlu0 %v2272_v12  ;;  %v6160_v22 = vpop.eup %4316  ;;  %v2220_v62 = vpop.xlane.xlu0 %2219 }
 0x8d7   : > { %v4319_v2 = vpop.eup %4318  ;;  %v2275_v49 = vadd.f32 %v6160_v22, %v6158_v1  ;;  %4332 = vrcp.f32 %v2220_v62 }
 0x8d8   : > { %v2331_v18 = vmul.f32 %v4319_v2, %v5972_v10  ;;  %v2330_v56 = vmul.f32 %v4319_v2, %v5964_v26 }
 0x8d9   : > { %2276 = vadd.xlane.f32.xlu1 %v2275_v49 }
 0x8da   : > { %v6168_v32 = vpop.eup %4320  ;;  %v2223_v15 = vpop.xlane.xlu1 %2222  ;;  %v3820_v28 = vpack.c.bf16 %v2331_v18, %v2329_v4  ;;  %v3822_v39 = vpack.c.bf16 %v2330_v56, %v2328_v17 }
 0x8db   : > { %v6170_v54 = vpop.eup %4322  ;;  %4334 = vrcp.f32 %v2223_v15 }
 0x8dc   : > { %v2278_v31 = vadd.f32 %v6170_v54, %v6168_v32  ;;  %v4325_v58 = vpop.eup %4324  ;;  %3821 = vmatprep.subr.bf16.mxu1 %v3820_v28  ;;  %v7130_v28 = vld [vmem:[#allocation16_spill] sm:$0xff] }
 0x8dd   : > { %v6174_v10 = vpop.eup %4326  ;;  %3823 = vmatpush1.bf16.xpose.msra.mxu1 %v3822_v39  ;;  %v2333_v8 = vmul.f32 %v4325_v58, %v5982_v45  ;;  %v2332_v55 = vmul.f32 %v4325_v58, %v5978_v37  ;;  %v7131_v39 = vld [vmem:[#allocation17_spill] sm:$0xff] }
 0x8de   : > { %2279 = vadd.xlane.f32.xlu0 %v2278_v31  ;;  %v6176_v34 = vpop.eup %4328  ;;  %v2226_v26 = vpop.xlane.xlu0 %2225 }
 0x8df   : > { %v4331_v7 = vpop.eup %4330  ;;  %v2281_v43 = vadd.f32 %v6176_v34, %v6174_v10  ;;  %4336 = vrcp.f32 %v2226_v26 }
 0x8e0   : > { %v2335_v52 = vmul.f32 %v4331_v7, %v5990_v30  ;;  %v2334_v41 = vmul.f32 %v4331_v7, %v5988_v57 }
 0x8e1   : > { %2282 = vadd.xlane.f32.xlu1 %v2281_v43  ;;  %v4333_v9 = vpop.eup %4332 }
 0x8e2   : > { %v2229_v51 = vpop.xlane.xlu1 %2228  ;;  %v3824_v61 = vpack.c.bf16 %v2335_v52, %v2333_v8  ;;  %v3826_v60 = vpack.c.bf16 %v2334_v41, %v2332_v55  ;;  %v2337_v27 = vmul.f32 %v4333_v9, %v5998_v20  ;;  %v2336_v37 = vmul.f32 %v4333_v9, %v5996_v35  ;;  %v7132_v8 = vld [vmem:[#allocation19_spill] sm:$0xff]  ;;  %v7133_v55 = vld [vmem:[#allocation20_spill] sm:$0xff]  ;;  %v7134_v41 = vld [vmem:[#allocation21_spill] sm:$0xff] }
 0x8e3   : > { %4338 = vrcp.f32 %v2229_v51  ;;  %v7135_v51 = vld [vmem:[#allocation14_spill] sm:$0xff] }
 0x8e4   : > { %3825 = vmatprep.subr.bf16.mxu1 %v3824_v61 }
 0x8e5   : > { %v4335_v6 = vpop.eup %4334  ;;  %3827 = vmatpush1.bf16.xpose.msra.mxu1 %v3826_v60 }
 0x8e6   : > { %v2232_v33 = vpop.xlane.xlu0 %2231  ;;  %v2339_v45 = vmul.f32 %v4335_v6, %v6006_v13  ;;  %v2338_v30 = vmul.f32 %v4335_v6, %v6004_v5 }
 0x8e7   : > { %4340 = vrcp.f32 %v2232_v33 }
 0x8e8   : > { %v3828_v57 = vpack.c.bf16 %v2339_v45, %v2337_v27  ;;  %v3830_v46 = vpack.c.bf16 %v2338_v30, %v2336_v37 }
 0x8e9   : > { %v4337_v12 = vpop.eup %4336 }
 0x8ea   : > { %v2235_v47 = vpop.xlane.xlu1 %2234  ;;  %3829 = vmatprep.subr.bf16.mxu1 %v3828_v57  ;;  %v2341_v2 = vmul.f32 %v4337_v12, %v6014_v25  ;;  %v2340_v5 = vmul.f32 %v4337_v12, %v6012_v59 }
 0x8eb   : > { %4342 = vrcp.f32 %v2235_v47 }
 0x8ed   : > { %v4339_v44 = vpop.eup %4338  ;;  %3831 = vmatpush1.bf16.xpose.msra.mxu1 %v3830_v46 }
 0x8ee   : > { %v2238_v62 = vpop.xlane.xlu0 %2237  ;;  %v2343_v20 = vmul.f32 %v4339_v44, %v6022_v42  ;;  %v2342_v13 = vmul.f32 %v4339_v44, %v6020_v48 }
 0x8ef   : > { %4344 = vrcp.f32 %v2238_v62 }
 0x8f0   : > { %v3832_v49 = vpack.c.bf16 %v2343_v20, %v2341_v2  ;;  %v3834_v35 = vpack.c.bf16 %v2342_v13, %v2340_v5  ;;  %v7136_v20 = vld [vmem:[#allocation23_spill] sm:$0xff]  ;;  %v7137_v5 = vld [vmem:[#allocation24_spill] sm:$0xff] }
 0x8f1   : > { %v4341_v18 = vpop.eup %4340 }
 0x8f2   : > { %v2241_v4 = vpop.xlane.xlu1 %2240  ;;  %3833 = vmatprep.subr.bf16.mxu1 %v3832_v49  ;;  %v2345_v15 = vmul.f32 %v4341_v18, %v6030_v19  ;;  %v2344_v48 = vmul.f32 %v4341_v18, %v7131_v39 }
 0x8f3   : > { %4346 = vrcp.f32 %v2241_v4 }
 0x8f5   : > { %v4343_v17 = vpop.eup %4342  ;;  %3835 = vmatpush1.bf16.xpose.msra.mxu1 %v3834_v35 }
 0x8f6   : > { %v2244_v56 = vpop.xlane.xlu0 %2243  ;;  %v2347_v25 = vmul.f32 %v4343_v17, %v6038_v24  ;;  %v2346_v42 = vmul.f32 %v4343_v17, %v7130_v28 }
 0x8f7   : > { %4348 = vrcp.f32 %v2244_v56  ;;  %v7140_v56 = vld [vmem:[#allocation10_spill] sm:$0xff] }
 0x8f8   : > { %v3836_v31 = vpack.c.bf16 %v2347_v25, %v2345_v15  ;;  %v3838_v59 = vpack.c.bf16 %v2346_v42, %v2344_v48  ;;  %v7141_v25 = vld [vmem:[#allocation26_spill] sm:$0xff]  ;;  %v7142_v42 = vld [vmem:[#allocation11_spill] sm:$0xff] }
 0x8f9   : > { %v4345_v26 = vpop.eup %4344  ;;  %v7143_v48 = vld [vmem:[#allocation22_spill] sm:$0xff] }
 0x8fa   : > { %v2247_v58 = vpop.xlane.xlu1 %2246  ;;  %3837 = vmatprep.subr.bf16.mxu1 %v3836_v31  ;;  %v2349_v52 = vmul.f32 %v4345_v26, %v7132_v8  ;;  %v2348_v61 = vmul.f32 %v4345_v26, %v7135_v51 }
 0x8fb   : > { %4350 = vrcp.f32 %v2247_v58 }
 0x8fd   : > { %v4347_v7 = vpop.eup %4346  ;;  %3839 = vmatpush1.bf16.xpose.msra.mxu1 %v3838_v59 }
 0x8fe   : > { %v2250_v43 = vpop.xlane.xlu0 %2249  ;;  %v2351_v19 = vmul.f32 %v4347_v7, %v7133_v55  ;;  %v2350_v24 = vmul.f32 %v4347_v7, %v7134_v41 }
 0x8ff   : > { %4352 = vrcp.f32 %v2250_v43 }
 0x900   : > { %v3840_v60 = vpack.c.bf16 %v2351_v19, %v2349_v52  ;;  %v3842_v9 = vpack.c.bf16 %v2350_v24, %v2348_v61 }
 0x901   : > { %v4349_v33 = vpop.eup %4348 }
 0x902   : > { %v2253_v6 = vpop.xlane.xlu1 %2252  ;;  %3841 = vmatprep.subr.bf16.mxu1 %v3840_v60  ;;  %v2353_v30 = vmul.f32 %v4349_v33, %v6062_v63  ;;  %v2352_v46 = vmul.f32 %v4349_v33, %v6060_v21  ;;  %v7138_v63 = vld [vmem:[#allocation25_spill] sm:$0xff] }
 0x903   : > { %4354 = vrcp.f32 %v2253_v6 }
 0x905   : > { %v4351_v27 = vpop.eup %4350  ;;  %3843 = vmatpush1.bf16.xpose.msra.mxu1 %v3842_v9 }
 0x906   : > { %v2256_v45 = vpop.xlane.xlu0 %2255  ;;  %v2355_v37 = vmul.f32 %v4351_v27, %v6070_v29  ;;  %v2354_v57 = vmul.f32 %v4351_v27, %v6068_v23  ;;  %v7139_v29 = vld [vmem:[#allocation18_spill] sm:$0xff] }
 0x907   : > { %4356 = vrcp.f32 %v2256_v45 }
 0x908   : > { %v3844_v47 = vpack.c.bf16 %v2355_v37, %v2353_v30  ;;  %v3846_v12 = vpack.c.bf16 %v2354_v57, %v2352_v46 }
 0x909   : > { %v4353_v62 = vpop.eup %4352 }
 0x90a   : > { %v2259_v44 = vpop.xlane.xlu1 %2258  ;;  %3845 = vmatprep.subr.bf16.mxu1 %v3844_v47  ;;  %v2357_v13 = vmul.f32 %v4353_v62, %v7136_v20  ;;  %v2356_v4 = vmul.f32 %v4353_v62, %v7139_v29 }
 0x90b   : > { %4358 = vrcp.f32 %v2259_v44 }
 0x90d   : > { %v4355_v2 = vpop.eup %4354  ;;  %3847 = vmatpush1.bf16.xpose.msra.mxu1 %v3846_v12 }
 0x90e   : > { %v2359_v49 = vmul.f32 %v4355_v2, %v7137_v5  ;;  %v2358_v35 = vmul.f32 %v4355_v2, %v7138_v63 }
 0x910   : > { %v3848_v23 = vpack.c.bf16 %v2359_v49, %v2357_v13  ;;  %v3850_v18 = vpack.c.bf16 %v2358_v35, %v2356_v4  ;;  %v7145_v49 = vmov 0.0   ;;  %v7146_v35 = vld [vmem:[#allocation12_spill] sm:$0xff] }
 0x911   : > { %v4357_v21 = vpop.eup %4356 }
 0x912   : > { %3849 = vmatprep.subr.bf16.mxu1 %v3848_v23  ;;  %v2361_v15 = vmul.f32 %v4357_v21, %v7140_v56  ;;  %v2360_v31 = vmul.f32 %v4357_v21, %v7143_v48  ;;  %v4636_v23 = vld [vmem:[%s4931_s9 + $0x8] sm:$0xff]  ;;  %v7147_v56 = vld [vmem:[#allocation9_spill] sm:$0xff] }
 0x913   : > { %v4639_v21 = vld [vmem:[%s6917_s1 + $0x8] sm:$0xf] }
 0x915   : > { %v4359_v17 = vpop.eup %4358  ;;  %3851 = vmatpush1.bf16.xpose.msra.mxu1 %v3850_v18  ;;  %v4637_v18 = vld [vmem:[%s4931_s9] sm:$0xff] }
 0x916   : > { %v2363_v28 = vmul.f32 %v4359_v17, %v7141_v25  ;;  %v2362_v39 = vmul.f32 %v4359_v17, %v7142_v42 }
 0x918   : > { %v3852_v59 = vpack.c.bf16 %v2363_v28, %v2361_v15  ;;  %v3854_v58 = vpack.c.bf16 %v2362_v39, %v2360_v31  ;;  %v7148_v31 = vld [vmem:[#allocation13_spill] sm:$0xff] }
 0x91a   : > { %3853 = vmatprep.subr.bf16.mxu1 %v3852_v59 }
 0x91d   : > { %3855 = vmatpush1.bf16.xpose.msra.mxu1 %v3854_v58 }
 0x952   : > { %v2262_v26 = vpop.xlane.xlu0 %2261 }
 0x953   : > { %4360 = vrcp.f32 %v2262_v26 }
 0x956   : > { %v2265_v7 = vpop.xlane.xlu1 %2264 }
 0x957   : > { %4362 = vrcp.f32 %v2265_v7 }
 0x95a   : > { %v2268_v43 = vpop.xlane.xlu0 %2267 }
 0x95b   : > { %4364 = vrcp.f32 %v2268_v43 }
 0x95d   : > { %v4361_v52 = vpop.eup %4360 }
 0x95e   : > { %v2271_v8 = vpop.xlane.xlu1 %2270  ;;  %v2365_v41 = vmul.f32 %v4361_v52, %v6114_v11  ;;  %v2364_v51 = vmul.f32 %v4361_v52, %v6112_v38 }
 0x95f   : > { %4366 = vrcp.f32 %v2271_v8 }
 0x961   : > { %v4363_v55 = vpop.eup %4362 }
 0x962   : > { %v2367_v24 = vmul.f32 %v4363_v55, %v6122_v3  ;;  %v2366_v61 = vmul.f32 %v4363_v55, %v6120_v14 }
 0x963   : > { %v2274_v19 = vpop.xlane.xlu0 %2273 }
 0x964   : > { %v3856_v60 = vpack.c.bf16 %v2367_v24, %v2365_v41  ;;  %v3858_v9 = vpack.c.bf16 %v2366_v61, %v2364_v51  ;;  %4368 = vrcp.f32 %v2274_v19 }
 0x965   : > { %v4365_v33 = vpop.eup %4364 }
 0x966   : > { %v2277_v6 = vpop.xlane.xlu1 %2276  ;;  %3857 = vmatprep.subr.bf16.mxu1 %v3856_v60  ;;  %v2369_v30 = vmul.f32 %v4365_v33, %v6134_v0  ;;  %v2368_v3 = vmul.f32 %v4365_v33, %v6132_v36 }
 0x967   : > { %4370 = vrcp.f32 %v2277_v6  ;;  %3859 = vmatpush1.bf16.xpose.msra.mxu1 %v3858_v9 }
 0x969   : > { %v4367_v27 = vpop.eup %4366 }
 0x96a   : > { %v2371_v11 = vmul.f32 %v4367_v27, %v6142_v50  ;;  %v2370_v38 = vmul.f32 %v4367_v27, %v6140_v16 }
 0x96b   : > { %v2280_v45 = vpop.xlane.xlu0 %2279 }
 0x96c   : > { %v3860_v37 = vpack.c.bf16 %v2371_v11, %v2369_v30  ;;  %v3862_v14 = vpack.c.bf16 %v2370_v38, %v2368_v3  ;;  %4372 = vrcp.f32 %v2280_v45 }
 0x96e   : > { %v2283_v57 = vpop.xlane.xlu1 %2282  ;;  %3861 = vmatprep.subr.bf16.mxu1 %v3860_v37  ;;  %v4369_v46 = vpop.eup %4368 }
 0x96f   : > { %4374 = vrcp.f32 %v2283_v57  ;;  %3863 = vmatpush1.bf16.xpose.msra.mxu1 %v3862_v14  ;;  %v2373_v12 = vmul.f32 %v4369_v46, %v6154_v40  ;;  %v2372_v0 = vmul.f32 %v4369_v46, %v6152_v53 }
 0x971   : > { %v4371_v47 = vpop.eup %4370 }
 0x972   : > { %v2375_v44 = vmul.f32 %v4371_v47, %v6160_v22  ;;  %v2374_v50 = vmul.f32 %v4371_v47, %v6158_v1  ;;  %v7144_v1 = vld [vmem:[#allocation15_spill] sm:$0xff] }
 0x974   : > { %v3864_v36 = vpack.c.bf16 %v2375_v44, %v2373_v12  ;;  %v3866_v62 = vpack.c.bf16 %v2374_v50, %v2372_v0 }
 0x976   : > { %3865 = vmatprep.subr.bf16.mxu1 %v3864_v36  ;;  %v4373_v16 = vpop.eup %4372 }
 0x977   : > { %3867 = vmatpush1.bf16.xpose.msra.mxu1 %v3866_v62  ;;  %v2377_v20 = vmul.f32 %v4373_v16, %v6170_v54  ;;  %v2376_v40 = vmul.f32 %v4373_v16, %v6168_v32 }
 0x979   : > { %v4375_v2 = vpop.eup %4374 }
 0x97a   : > { %v2379_v13 = vmul.f32 %v4375_v2, %v6176_v34  ;;  %v2378_v22 = vmul.f32 %v4375_v2, %v6174_v10  ;;  %v4638_v10 = vld [vmem:[%s6917_s1] sm:$0xff] }
 0x97c   : > { %v3868_v5 = vpack.c.bf16 %v2379_v13, %v2377_v20  ;;  %v3870_v53 = vpack.c.bf16 %v2378_v22, %v2376_v40 }
 0x97e   : > { %3869 = vmatprep.subr.bf16.mxu1 %v3868_v5 }
 0x97f   : > { %3871 = vmatpush1.bf16.xpose.msra.mxu1 %v3870_v53 }
 0x986   : > { %2455 = vmatmul.mubr.f32.vlgmr.msra.gmra.mrb[68].mxu1 %v7144_v1  ;;  %v4640_v1 = vld [vmem:[#allocation3] sm:$0xff] }
 0x987   : > { %2774 = vmatprep.mubr.f32.mxu1 %v7145_v49 }
 0xa59   : > { %v2456_v63 = vpop.f32.mrb[68].mxu1 }
 0xa5a   : > { %v2461_v29 = vmul.f32 %v2456_v63, %v7146_v35  ;;  %v2458_v4 = vpop.f32.mrb[69].mxu1 }
 0xa5b   : > { %v2462_v54 = vmul.f32 %v2458_v4, %v7146_v35  ;;  %v4641_v4 = vld [vmem:[#allocation3 + $0x8] sm:$0xff] }
 0xa5c   : > { %v2463_v32 = vadd.f32 %v4637_v18, %v2461_v29  ;;  %v4642_v18 = vld [vmem:[#allocation3 + $0x10] sm:$0xff] }
 0xa5d   : > { %v2464_v34 = vadd.f32 %v4636_v23, %v2462_v54 }
 0xa5f   : > { %2465 = vmatprep.subr.mxu0 %v2464_v34 }
 0xa60   : > { %2466 = vmatpush1.msra.mxu0 %v2463_v32 }
 0xa61   : > { %3701 = vmatmul.mubr.msk.f32.vlgmr.msra.gmra.mrb[70].mxu0 %vm320_vm0, %v4638_v10 }
 0xa62   : > { %2535 = vmatprep.mubr.f32.mxu0 %v7145_v49 }
 0xa65   : > { %3702 = vmatmul.mubr.msk.f32.gmra.mrb[72].mxu0 %vm320_vm0, %v4639_v21  ;;  %v4643_v21 = vld [vmem:[#allocation3 + $0x18] sm:$0xff] }
 0xb34   : > { %v2531_v17 = vpop.f32.mrb[70].mxu0 }
 0xb35   : > { %v2532_v15 = vadd.f32 %v2531_v17, %v7147_v56  ;;  %v2533_v25 = vpop.f32.mrb[71].mxu0 }
 0xb36   : > { %v2534_v28 = vadd.f32 %v2533_v25, %v7147_v56 }
 0xb37   : > { %2542 = vxpose.xlu0.b32.start.end [1/1] (short) %v2532_v15, 128  ;;  %v2608_v48 = vrot.slane %v2532_v15, 2  ;;  %v3449_v7 = vrot.slane %v2532_v15, 4  ;;  %v4644_v15 = vld [vmem:[#allocation3 + $0x20] sm:$0xff] }
 0xb38   : > { %v2609_v42 = vrot.slane %v2534_v28, 2  ;;  %v2537_v39 = vpop.f32.mrb[72].mxu0  ;;  %2574 = vxpose.xlu1.b32.start.end [1/1] (short) %v2534_v28, 128  ;;  %v3452_v8 = vrot.slane %v2534_v28, 4 }
 0xb39   : > { %v2538_v59 = vadd.f32 %v2537_v39, %v7148_v31  ;;  %v2539_v58 = vpop.f32.mrb[73].mxu0 }
 0xb3a   : > { %v2540_v26 = vadd.f32 %v2539_v58, %v7148_v31  ;;  %3703 = vmatprep.subr.msk.mxu1 %vm569_vm1, %v2609_v42  ;;  %v4645_v42 = vld [vmem:[#allocation3 + $0x28] sm:$0xff] }
 0xb3b   : > { %v3450_v43 = vrot.slane %v2538_v59, 4  ;;  %3704 = vmatpush1.msk.msra.mxu1 %vm569_vm1, %v2608_v48  ;;  %v4646_v59 = vld [vmem:[#allocation3 + $0x30] sm:$0xff] }
 0xb3c   : > { %v3453_v52 = vrot.slane %v2540_v26, 4 }
 0xb3d   : > { %v6250_v55 = vsel %vm1313_vm3, %v3449_v7, %v3450_v43  ;;  %v4647_v7 = vld [vmem:[#allocation3 + $0x38] sm:$0xff] }
 0xb3e   : > { %7149 = vst [vmem:[#allocation16_spill] sm:$0xff] %v6250_v55  ;;  %v3454_v19 = vsel %vm1313_vm3, %v3452_v8, %v3453_v52 }
 0xb3f   : > { %3521 = vmatprep.mubr.f32.mxu0 %v3454_v19  ;;  %v4648_v19 = vld [vmem:[#allocation3 + $0x40] sm:$0xff] }
 0xbb7   : > { %v2558_v41 = vpop.trf.xlu0 }
 0xbb8   : > { %3705 = vmatmul.mubr.msk.f32.vlgmr.msra.gmra.mrb[70].mxu1 %vm472_vm2, %v2558_v41  ;;  %v2590_v45 = vpop.trf.xlu1 }
 0xbb9   : > { %2780 = vmatprep.mubr.f32.mxu1 %v7145_v49 }
 0xbbb   : > { %v2559_v24 = vpop.trf.xlu0 }
 0xbbc   : > { %3706 = vmatmul.mubr.msk.f32.gmra.mrb[72].mxu1 %vm472_vm2, %v2559_v24  ;;  %v2591_v3 = vpop.trf.xlu1 }
 0xbbd   : > { %2786 = vmatprep.mubr.f32.mxu1 %v7145_v49 }
 0xbbf   : > { %v2560_v51 = vpop.trf.xlu0 }
 0xbc0   : > { %3707 = vmatmul.mubr.msk.f32.gmra.mrb[74].mxu1 %vm472_vm2, %v2560_v51  ;;  %v2592_v37 = vpop.trf.xlu1  ;;  %v4649_v51 = vld [vmem:[#allocation3 + $0x48] sm:$0xff] }
 0xbc1   : > { %2792 = vmatprep.mubr.f32.mxu1 %v7145_v49 }
 0xbc3   : > { %v2561_v61 = vpop.trf.xlu0 }
 0xbc4   : > { %3708 = vmatmul.mubr.msk.f32.gmra.mrb[76].mxu1 %vm472_vm2, %v2561_v61  ;;  %v2593_v46 = vpop.trf.xlu1 }
 0xbc5   : > { %2798 = vmatprep.mubr.f32.mxu1 %v7145_v49 }
 0xbc7   : > { %v2562_v60 = vpop.trf.xlu0 }
 0xbc8   : > { %3709 = vmatmul.mubr.msk.f32.gmra.mrb[78].mxu1 %vm472_vm2, %v2562_v60  ;;  %v2594_v12 = vpop.trf.xlu1 }
 0xbc9   : > { %2804 = vmatprep.mubr.f32.mxu1 %v7145_v49 }
 0xbcb   : > { %v2563_v9 = vpop.trf.xlu0 }
 0xbcc   : > { %3710 = vmatmul.mubr.msk.f32.gmra.mrb[80].mxu1 %vm472_vm2, %v2563_v9  ;;  %v2595_v0 = vpop.trf.xlu1 }
 0xbcd   : > { %2810 = vmatprep.mubr.f32.mxu1 %v7145_v49 }
 0xbcf   : > { %v2564_v6 = vpop.trf.xlu0 }
 0xbd0   : > { %3711 = vmatmul.mubr.msk.f32.gmra.mrb[82].mxu1 %vm472_vm2, %v2564_v6  ;;  %v2596_v50 = vpop.trf.xlu1  ;;  %v4650_v6 = vld [vmem:[#allocation3 + $0x50] sm:$0xff] }
 0xbd1   : > { %2816 = vmatprep.mubr.f32.mxu1 %v7145_v49 }
 0xbd3   : > { %v2565_v33 = vpop.trf.xlu0 }
 0xbd4   : > { %3712 = vmatmul.mubr.msk.f32.gmra.mrb[84].mxu1 %vm472_vm2, %v2565_v33  ;;  %v2597_v36 = vpop.trf.xlu1 }
 0xbd5   : > { %2822 = vmatprep.mubr.f32.mxu1 %v7145_v49 }
 0xbd7   : > { %v2566_v27 = vpop.trf.xlu0 }
 0xbd8   : > { %3713 = vmatmul.mubr.msk.f32.gmra.mrb[86].mxu1 %vm472_vm2, %v2566_v27  ;;  %v2598_v62 = vpop.trf.xlu1 }
 0xbd9   : > { %2828 = vmatprep.mubr.f32.mxu1 %v7145_v49 }
 0xbdb   : > { %v2567_v30 = vpop.trf.xlu0 }
 0xbdc   : > { %3714 = vmatmul.mubr.msk.f32.gmra.mrb[88].mxu1 %vm472_vm2, %v2567_v30  ;;  %v2599_v16 = vpop.trf.xlu1 }
 0xbdd   : > { %2834 = vmatprep.mubr.f32.mxu1 %v7145_v49 }
 0xbdf   : > { %v2568_v11 = vpop.trf.xlu0 }
 0xbe0   : > { %3715 = vmatmul.mubr.msk.f32.gmra.mrb[90].mxu1 %vm472_vm2, %v2568_v11  ;;  %v2600_v2 = vpop.trf.xlu1 }
 0xbe1   : > { %2840 = vmatprep.mubr.f32.mxu1 %v7145_v49 }
 0xbe3   : > { %v2569_v38 = vpop.trf.xlu0 }
 0xbe4   : > { %3716 = vmatmul.mubr.msk.f32.gmra.mrb[92].mxu1 %vm472_vm2, %v2569_v38  ;;  %v2601_v20 = vpop.trf.xlu1  ;;  %v4652_v38 = vld [vmem:[#allocation3 + $0x60] sm:$0xff] }
 0xbe5   : > { %2846 = vmatprep.mubr.f32.mxu1 %v7145_v49 }
 0xbe7   : > { %v2570_v14 = vpop.trf.xlu0 }
 0xbe8   : > { %3717 = vmatmul.mubr.msk.f32.gmra.mrb[94].mxu1 %vm472_vm2, %v2570_v14  ;;  %v2602_v13 = vpop.trf.xlu1 }
 0xbe9   : > { %2852 = vmatprep.mubr.f32.mxu1 %v7145_v49 }
 0xbeb   : > { %v2571_v57 = vpop.trf.xlu0 }
 0xbec   : > { %3718 = vmatmul.mubr.msk.f32.gmra.mrb[96].mxu1 %vm472_vm2, %v2571_v57  ;;  %v2603_v40 = vpop.trf.xlu1  ;;  %v4653_v57 = vld [vmem:[#allocation3 + $0x68] sm:$0xff] }
 0xbed   : > { %2858 = vmatprep.mubr.f32.mxu1 %v7145_v49 }
 0xbef   : > { %v2572_v47 = vpop.trf.xlu0 }
 0xbf0   : > { %3719 = vmatmul.mubr.msk.f32.gmra.mrb[98].mxu1 %vm472_vm2, %v2572_v47  ;;  %v2604_v22 = vpop.trf.xlu1 }
 0xbf1   : > { %2864 = vmatprep.mubr.f32.mxu1 %v7145_v49 }
 0xbf3   : > { %v2573_v44 = vpop.trf.xlu0 }
 0xbf4   : > { %3720 = vmatmul.mubr.msk.f32.gmra.mrb[100].mxu1 %vm472_vm2, %v2573_v44  ;;  %v2605_v5 = vpop.trf.xlu1  ;;  %v4654_v44 = vld [vmem:[#allocation3 + $0x70] sm:$0xff] }
 0xbf5   : > { %2870 = vmatprep.mubr.f32.mxu1 %v7145_v49 }
 0xbf8   : > { %3721 = vmatmul.mubr.msk.f32.gmra.mrb[102].mxu1 %vm472_vm2, %v2590_v45  ;;  %v4651_v45 = vld [vmem:[#allocation3 + $0x58] sm:$0xff] }
 0xbf9   : > { %2876 = vmatprep.mubr.f32.mxu1 %v7145_v49 }
 0xbfc   : > { %3722 = vmatmul.mubr.msk.f32.gmra.mrb[104].mxu1 %vm472_vm2, %v2591_v3 }
 0xbfd   : > { %2882 = vmatprep.mubr.f32.mxu1 %v7145_v49 }
 0xc00   : > { %3723 = vmatmul.mubr.msk.f32.gmra.mrb[106].mxu1 %vm472_vm2, %v2592_v37 }
 0xc01   : > { %2888 = vmatprep.mubr.f32.mxu1 %v7145_v49 }
 0xc04   : > { %3724 = vmatmul.mubr.msk.f32.gmra.mrb[108].mxu1 %vm472_vm2, %v2593_v46 }
 0xc05   : > { %2894 = vmatprep.mubr.f32.mxu1 %v7145_v49 }
 0xc08   : > { %3725 = vmatmul.mubr.msk.f32.gmra.mrb[110].mxu1 %vm472_vm2, %v2594_v12 }
 0xc09   : > { %2900 = vmatprep.mubr.f32.mxu1 %v7145_v49 }
 0xc0c   : > { %3726 = vmatmul.mubr.msk.f32.gmra.mrb[112].mxu1 %vm472_vm2, %v2595_v0 }
 0xc0d   : > { %2906 = vmatprep.mubr.f32.mxu1 %v7145_v49 }
 0xc10   : > { %3727 = vmatmul.mubr.msk.f32.gmra.mrb[114].mxu1 %vm472_vm2, %v2596_v50 }
 0xc11   : > { %2912 = vmatprep.mubr.f32.mxu1 %v7145_v49 }
 0xc14   : > { %3728 = vmatmul.mubr.msk.f32.gmra.mrb[116].mxu1 %vm472_vm2, %v2597_v36  ;;  %v4655_v36 = vld [vmem:[#allocation3 + $0x78] sm:$0xff] }
 0xc15   : > { %2918 = vmatprep.mubr.f32.mxu1 %v7145_v49 }
 0xc18   : > { %3729 = vmatmul.mubr.msk.f32.gmra.mrb[118].mxu1 %vm472_vm2, %v2598_v62 }
 0xc19   : > { %2924 = vmatprep.mubr.f32.mxu1 %v7145_v49 }
 0xc1c   : > { %3730 = vmatmul.mubr.msk.f32.gmra.mrb[120].mxu1 %vm472_vm2, %v2599_v16 }
 0xc1d   : > { %2930 = vmatprep.mubr.f32.mxu1 %v7145_v49 }
 0xc20   : > { %3731 = vmatmul.mubr.msk.f32.gmra.mrb[122].mxu1 %vm472_vm2, %v2600_v2 }
 0xc21   : > { %2936 = vmatprep.mubr.f32.mxu1 %v7145_v49 }
 0xc24   : > { %3732 = vmatmul.mubr.msk.f32.gmra.mrb[124].mxu1 %vm472_vm2, %v2601_v20  ;;  %v4656_v20 = vld [vmem:[#allocation3 + $0x80] sm:$0xff] }
 0xc25   : > { %2942 = vmatprep.mubr.f32.mxu1 %v7145_v49 }
 0xc28   : > { %3733 = vmatmul.mubr.msk.f32.gmra.mrb[126].mxu1 %vm472_vm2, %v2602_v13 }
 0xc29   : > { %2948 = vmatprep.mubr.f32.mxu1 %v7145_v49 }
 0xc2c   : > { %3734 = vmatmul.mubr.msk.f32.gmra.mrb[128].mxu1 %vm472_vm2, %v2603_v40 }
 0xc2d   : > { %2954 = vmatprep.mubr.f32.mxu1 %v7145_v49 }
 0xc30   : > { %3735 = vmatmul.mubr.msk.f32.gmra.mrb[130].mxu1 %vm472_vm2, %v2604_v22  ;;  %v4657_v22 = vld [vmem:[#allocation3 + $0x88] sm:$0xff] }
 0xc31   : > { %2960 = vmatprep.mubr.f32.mxu1 %v7145_v49 }
 0xc34   : > { %3736 = vmatmul.mubr.msk.f32.gmra.mrb[132].mxu1 %vm472_vm2, %v2605_v5 }
 0xc8b   : > { %v2776_v53 = vpop.f32.mrb[70].mxu1 }
 0xc8c   : > { %v6316_v63 = vadd.f32 %v4640_v1, %v2776_v53  ;;  %v2778_v29 = vpop.f32.mrb[71].mxu1 }
 0xc8d   : > { %v6318_v54 = vadd.f32 %v4641_v4, %v2778_v29  ;;  %v4658_v29 = vld [vmem:[#allocation3 + $0x90] sm:$0xff] }
 0xc8f   : > { %v2967_v23 = vmax.f32 %v6316_v63, %v6318_v54  ;;  %v2782_v34 = vpop.f32.mrb[72].mxu1 }
 0xc90   : > { %v6322_v32 = vadd.f32 %v4642_v18, %v2782_v34  ;;  %v2784_v10 = vpop.f32.mrb[73].mxu1  ;;  %v4659_v34 = vld [vmem:[#allocation3 + $0x98] sm:$0xff] }
 0xc91   : > { %v6324_v49 = vadd.f32 %v4643_v21, %v2784_v10  ;;  %2968 = vmax.xlane.f32.xlu0 %v2967_v23 }
 0xc93   : > { %v2970_v17 = vmax.f32 %v6322_v32, %v6324_v49  ;;  %v2788_v56 = vpop.f32.mrb[74].mxu1 }
 0xc94   : > { %v6328_v25 = vadd.f32 %v4644_v15, %v2788_v56  ;;  %v2790_v28 = vpop.f32.mrb[75].mxu1 }
 0xc95   : > { %v6330_v39 = vadd.f32 %v4645_v42, %v2790_v28  ;;  %2971 = vmax.xlane.f32.xlu1 %v2970_v17  ;;  %v4660_v17 = vld [vmem:[#allocation3 + $0xa0] sm:$0xff]  ;;  %v4661_v28 = vld [vmem:[#allocation3 + $0xa8] sm:$0xff] }
 0xc97   : > { %v2973_v48 = vmax.f32 %v6328_v25, %v6330_v39  ;;  %v2794_v31 = vpop.f32.mrb[76].mxu1 }
 0xc98   : > { %v6334_v58 = vadd.f32 %v4646_v59, %v2794_v31  ;;  %v2796_v26 = vpop.f32.mrb[77].mxu1  ;;  %v4662_v59 = vld [vmem:[#allocation3 + $0xb0] sm:$0xff] }
 0xc99   : > { %v6336_v43 = vadd.f32 %v4647_v7, %v2796_v26  ;;  %2974 = vmax.xlane.f32.xlu0 %v2973_v48 }
 0xc9b   : > { %v2976_v8 = vmax.f32 %v6334_v58, %v6336_v43  ;;  %v2800_v52 = vpop.f32.mrb[78].mxu1 }
 0xc9c   : > { %v6340_v41 = vadd.f32 %v4648_v19, %v2800_v52  ;;  %v2802_v24 = vpop.f32.mrb[79].mxu1 }
 0xc9d   : > { %v6342_v61 = vadd.f32 %v4649_v51, %v2802_v24  ;;  %2977 = vmax.xlane.f32.xlu1 %v2976_v8  ;;  %v4663_v8 = vld [vmem:[#allocation3 + $0xb8] sm:$0xff]  ;;  %v4664_v51 = vld [vmem:[#allocation3 + $0xc0] sm:$0xff] }
 0xc9f   : > { %v2979_v60 = vmax.f32 %v6340_v41, %v6342_v61  ;;  %v2806_v9 = vpop.f32.mrb[80].mxu1 }
 0xca0   : > { %v6346_v33 = vadd.f32 %v4650_v6, %v2806_v9  ;;  %v2808_v27 = vpop.f32.mrb[81].mxu1  ;;  %v4665_v6 = vld [vmem:[#allocation3 + $0xc8] sm:$0xff] }
 0xca1   : > { %v6348_v30 = vadd.f32 %v4651_v45, %v2808_v27  ;;  %2980 = vmax.xlane.f32.xlu0 %v2979_v60 }
 0xca3   : > { %v2982_v11 = vmax.f32 %v6346_v33, %v6348_v30  ;;  %v2812_v3 = vpop.f32.mrb[82].mxu1 }
 0xca4   : > { %v6352_v37 = vadd.f32 %v4652_v38, %v2812_v3  ;;  %v2814_v14 = vpop.f32.mrb[83].mxu1  ;;  %v4666_v3 = vld [vmem:[#allocation3 + $0xd0] sm:$0xff] }
 0xca5   : > { %v6354_v46 = vadd.f32 %v4653_v57, %v2814_v14  ;;  %2983 = vmax.xlane.f32.xlu1 %v2982_v11  ;;  %v4667_v57 = vld [vmem:[#allocation3 + $0xd8] sm:$0xff] }
 0xca7   : > { %v2985_v47 = vmax.f32 %v6352_v37, %v6354_v46  ;;  %v2818_v12 = vpop.f32.mrb[84].mxu1 }
 0xca8   : > { %v6358_v0 = vadd.f32 %v4654_v44, %v2818_v12  ;;  %v2820_v50 = vpop.f32.mrb[85].mxu1 }
 0xca9   : > { %v6360_v62 = vadd.f32 %v4655_v36, %v2820_v50  ;;  %2986 = vmax.xlane.f32.xlu0 %v2985_v47  ;;  %v4668_v50 = vld [vmem:[#allocation3 + $0xe0] sm:$0xff] }
 0xcab   : > { %v2988_v16 = vmax.f32 %v6358_v0, %v6360_v62  ;;  %v2824_v2 = vpop.f32.mrb[86].mxu1 }
 0xcac   : > { %v6364_v13 = vadd.f32 %v4656_v20, %v2824_v2  ;;  %v2826_v40 = vpop.f32.mrb[87].mxu1  ;;  %v4669_v2 = vld [vmem:[#allocation3 + $0xe8] sm:$0xff] }
 0xcad   : > { %v6366_v5 = vadd.f32 %v4657_v22, %v2826_v40  ;;  %2989 = vmax.xlane.f32.xlu1 %v2988_v16 }
 0xcaf   : > { %v2991_v53 = vmax.f32 %v6364_v13, %v6366_v5  ;;  %v2830_v1 = vpop.f32.mrb[88].mxu1 }
 0xcb0   : > { %v6370_v4 = vadd.f32 %v4658_v29, %v2830_v1  ;;  %v2832_v23 = vpop.f32.mrb[89].mxu1 }
 0xcb1   : > { %v6372_v18 = vadd.f32 %v4659_v34, %v2832_v23  ;;  %2992 = vmax.xlane.f32.xlu0 %v2991_v53  ;;  %v4670_v53 = vld [vmem:[#allocation3 + $0xf0] sm:$0xff]  ;;  %v4671_v23 = vld [vmem:[#allocation3 + $0xf8] sm:$0xff] }
 0xcb3   : > { %v2994_v10 = vmax.f32 %v6370_v4, %v6372_v18  ;;  %v2836_v21 = vpop.f32.mrb[90].mxu1 }
 0xcb4   : > { %v6376_v56 = vadd.f32 %v4660_v17, %v2836_v21  ;;  %v2838_v15 = vpop.f32.mrb[91].mxu1  ;;  %v4672_v17 = vld [vmem:[#allocation3 + $0x100] sm:$0xff] }
 0xcb5   : > { %v6378_v42 = vadd.f32 %v4661_v28, %v2838_v15  ;;  %2995 = vmax.xlane.f32.xlu1 %v2994_v10 }
 0xcb7   : > { %v2997_v48 = vmax.f32 %v6376_v56, %v6378_v42  ;;  %v2842_v31 = vpop.f32.mrb[92].mxu1 }
 0xcb8   : > { %v6382_v26 = vadd.f32 %v4662_v59, %v2842_v31  ;;  %v2844_v7 = vpop.f32.mrb[93].mxu1 }
 0xcb9   : > { %v6384_v52 = vadd.f32 %v4663_v8, %v2844_v7  ;;  %2998 = vmax.xlane.f32.xlu0 %v2997_v48  ;;  %v4673_v48 = vld [vmem:[#allocation3 + $0x108] sm:$0xff]  ;;  %v4674_v8 = vld [vmem:[#allocation3 + $0x110] sm:$0xff] }
 0xcbb   : > { %v3000_v19 = vmax.f32 %v6382_v26, %v6384_v52  ;;  %v2848_v24 = vpop.f32.mrb[94].mxu1 }
 0xcbc   : > { %v6388_v60 = vadd.f32 %v4664_v51, %v2848_v24  ;;  %v2850_v9 = vpop.f32.mrb[95].mxu1  ;;  %v4675_v51 = vld [vmem:[#allocation3 + $0x118] sm:$0xff] }
 0xcbd   : > { %v6390_v27 = vadd.f32 %v4665_v6, %v2850_v9  ;;  %3001 = vmax.xlane.f32.xlu1 %v3000_v19 }
 0xcbf   : > { %v3003_v45 = vmax.f32 %v6388_v60, %v6390_v27  ;;  %v2854_v11 = vpop.f32.mrb[96].mxu1 }
 0xcc0   : > { %v6394_v38 = vadd.f32 %v4666_v3, %v2854_v11  ;;  %v2856_v14 = vpop.f32.mrb[97].mxu1  ;;  %v4676_v11 = vld [vmem:[#allocation3 + $0x120] sm:$0xff] }
 0xcc1   : > { %v6396_v47 = vadd.f32 %v4667_v57, %v2856_v14  ;;  %3004 = vmax.xlane.f32.xlu0 %v3003_v45  ;;  %v4677_v57 = vld [vmem:[#allocation3 + $0x128] sm:$0xff] }
 0xcc3   : > { %v3006_v12 = vmax.f32 %v6394_v38, %v6396_v47  ;;  %v2860_v44 = vpop.f32.mrb[98].mxu1 }
 0xcc4   : > { %v6400_v36 = vadd.f32 %v4668_v50, %v2860_v44  ;;  %v2862_v16 = vpop.f32.mrb[99].mxu1 }
 0xcc5   : > { %v6402_v20 = vadd.f32 %v4669_v2, %v2862_v16  ;;  %3007 = vmax.xlane.f32.xlu1 %v3006_v12  ;;  %v4678_v16 = vld [vmem:[#allocation3 + $0x130] sm:$0xff] }
 0xcc7   : > { %v3009_v40 = vmax.f32 %v6400_v36, %v6402_v20  ;;  %v2866_v22 = vpop.f32.mrb[100].mxu1 }
 0xcc8   : > { %v6406_v1 = vadd.f32 %v4670_v53, %v2866_v22  ;;  %v2868_v29 = vpop.f32.mrb[101].mxu1  ;;  %v4679_v22 = vld [vmem:[#allocation3 + $0x138] sm:$0xff] }
 0xcc9   : > { %v6408_v34 = vadd.f32 %v4671_v23, %v2868_v29  ;;  %3010 = vmax.xlane.f32.xlu0 %v3009_v40 }
 0xccb   : > { %v3012_v10 = vmax.f32 %v6406_v1, %v6408_v34  ;;  %v2872_v21 = vpop.f32.mrb[102].mxu1 }
 0xccc   : > { %v6412_v15 = vadd.f32 %v4672_v17, %v2872_v21  ;;  %v2874_v28 = vpop.f32.mrb[103].mxu1 }
 0xccd   : > { %v6414_v31 = vadd.f32 %v4673_v48, %v2874_v28  ;;  %3013 = vmax.xlane.f32.xlu1 %v3012_v10  ;;  %v4680_v10 = vld [vmem:[#allocation3 + $0x140] sm:$0xff]  ;;  %v4681_v28 = vld [vmem:[#allocation3 + $0x148] sm:$0xff] }
 0xccf   : > { %v3015_v59 = vmax.f32 %v6412_v15, %v6414_v31  ;;  %v2878_v7 = vpop.f32.mrb[104].mxu1 }
 0xcd0   : > { %v6418_v19 = vadd.f32 %v4674_v8, %v2878_v7  ;;  %v2880_v24 = vpop.f32.mrb[105].mxu1  ;;  %v4682_v8 = vld [vmem:[#allocation3 + $0x150] sm:$0xff] }
 0xcd1   : > { %v6420_v9 = vadd.f32 %v4675_v51, %v2880_v24  ;;  %3016 = vmax.xlane.f32.xlu0 %v3015_v59 }
 0xcd3   : > { %7150 = vst [vmem:[#allocation17_spill] sm:$0xff] %v6420_v9  ;;  %v3018_v6 = vmax.f32 %v6418_v19, %v6420_v9  ;;  %v2884_v45 = vpop.f32.mrb[106].mxu1 }
 0xcd4   : > { %v6424_v3 = vadd.f32 %v4676_v11, %v2884_v45  ;;  %v2886_v14 = vpop.f32.mrb[107].mxu1 }
 0xcd5   : > { %v6426_v12 = vadd.f32 %v4677_v57, %v2886_v14  ;;  %3019 = vmax.xlane.f32.xlu1 %v3018_v6  ;;  %v4683_v6 = vld [vmem:[#allocation3 + $0x158] sm:$0xff]  ;;  %v4684_v57 = vld [vmem:[#allocation3 + $0x160] sm:$0xff] }
 0xcd6   : > { %7151 = vst [vmem:[#allocation19_spill] sm:$0xff] %v6424_v3 }
 0xcd7   : > { %7152 = vst [vmem:[#allocation20_spill] sm:$0xff] %v6426_v12  ;;  %v3021_v44 = vmax.f32 %v6424_v3, %v6426_v12  ;;  %v2890_v50 = vpop.f32.mrb[108].mxu1 }
 0xcd8   : > { %v6430_v2 = vadd.f32 %v4678_v16, %v2890_v50  ;;  %v2892_v40 = vpop.f32.mrb[109].mxu1  ;;  %v4685_v16 = vld [vmem:[#allocation3 + $0x168] sm:$0xff] }
 0xcd9   : > { %v6432_v53 = vadd.f32 %v4679_v22, %v2892_v40  ;;  %3022 = vmax.xlane.f32.xlu0 %v3021_v44 }
 0xcda   : > { %7153 = vst [vmem:[#allocation21_spill] sm:$0xff] %v6430_v2 }
 0xcdb   : > { %7154 = vst [vmem:[#allocation14_spill] sm:$0xff] %v6432_v53  ;;  %v3024_v29 = vmax.f32 %v6430_v2, %v6432_v53  ;;  %v2896_v23 = vpop.f32.mrb[110].mxu1 }
 0xcdc   : > { %v6436_v21 = vadd.f32 %v4680_v10, %v2896_v23  ;;  %v2898_v17 = vpop.f32.mrb[111].mxu1  ;;  %v4686_v23 = vld [vmem:[#allocation3 + $0x170] sm:$0xff] }
 0xcdd   : > { %v6438_v48 = vadd.f32 %v4681_v28, %v2898_v17  ;;  %3025 = vmax.xlane.f32.xlu1 %v3024_v29  ;;  %v4687_v28 = vld [vmem:[#allocation3 + $0x178] sm:$0xff] }
 0xcde   : > { %7155 = vst [vmem:[#allocation23_spill] sm:$0xff] %v6436_v21 }
 0xcdf   : > { %7156 = vst [vmem:[#allocation24_spill] sm:$0xff] %v6438_v48  ;;  %v3027_v59 = vmax.f32 %v6436_v21, %v6438_v48  ;;  %v2902_v7 = vpop.f32.mrb[112].mxu1 }
 0xce0   : > { %v6442_v24 = vadd.f32 %v4682_v8, %v2902_v7  ;;  %v2904_v51 = vpop.f32.mrb[113].mxu1 }
 0xce1   : > { %v6444_v45 = vadd.f32 %v4683_v6, %v2904_v51  ;;  %3028 = vmax.xlane.f32.xlu0 %v3027_v59 }
 0xce2   : > { %7157 = vst [vmem:[#allocation25_spill] sm:$0xff] %v6442_v24 }
 0xce3   : > { %7158 = vst [vmem:[#allocation18_spill] sm:$0xff] %v6444_v45  ;;  %v3030_v11 = vmax.f32 %v6442_v24, %v6444_v45  ;;  %v2908_v14 = vpop.f32.mrb[114].mxu1 }
 0xce4   : > { %v6448_v44 = vadd.f32 %v4684_v57, %v2908_v14  ;;  %v2910_v50 = vpop.f32.mrb[115].mxu1 }
 0xce5   : > { %v6450_v40 = vadd.f32 %v4685_v16, %v2910_v50  ;;  %3031 = vmax.xlane.f32.xlu1 %v3030_v11 }
 0xce6   : > { %7159 = vst [vmem:[#allocation10_spill] sm:$0xff] %v6448_v44 }
 0xce7   : > { %7160 = vst [vmem:[#allocation26_spill] sm:$0xff] %v6450_v40  ;;  %v3033_v22 = vmax.f32 %v6448_v44, %v6450_v40  ;;  %v2914_v29 = vpop.f32.mrb[116].mxu1 }
 0xce8   : > { %v6454_v10 = vadd.f32 %v4686_v23, %v2914_v29  ;;  %v2916_v17 = vpop.f32.mrb[117].mxu1 }
 0xce9   : > { %v6456_v59 = vadd.f32 %v4687_v28, %v2916_v17  ;;  %3034 = vmax.xlane.f32.xlu0 %v3033_v22 }
 0xcea   : > { %7161 = vst [vmem:[#allocation11_spill] sm:$0xff] %v6454_v10 }
 0xceb   : > { %7162 = vst [vmem:[#allocation22_spill] sm:$0xff] %v6456_v59  ;;  %v3036_v7 = vmax.f32 %v6454_v10, %v6456_v59  ;;  %v2920_v8 = vpop.f32.mrb[118].mxu1 }
 0xcec   : > { %v2922_v51 = vpop.f32.mrb[119].mxu1 }
 0xced   : > { %3037 = vmax.xlane.f32.xlu1 %v3036_v7 }
 0xcef   : > { %v2926_v6 = vpop.f32.mrb[120].mxu1 }
 0xcf0   : > { %v2928_v11 = vpop.f32.mrb[121].mxu1 }
 0xcf3   : > { %v6460_v14 = vpop.f32.mrb[122].mxu1 }
 0xcf4   : > { %v6462_v57 = vpop.f32.mrb[123].mxu1 }
 0xcf7   : > { %v6464_v50 = vpop.f32.mrb[124].mxu1 }
 0xcf8   : > { %v6466_v16 = vpop.f32.mrb[125].mxu1 }
 0xcfb   : > { %v6468_v29 = vpop.f32.mrb[126].mxu1 }
 0xcfc   : > { %v6470_v23 = vpop.f32.mrb[127].mxu1 }
 0xcff   : > { %v6472_v22 = vpop.f32.mrb[128].mxu1 }
 0xd00   : > { %v6474_v17 = vpop.f32.mrb[129].mxu1 }
 0xd03   : > { %v6476_v28 = vpop.f32.mrb[130].mxu1 }
 0xd04   : > { %v6478_v7 = vpop.f32.mrb[131].mxu1 }
 0xd07   : > { %v6480_v35 = vpop.f32.mrb[132].mxu1 }
 0xd08   : > { %v6482_v55 = vpop.f32.mrb[133].mxu1 }
 0xd1e   : > { %v2969_v59 = vpop.xlane.xlu0 %2968 }
 0xd1f   : > { %v3063_v10 = vsub.f32 %v6316_v63, %v2969_v59  ;;  %v3064_v40 = vsub.f32 %v6318_v54, %v2969_v59 }
 0xd21   : > { %v3127_v44 = vmul.f32 1.442695, %v3063_v10  ;;  %v3129_v45 = vmul.f32 1.442695, %v3064_v40 }
 0xd22   : > { %v2972_v24 = vpop.xlane.xlu1 %2971 }
 0xd23   : > { %4376 = vpow2.f32 %v3127_v44  ;;  %v3065_v48 = vsub.f32 %v6322_v32, %v2972_v24  ;;  %v3066_v21 = vsub.f32 %v6324_v49, %v2972_v24  ;;  %v4688_v49 = vld [vmem:[#allocation3 + $0x180] sm:$0xff] }
 0xd24   : > { %4378 = vpow2.f32 %v3129_v45  ;;  %v6492_v24 = vadd.f32 %v4688_v49, %v2920_v8  ;;  %v4690_v8 = vld [vmem:[#allocation3 + $0x190] sm:$0xff]  ;;  %v4692_v49 = vld [vmem:[#allocation3 + $0x1a0] sm:$0xff] }
 0xd25   : > { %v3131_v53 = vmul.f32 1.442695, %v3065_v48  ;;  %v3133_v2 = vmul.f32 1.442695, %v3066_v21  ;;  %v4689_v21 = vld [vmem:[#allocation3 + $0x188] sm:$0xff] }
 0xd26   : > { %v2975_v12 = vpop.xlane.xlu0 %2974  ;;  %v6494_v48 = vadd.f32 %v4689_v21, %v2922_v51  ;;  %v6508_v51 = vadd.f32 %v4690_v8, %v2926_v6  ;;  %v6519_v21 = vadd.f32 %v4692_v49, %v6460_v14  ;;  %v4693_v6 = vld [vmem:[#allocation3 + $0x1a8] sm:$0xff] }
 0xd27   : > { %4380 = vpow2.f32 %v3131_v53  ;;  %v3067_v3 = vsub.f32 %v6328_v25, %v2975_v12  ;;  %v3068_v9 = vsub.f32 %v6330_v39, %v2975_v12 }
 0xd28   : > { %4382 = vpow2.f32 %v3133_v2  ;;  %v3039_v2 = vmax.f32 %v6492_v24, %v6494_v48 }
 0xd29   : > { %v3135_v63 = vmul.f32 1.442695, %v3067_v3  ;;  %v3137_v54 = vmul.f32 1.442695, %v3068_v9 }
 0xd2a   : > { %v2978_v10 = vpop.xlane.xlu1 %2977 }
 0xd2b   : > { %4384 = vpow2.f32 %v3135_v63  ;;  %v3069_v44 = vsub.f32 %v6334_v58, %v2978_v10  ;;  %v3070_v32 = vsub.f32 %v6336_v43, %v2978_v10  ;;  %v4691_v63 = vld [vmem:[#allocation3 + $0x198] sm:$0xff] }
 0xd2c   : > { %4386 = vpow2.f32 %v3137_v54  ;;  %v6510_v54 = vadd.f32 %v4691_v63, %v2928_v11  ;;  %v6522_v11 = vadd.f32 %v4693_v6, %v6462_v57  ;;  %v4696_v6 = vld [vmem:[#allocation3 + $0x1c0] sm:$0xff] }
 0xd2d   : > { %v6496_v53 = vpop.eup %4376  ;;  %v3139_v25 = vmul.f32 1.442695, %v3069_v44  ;;  %v3141_v39 = vmul.f32 1.442695, %v3070_v32 }
 0xd2e   : > { %v6498_v12 = vpop.eup %4378  ;;  %v2981_v9 = vpop.xlane.xlu0 %2980 }
 0xd2f   : > { %4388 = vpow2.f32 %v3139_v25  ;;  %v3071_v3 = vsub.f32 %v6340_v41, %v2981_v9  ;;  %v3072_v58 = vsub.f32 %v6342_v61, %v2981_v9  ;;  %v3255_v43 = vadd.f32 %v6498_v12, %v6496_v53 }
 0xd30   : > { %4390 = vpow2.f32 %v3141_v39 }
 0xd31   : > { %v6506_v45 = vpop.eup %4380  ;;  %v3143_v40 = vmul.f32 1.442695, %v3071_v3  ;;  %v3145_v59 = vmul.f32 1.442695, %v3072_v58  ;;  %3256 = vadd.xlane.f32.xlu0 %v3255_v43  ;;  %v3045_v43 = vmax.f32 %v6519_v21, %v6522_v11 }
 0xd32   : > { %v6512_v41 = vpop.eup %4382  ;;  %v2984_v61 = vpop.xlane.xlu1 %2983 }
 0xd33   : > { %4392 = vpow2.f32 %v3143_v40  ;;  %v3073_v10 = vsub.f32 %v6346_v33, %v2984_v61  ;;  %v3074_v44 = vsub.f32 %v6348_v30, %v2984_v61  ;;  %v3258_v32 = vadd.f32 %v6512_v41, %v6506_v45 }
 0xd34   : > { %4394 = vpow2.f32 %v3145_v59  ;;  %v3042_v33 = vmax.f32 %v6508_v51, %v6510_v54 }
 0xd35   : > { %v6524_v25 = vpop.eup %4384  ;;  %v3147_v39 = vmul.f32 1.442695, %v3073_v10  ;;  %v3149_v9 = vmul.f32 1.442695, %v3074_v44  ;;  %3259 = vadd.xlane.f32.xlu1 %v3258_v32  ;;  %3040 = vmax.xlane.f32.xlu0 %v3039_v2  ;;  %v4694_v2 = vld [vmem:[#allocation3 + $0x1b0] sm:$0xff] }
 0xd36   : > { %v6528_v30 = vpop.eup %4386  ;;  %v2987_v3 = vpop.xlane.xlu0 %2986  ;;  %v6539_v63 = vadd.f32 %v4694_v2, %v6464_v50  ;;  %v6551_v50 = vadd.f32 %v4696_v6, %v6468_v29 }
 0xd37   : > { %4396 = vpow2.f32 %v3147_v39  ;;  %v3075_v14 = vsub.f32 %v6352_v37, %v2987_v3  ;;  %v3076_v58 = vsub.f32 %v6354_v46, %v2987_v3  ;;  %v3261_v57 = vadd.f32 %v6528_v30, %v6524_v25  ;;  %v4695_v37 = vld [vmem:[#allocation3 + $0x1b8] sm:$0xff]  ;;  %v4697_v39 = vld [vmem:[#allocation3 + $0x1c8] sm:$0xff] }
 0xd38   : > { %4398 = vpow2.f32 %v3149_v9  ;;  %v6542_v46 = vadd.f32 %v4695_v37, %v6466_v16  ;;  %v6554_v16 = vadd.f32 %v4697_v39, %v6470_v23  ;;  %v4700_v39 = vld [vmem:[#allocation3 + $0x1e0] sm:$0xff] }
 0xd39   : > { %v6536_v40 = vpop.eup %4388  ;;  %v3151_v59 = vmul.f32 1.442695, %v3075_v14  ;;  %v3153_v8 = vmul.f32 1.442695, %v3076_v58  ;;  %3043 = vmax.xlane.f32.xlu1 %v3042_v33  ;;  %3262 = vadd.xlane.f32.xlu0 %v3261_v57 }
 0xd3a   : > { %v6544_v61 = vpop.eup %4390  ;;  %v2990_v10 = vpop.xlane.xlu1 %2989  ;;  %v3051_v57 = vmax.f32 %v6551_v50, %v6554_v16 }
 0xd3b   : > { %4400 = vpow2.f32 %v3151_v59  ;;  %v3077_v44 = vsub.f32 %v6358_v0, %v2990_v10  ;;  %v3078_v32 = vsub.f32 %v6360_v62, %v2990_v10  ;;  %v3264_v49 = vadd.f32 %v6544_v61, %v6536_v40 }
 0xd3c   : > { %4402 = vpow2.f32 %v3153_v8  ;;  %v3048_v0 = vmax.f32 %v6539_v63, %v6542_v46 }
 0xd3d   : > { %v6556_v9 = vpop.eup %4392  ;;  %v3155_v33 = vmul.f32 1.442695, %v3077_v44  ;;  %v3157_v3 = vmul.f32 1.442695, %v3078_v32  ;;  %3265 = vadd.xlane.f32.xlu1 %v3264_v49  ;;  %3046 = vmax.xlane.f32.xlu0 %v3045_v43  ;;  %v4698_v43 = vld [vmem:[#allocation3 + $0x1d0] sm:$0xff] }
 0xd3e   : > { %v6560_v62 = vpop.eup %4394  ;;  %v2993_v14 = vpop.xlane.xlu0 %2992  ;;  %v6571_v37 = vadd.f32 %v4698_v43, %v6472_v22  ;;  %v6583_v22 = vadd.f32 %v4700_v39, %v6476_v28 }
 0xd3f   : > { %4404 = vpow2.f32 %v3155_v33  ;;  %v3079_v29 = vsub.f32 %v6364_v13, %v2993_v14  ;;  %v3080_v58 = vsub.f32 %v6366_v5, %v2993_v14  ;;  %v3267_v23 = vadd.f32 %v6560_v62, %v6556_v9  ;;  %v4699_v13 = vld [vmem:[#allocation3 + $0x1d8] sm:$0xff]  ;;  %v4701_v33 = vld [vmem:[#allocation3 + $0x1e8] sm:$0xff] }
 0xd40   : > { %4406 = vpow2.f32 %v3157_v3  ;;  %v6574_v5 = vadd.f32 %v4699_v13, %v6474_v17  ;;  %v6586_v17 = vadd.f32 %v4701_v33, %v6478_v7 }
 0xd41   : > { %v6568_v59 = vpop.eup %4396  ;;  %v3159_v8 = vmul.f32 1.442695, %v3079_v29  ;;  %v3161_v2 = vmul.f32 1.442695, %v3080_v58  ;;  %3049 = vmax.xlane.f32.xlu1 %v3048_v0  ;;  %3268 = vadd.xlane.f32.xlu0 %v3267_v23 }
 0xd42   : > { %v6576_v10 = vpop.eup %4398  ;;  %v2996_v44 = vpop.xlane.xlu1 %2995  ;;  %v3057_v23 = vmax.f32 %v6583_v22, %v6586_v17 }
 0xd43   : > { %4408 = vpow2.f32 %v3159_v8  ;;  %v3081_v32 = vsub.f32 %v6370_v4, %v2996_v44  ;;  %v3082_v49 = vsub.f32 %v6372_v18, %v2996_v44  ;;  %v3270_v6 = vadd.f32 %v6576_v10, %v6568_v59 }
 0xd44   : > { %4410 = vpow2.f32 %v3161_v2  ;;  %v3054_v4 = vmax.f32 %v6571_v37, %v6574_v5 }
 0xd45   : > { %v6588_v3 = vpop.eup %4400  ;;  %v3163_v0 = vmul.f32 1.442695, %v3081_v32  ;;  %v3165_v14 = vmul.f32 1.442695, %v3082_v49  ;;  %3271 = vadd.xlane.f32.xlu1 %v3270_v6  ;;  %3052 = vmax.xlane.f32.xlu0 %v3051_v57  ;;  %v4702_v57 = vld [vmem:[#allocation3 + $0x1f0] sm:$0xff] }
 0xd46   : > { %v6592_v18 = vpop.eup %4402  ;;  %v2999_v29 = vpop.xlane.xlu0 %2998  ;;  %v6603_v13 = vadd.f32 %v4702_v57, %v6480_v35 }
 0xd47   : > { %4412 = vpow2.f32 %v3163_v0  ;;  %v3083_v28 = vsub.f32 %v6376_v56, %v2999_v29  ;;  %v3084_v58 = vsub.f32 %v6378_v42, %v2999_v29  ;;  %v3273_v7 = vadd.f32 %v6592_v18, %v6588_v3  ;;  %v4703_v56 = vld [vmem:[#allocation3 + $0x1f8] sm:$0xff] }
 0xd48   : > { %4414 = vpow2.f32 %v3165_v14  ;;  %v6606_v42 = vadd.f32 %v4703_v56, %v6482_v55 }
 0xd49   : > { %v6600_v8 = vpop.eup %4404  ;;  %v3167_v2 = vmul.f32 1.442695, %v3083_v28  ;;  %v3169_v43 = vmul.f32 1.442695, %v3084_v58  ;;  %3055 = vmax.xlane.f32.xlu1 %v3054_v4  ;;  %3274 = vadd.xlane.f32.xlu0 %v3273_v7 }
 0xd4a   : > { %v6608_v44 = vpop.eup %4406  ;;  %v3002_v32 = vpop.xlane.xlu1 %3001  ;;  %v3060_v55 = vmax.f32 %v6603_v13, %v6606_v42 }
 0xd4b   : > { %4416 = vpow2.f32 %v3167_v2  ;;  %v3085_v49 = vsub.f32 %v6382_v26, %v3002_v32  ;;  %v3086_v6 = vsub.f32 %v6384_v52, %v3002_v32  ;;  %v3276_v39 = vadd.f32 %v6608_v44, %v6600_v8 }
 0xd4c   : > { %4418 = vpow2.f32 %v3169_v43 }
 0xd4d   : > { %v6614_v33 = vpop.eup %4408  ;;  %v3171_v35 = vmul.f32 1.442695, %v3085_v49  ;;  %v3173_v0 = vmul.f32 1.442695, %v3086_v6  ;;  %3277 = vadd.xlane.f32.xlu1 %v3276_v39  ;;  %3058 = vmax.xlane.f32.xlu0 %v3057_v23 }
 0xd4e   : > { %v6618_v14 = vpop.eup %4410  ;;  %v3005_v4 = vpop.xlane.xlu0 %3004 }
 0xd4f   : > { %4420 = vpow2.f32 %v3171_v35  ;;  %v3087_v26 = vsub.f32 %v6388_v60, %v3005_v4  ;;  %v3088_v52 = vsub.f32 %v6390_v27, %v3005_v4  ;;  %v3279_v29 = vadd.f32 %v6618_v14, %v6614_v33 }
 0xd50   : > { %4422 = vpow2.f32 %v3173_v0 }
 0xd51   : > { %v6624_v28 = vpop.eup %4412  ;;  %v3175_v58 = vmul.f32 1.442695, %v3087_v26  ;;  %v3177_v7 = vmul.f32 1.442695, %v3088_v52  ;;  %3061 = vmax.xlane.f32.xlu1 %v3060_v55  ;;  %3280 = vadd.xlane.f32.xlu0 %v3279_v29 }
 0xd52   : > { %v6626_v2 = vpop.eup %4414  ;;  %v3008_v23 = vpop.xlane.xlu1 %3007 }
 0xd53   : > { %4424 = vpow2.f32 %v3175_v58  ;;  %v3089_v43 = vsub.f32 %v6394_v38, %v3008_v23  ;;  %v3090_v60 = vsub.f32 %v6396_v47, %v3008_v23  ;;  %v3282_v27 = vadd.f32 %v6626_v2, %v6624_v28 }
 0xd54   : > { %4426 = vpow2.f32 %v3177_v7 }
 0xd55   : > { %v6632_v57 = vpop.eup %4416  ;;  %v3179_v56 = vmul.f32 1.442695, %v3089_v43  ;;  %v3181_v32 = vmul.f32 1.442695, %v3090_v60  ;;  %3283 = vadd.xlane.f32.xlu1 %v3282_v27 }
 0xd56   : > { %v6634_v49 = vpop.eup %4418  ;;  %v3011_v6 = vpop.xlane.xlu0 %3010 }
 0xd57   : > { %4428 = vpow2.f32 %v3179_v56  ;;  %v3091_v39 = vsub.f32 %v6400_v36, %v3011_v6  ;;  %v3092_v35 = vsub.f32 %v6402_v20, %v3011_v6  ;;  %v3285_v38 = vadd.f32 %v6634_v49, %v6632_v57 }
 0xd58   : > { %4430 = vpow2.f32 %v3181_v32 }
 0xd59   : > { %v6640_v47 = vpop.eup %4420  ;;  %v3183_v0 = vmul.f32 1.442695, %v3091_v39  ;;  %v3185_v55 = vmul.f32 1.442695, %v3092_v35  ;;  %3286 = vadd.xlane.f32.xlu0 %v3285_v38  ;;  %v7163_v38 = vld [vmem:[#allocation17_spill] sm:$0xff] }
 0xd5a   : > { %v6642_v4 = vpop.eup %4422  ;;  %v3014_v26 = vpop.xlane.xlu1 %3013 }
 0xd5b   : > { %4432 = vpow2.f32 %v3183_v0  ;;  %v3093_v52 = vsub.f32 %v6406_v1, %v3014_v26  ;;  %v3094_v29 = vsub.f32 %v6408_v34, %v3014_v26  ;;  %v3288_v36 = vadd.f32 %v6642_v4, %v6640_v47 }
 0xd5c   : > { %4434 = vpow2.f32 %v3185_v55 }
 0xd5d   : > { %v6648_v20 = vpop.eup %4424  ;;  %v3187_v58 = vmul.f32 1.442695, %v3093_v52  ;;  %v3189_v7 = vmul.f32 1.442695, %v3094_v29  ;;  %3289 = vadd.xlane.f32.xlu1 %v3288_v36  ;;  %v7165_v36 = vld [vmem:[#allocation19_spill] sm:$0xff] }
 0xd5e   : > { %v6650_v23 = vpop.eup %4426  ;;  %v3017_v43 = vpop.xlane.xlu0 %3016 }
 0xd5f   : > { %4436 = vpow2.f32 %v3187_v58  ;;  %v3095_v60 = vsub.f32 %v6412_v15, %v3017_v43  ;;  %v3096_v27 = vsub.f32 %v6414_v31, %v3017_v43  ;;  %v3291_v1 = vadd.f32 %v6650_v23, %v6648_v20 }
 0xd60   : > { %4438 = vpow2.f32 %v3189_v7  ;;  %v7166_v7 = vld [vmem:[#allocation20_spill] sm:$0xff] }
 0xd61   : > { %v6656_v34 = vpop.eup %4428  ;;  %v3191_v56 = vmul.f32 1.442695, %v3095_v60  ;;  %v3193_v32 = vmul.f32 1.442695, %v3096_v27  ;;  %3292 = vadd.xlane.f32.xlu0 %v3291_v1 }
 0xd62   : > { %v6658_v6 = vpop.eup %4430  ;;  %v3020_v39 = vpop.xlane.xlu1 %3019 }
 0xd63   : > { %4440 = vpow2.f32 %v3191_v56  ;;  %v3097_v35 = vsub.f32 %v6418_v19, %v3020_v39  ;;  %v3098_v0 = vsub.f32 %v7163_v38, %v3020_v39  ;;  %v3294_v15 = vadd.f32 %v6658_v6, %v6656_v34  ;;  %v7168_v39 = vld [vmem:[#allocation21_spill] sm:$0xff]  ;;  %v7169_v38 = vld [vmem:[#allocation14_spill] sm:$0xff] }
 0xd64   : > { %4442 = vpow2.f32 %v3193_v32 }
 0xd65   : > { %v6664_v31 = vpop.eup %4432  ;;  %v3195_v55 = vmul.f32 1.442695, %v3097_v35  ;;  %v3197_v26 = vmul.f32 1.442695, %v3098_v0  ;;  %3295 = vadd.xlane.f32.xlu1 %v3294_v15 }
 0xd66   : > { %7164 = vst [vmem:[#allocation15_spill] sm:$0xff] %v6664_v31  ;;  %v6666_v52 = vpop.eup %4434  ;;  %v3023_v29 = vpop.xlane.xlu0 %3022 }
 0xd67   : > { %4444 = vpow2.f32 %v3195_v55  ;;  %v3099_v58 = vsub.f32 %v7165_v36, %v3023_v29  ;;  %v3100_v43 = vsub.f32 %v7166_v7, %v3023_v29  ;;  %v3297_v19 = vadd.f32 %v6666_v52, %v6664_v31  ;;  %v7172_v7 = vld [vmem:[#allocation23_spill] sm:$0xff] }
 0xd68   : > { %4446 = vpow2.f32 %v3197_v26 }
 0xd69   : > { %v6672_v60 = vpop.eup %4436  ;;  %v3199_v27 = vmul.f32 1.442695, %v3099_v58  ;;  %v3201_v1 = vmul.f32 1.442695, %v3100_v43  ;;  %3298 = vadd.xlane.f32.xlu0 %v3297_v19  ;;  %v7173_v19 = vld [vmem:[#allocation24_spill] sm:$0xff] }
 0xd6a   : > { %7167 = vst [vmem:[#allocation9_spill] sm:$0xff] %v6672_v60  ;;  %v6674_v56 = vpop.eup %4438  ;;  %v3026_v32 = vpop.xlane.xlu1 %3025 }
 0xd6b   : > { %4448 = vpow2.f32 %v3199_v27  ;;  %v3101_v35 = vsub.f32 %v7168_v39, %v3026_v32  ;;  %v3102_v0 = vsub.f32 %v7169_v38, %v3026_v32  ;;  %v3300_v15 = vadd.f32 %v6674_v56, %v6672_v60 }
 0xd6c   : > { %4450 = vpow2.f32 %v3201_v1 }
 0xd6d   : > { %v6680_v55 = vpop.eup %4440  ;;  %v3203_v26 = vmul.f32 1.442695, %v3101_v35  ;;  %v3205_v29 = vmul.f32 1.442695, %v3102_v0  ;;  %3301 = vadd.xlane.f32.xlu1 %v3300_v15  ;;  %v7176_v15 = vld [vmem:[#allocation25_spill] sm:$0xff] }
 0xd6e   : > { %7170 = vst [vmem:[#allocation13_spill] sm:$0xff] %v6680_v55  ;;  %v6682_v36 = vpop.eup %4442  ;;  %v3029_v58 = vpop.xlane.xlu0 %3028 }
 0xd6f   : > { %7171 = vst [vmem:[#allocation17_spill] sm:$0xff] %v6682_v36  ;;  %4452 = vpow2.f32 %v3203_v26  ;;  %v3103_v43 = vsub.f32 %v7172_v7, %v3029_v58  ;;  %v3104_v27 = vsub.f32 %v7173_v19, %v3029_v58  ;;  %v3303_v32 = vadd.f32 %v6682_v36, %v6680_v55  ;;  %v7177_v26 = vld [vmem:[#allocation18_spill] sm:$0xff] }
 0xd70   : > { %4454 = vpow2.f32 %v3205_v29 }
 0xd71   : > { %v6688_v39 = vpop.eup %4444  ;;  %v3207_v1 = vmul.f32 1.442695, %v3103_v43  ;;  %v3209_v38 = vmul.f32 1.442695, %v3104_v27  ;;  %3304 = vadd.xlane.f32.xlu0 %v3303_v32  ;;  %v7178_v32 = vld [vmem:[#allocation10_spill] sm:$0xff] }
 0xd72   : > { %7174 = vst [vmem:[#allocation19_spill] sm:$0xff] %v6688_v39  ;;  %v6690_v35 = vpop.eup %4446  ;;  %v3032_v0 = vpop.xlane.xlu1 %3031 }
 0xd73   : > { %7175 = vst [vmem:[#allocation20_spill] sm:$0xff] %v6690_v35  ;;  %4456 = vpow2.f32 %v3207_v1  ;;  %v3105_v31 = vsub.f32 %v7176_v15, %v3032_v0  ;;  %v3106_v60 = vsub.f32 %v7177_v26, %v3032_v0  ;;  %v3306_v58 = vadd.f32 %v6690_v35, %v6688_v39  ;;  %v7179_v1 = vld [vmem:[#allocation26_spill] sm:$0xff] }
 0xd74   : > { %4458 = vpow2.f32 %v3209_v38 }
 0xd75   : > { %v6696_v7 = vpop.eup %4448  ;;  %v3211_v29 = vmul.f32 1.442695, %v3105_v31  ;;  %v3213_v19 = vmul.f32 1.442695, %v3106_v60  ;;  %3307 = vadd.xlane.f32.xlu1 %v3306_v58  ;;  %v7180_v58 = vld [vmem:[#allocation11_spill] sm:$0xff] }
 0xd76   : > { %v6698_v43 = vpop.eup %4450  ;;  %v3035_v27 = vpop.xlane.xlu0 %3034 }
 0xd77   : > { %4460 = vpow2.f32 %v3211_v29  ;;  %v3107_v55 = vsub.f32 %v7178_v32, %v3035_v27  ;;  %v3108_v36 = vsub.f32 %v7179_v1, %v3035_v27  ;;  %v3309_v0 = vadd.f32 %v6698_v43, %v6696_v7  ;;  %v7181_v29 = vld [vmem:[#allocation22_spill] sm:$0xff] }
 0xd78   : > { %4462 = vpow2.f32 %v3213_v19 }
 0xd79   : > { %v6704_v15 = vpop.eup %4452  ;;  %v3215_v38 = vmul.f32 1.442695, %v3107_v55  ;;  %v3217_v26 = vmul.f32 1.442695, %v3108_v36  ;;  %3310 = vadd.xlane.f32.xlu0 %v3309_v0 }
 0xd7a   : > { %v6706_v31 = vpop.eup %4454  ;;  %v3038_v60 = vpop.xlane.xlu1 %3037 }
 0xd7b   : > { %4464 = vpow2.f32 %v3215_v38  ;;  %v3109_v39 = vsub.f32 %v7180_v58, %v3038_v60  ;;  %v3110_v35 = vsub.f32 %v7181_v29, %v3038_v60  ;;  %v3312_v27 = vadd.f32 %v6706_v31, %v6704_v15 }
 0xd7c   : > { %4466 = vpow2.f32 %v3217_v26 }
 0xd7d   : > { %v6712_v32 = vpop.eup %4456  ;;  %v3219_v19 = vmul.f32 1.442695, %v3109_v39  ;;  %v3221_v1 = vmul.f32 1.442695, %v3110_v35  ;;  %3313 = vadd.xlane.f32.xlu1 %v3312_v27 }
 0xd7e   : > { %7182 = vst [vmem:[#allocation21_spill] sm:$0xff] %v6712_v32  ;;  %v6714_v55 = vpop.eup %4458 }
 0xd7f   : > { %7183 = vst [vmem:[#allocation14_spill] sm:$0xff] %v6714_v55  ;;  %4468 = vpow2.f32 %v3219_v19  ;;  %v3315_v36 = vadd.f32 %v6714_v55, %v6712_v32 }
 0xd80   : > { %4470 = vpow2.f32 %v3221_v1 }
 0xd81   : > { %v6718_v0 = vpop.eup %4460  ;;  %3316 = vadd.xlane.f32.xlu0 %v3315_v36 }
 0xd82   : > { %7184 = vst [vmem:[#allocation23_spill] sm:$0xff] %v6718_v0  ;;  %v6720_v38 = vpop.eup %4462 }
 0xd83   : > { %7185 = vst [vmem:[#allocation24_spill] sm:$0xff] %v6720_v38  ;;  %v3318_v26 = vadd.f32 %v6720_v38, %v6718_v0 }
 0xd85   : > { %v6724_v60 = vpop.eup %4464  ;;  %3319 = vadd.xlane.f32.xlu1 %v3318_v26 }
 0xd86   : > { %7186 = vst [vmem:[#allocation25_spill] sm:$0xff] %v6724_v60  ;;  %v6726_v39 = vpop.eup %4466 }
 0xd87   : > { %7187 = vst [vmem:[#allocation18_spill] sm:$0xff] %v6726_v39  ;;  %v3321_v35 = vadd.f32 %v6726_v39, %v6724_v60 }
 0xd89   : > { %v6730_v58 = vpop.eup %4468  ;;  %3322 = vadd.xlane.f32.xlu0 %v3321_v35 }
 0xd8a   : > { %7188 = vst [vmem:[#allocation10_spill] sm:$0xff] %v6730_v58  ;;  %v6732_v29 = vpop.eup %4470 }
 0xd8b   : > { %7189 = vst [vmem:[#allocation26_spill] sm:$0xff] %v6732_v29  ;;  %v3324_v27 = vadd.f32 %v6732_v29, %v6730_v58 }
 0xd8d   : > { %3325 = vadd.xlane.f32.xlu1 %v3324_v27 }
 0xdbe   : > { %v3257_v19 = vpop.xlane.xlu0 %3256 }
 0xdbf   : > { %4472 = vrcp.f32 %v3257_v19 }
 0xdc2   : > { %v3260_v1 = vpop.xlane.xlu1 %3259  ;;  %v3041_v36 = vpop.xlane.xlu0 %3040 }
 0xdc3   : > { %4474 = vrcp.f32 %v3260_v1  ;;  %v3111_v26 = vsub.f32 %v6492_v24, %v3041_v36  ;;  %v3112_v32 = vsub.f32 %v6494_v48, %v3041_v36 }
 0xdc5   : > { %v3223_v0 = vmul.f32 1.442695, %v3111_v26  ;;  %v3225_v60 = vmul.f32 1.442695, %v3112_v32 }
 0xdc6   : > { %v3044_v39 = vpop.xlane.xlu1 %3043  ;;  %v3263_v38 = vpop.xlane.xlu0 %3262 }
 0xdc7   : > { %4476 = vpow2.f32 %v3223_v0  ;;  %v3113_v35 = vsub.f32 %v6508_v51, %v3044_v39  ;;  %v3114_v55 = vsub.f32 %v6510_v54, %v3044_v39 }
 0xdc8   : > { %4478 = vpow2.f32 %v3225_v60 }
 0xdc9   : > { %v3227_v27 = vmul.f32 1.442695, %v3113_v35  ;;  %v3229_v58 = vmul.f32 1.442695, %v3114_v55  ;;  %4480 = vrcp.f32 %v3263_v38  ;;  %v4473_v1 = vpop.eup %4472 }
 0xdca   : > { %v3266_v19 = vpop.xlane.xlu1 %3265  ;;  %v3047_v29 = vpop.xlane.xlu0 %3046  ;;  %v3384_v54 = vmul.f32 %v4473_v1, %v6498_v12  ;;  %v3383_v38 = vmul.f32 %v4473_v1, %v6496_v53 }
 0xdcb   : > { %4482 = vpow2.f32 %v3227_v27  ;;  %v3115_v24 = vsub.f32 %v6519_v21, %v3047_v29  ;;  %v3116_v48 = vsub.f32 %v6522_v11, %v3047_v29 }
 0xdcc   : > { %4484 = vpow2.f32 %v3229_v58 }
 0xdcd   : > { %v4475_v32 = vpop.eup %4474  ;;  %4486 = vrcp.f32 %v3266_v19  ;;  %v3231_v0 = vmul.f32 1.442695, %v3115_v24  ;;  %v3233_v36 = vmul.f32 1.442695, %v3116_v48 }
 0xdce   : > { %v3050_v51 = vpop.xlane.xlu1 %3049  ;;  %v3269_v26 = vpop.xlane.xlu0 %3268  ;;  %v3386_v55 = vmul.f32 %v4475_v32, %v6512_v41  ;;  %v3385_v60 = vmul.f32 %v4475_v32, %v6506_v45 }
 0xdcf   : > { %4488 = vpow2.f32 %v3231_v0  ;;  %v3117_v21 = vsub.f32 %v6539_v63, %v3050_v51  ;;  %v3118_v11 = vsub.f32 %v6542_v46, %v3050_v51 }
 0xdd0   : > { %4490 = vpow2.f32 %v3233_v36  ;;  %v3872_v39 = vpack.c.bf16 %v3386_v55, %v3384_v54  ;;  %v3874_v58 = vpack.c.bf16 %v3385_v60, %v3383_v38 }
 0xdd1   : > { %v6748_v29 = vpop.eup %4476  ;;  %v3235_v35 = vmul.f32 1.442695, %v3117_v21  ;;  %v3237_v27 = vmul.f32 1.442695, %v3118_v11  ;;  %4492 = vrcp.f32 %v3269_v26 }
 0xdd2   : > { %v6750_v12 = vpop.eup %4478  ;;  %v3272_v41 = vpop.xlane.xlu1 %3271  ;;  %3873 = vmatprep.subr.bf16.mxu0 %v3872_v39 }
 0xdd3   : > { %v3053_v53 = vpop.xlane.xlu0 %3052  ;;  %v4481_v19 = vpop.eup %4480  ;;  %4494 = vpow2.f32 %v3235_v35  ;;  %3875 = vmatpush1.bf16.xpose.msra.mxu0 %v3874_v58  ;;  %v3327_v46 = vadd.f32 %v6750_v12, %v6748_v29 }
 0xdd4   : > { %v3119_v45 = vsub.f32 %v6551_v50, %v3053_v53  ;;  %v3120_v63 = vsub.f32 %v6554_v16, %v3053_v53  ;;  %4496 = vpow2.f32 %v3237_v27  ;;  %v3388_v51 = vmul.f32 %v4481_v19, %v6528_v30 }
 0xdd5   : > { %v6756_v1 = vpop.eup %4482  ;;  %4498 = vrcp.f32 %v3272_v41  ;;  %3328 = vadd.xlane.f32.xlu0 %v3327_v46  ;;  %v3387_v38 = vmul.f32 %v4481_v19, %v6524_v25 }
 0xdd6   : > { %v3239_v24 = vmul.f32 1.442695, %v3119_v45  ;;  %v3241_v48 = vmul.f32 1.442695, %v3120_v63  ;;  %v6758_v32 = vpop.eup %4484  ;;  %v3056_v0 = vpop.xlane.xlu1 %3055 }
 0xdd7   : > { %v3275_v36 = vpop.xlane.xlu0 %3274  ;;  %v4487_v50 = vpop.eup %4486  ;;  %v3121_v16 = vsub.f32 %v6571_v37, %v3056_v0  ;;  %v3122_v26 = vsub.f32 %v6574_v5, %v3056_v0  ;;  %v3330_v54 = vadd.f32 %v6758_v32, %v6756_v1 }
 0xdd8   : > { %4500 = vpow2.f32 %v3239_v24  ;;  %v3390_v55 = vmul.f32 %v4487_v50, %v6544_v61  ;;  %v3389_v60 = vmul.f32 %v4487_v50, %v6536_v40 }
 0xdd9   : > { %4502 = vpow2.f32 %v3241_v48  ;;  %v6768_v21 = vpop.eup %4488  ;;  %v3243_v11 = vmul.f32 1.442695, %v3121_v16  ;;  %v3245_v30 = vmul.f32 1.442695, %v3122_v26  ;;  %3331 = vadd.xlane.f32.xlu1 %v3330_v54 }
 0xdda   : > { %v6770_v39 = vpop.eup %4490  ;;  %4504 = vrcp.f32 %v3275_v36  ;;  %v3278_v37 = vpop.xlane.xlu1 %3277  ;;  %v3876_v5 = vpack.c.bf16 %v3390_v55, %v3388_v51  ;;  %v3878_v35 = vpack.c.bf16 %v3389_v60, %v3387_v38 }
 0xddb   : > { %v3059_v58 = vpop.xlane.xlu0 %3058  ;;  %v4493_v27 = vpop.eup %4492  ;;  %4506 = vpow2.f32 %v3243_v11  ;;  %v3333_v40 = vadd.f32 %v6770_v39, %v6768_v21 }
 0xddc   : > { %v3123_v61 = vsub.f32 %v6583_v22, %v3059_v58  ;;  %v3124_v25 = vsub.f32 %v6586_v17, %v3059_v58  ;;  %4508 = vpow2.f32 %v3245_v30  ;;  %3877 = vmatprep.subr.bf16.mxu0 %v3876_v5  ;;  %v3392_v46 = vmul.f32 %v4493_v27, %v6560_v62 }
 0xddd   : > { %v6776_v41 = vpop.eup %4494  ;;  %4510 = vrcp.f32 %v3278_v37  ;;  %3879 = vmatpush1.bf16.xpose.msra.mxu0 %v3878_v35  ;;  %3334 = vadd.xlane.f32.xlu0 %v3333_v40  ;;  %v3391_v51 = vmul.f32 %v4493_v27, %v6556_v9 }
 0xdde   : > { %v3247_v53 = vmul.f32 1.442695, %v3123_v61  ;;  %v3249_v19 = vmul.f32 1.442695, %v3124_v25  ;;  %v6778_v45 = vpop.eup %4496  ;;  %v3062_v63 = vpop.xlane.xlu1 %3061 }
 0xddf   : > { %v4499_v22 = vpop.eup %4498  ;;  %v3125_v17 = vsub.f32 %v6603_v13, %v3062_v63  ;;  %v3126_v24 = vsub.f32 %v6606_v42, %v3062_v63  ;;  %v3281_v48 = vpop.xlane.xlu0 %3280  ;;  %v3336_v0 = vadd.f32 %v6778_v45, %v6776_v41 }
 0xde0   : > { %4512 = vpow2.f32 %v3247_v53  ;;  %v3394_v36 = vmul.f32 %v4499_v22, %v6576_v10  ;;  %v3393_v50 = vmul.f32 %v4499_v22, %v6568_v59 }
 0xde1   : > { %4514 = vpow2.f32 %v3249_v19  ;;  %v3251_v62 = vmul.f32 1.442695, %v3125_v17  ;;  %v3253_v26 = vmul.f32 1.442695, %v3126_v24  ;;  %3337 = vadd.xlane.f32.xlu1 %v3336_v0 }
 0xde2   : > { %v6788_v16 = vpop.eup %4500  ;;  %4516 = vrcp.f32 %v3281_v48  ;;  %v3284_v13 = vpop.xlane.xlu1 %3283  ;;  %v3880_v42 = vpack.c.bf16 %v3394_v36, %v3392_v46  ;;  %v3882_v55 = vpack.c.bf16 %v3393_v50, %v3391_v51 }
 0xde3   : > { %v6790_v54 = vpop.eup %4502  ;;  %4518 = vpow2.f32 %v3251_v62 }
 0xde4   : > { %v3339_v38 = vadd.f32 %v6790_v54, %v6788_v16  ;;  %v4505_v10 = vpop.eup %4504  ;;  %4520 = vpow2.f32 %v3253_v26  ;;  %3881 = vmatprep.subr.bf16.mxu0 %v3880_v42 }
 0xde5   : > { %v6794_v9 = vpop.eup %4506  ;;  %4522 = vrcp.f32 %v3284_v13  ;;  %3883 = vmatpush1.bf16.xpose.msra.mxu0 %v3882_v55  ;;  %v3396_v37 = vmul.f32 %v4505_v10, %v6592_v18  ;;  %v3395_v58 = vmul.f32 %v4505_v10, %v6588_v3 }
 0xde6   : > { %3340 = vadd.xlane.f32.xlu0 %v3339_v38  ;;  %v6796_v59 = vpop.eup %4508  ;;  %v3287_v60 = vpop.xlane.xlu0 %3286 }
 0xde7   : > { %v4511_v11 = vpop.eup %4510  ;;  %v3342_v30 = vadd.f32 %v6796_v59, %v6794_v9  ;;  %4524 = vrcp.f32 %v3287_v60 }
 0xde8   : > { %v3398_v5 = vmul.f32 %v4511_v11, %v6608_v44  ;;  %v3397_v35 = vmul.f32 %v4511_v11, %v6600_v8 }
 0xde9   : > { %3343 = vadd.xlane.f32.xlu1 %v3342_v30 }
 0xdea   : > { %v6804_v27 = vpop.eup %4512  ;;  %v3290_v25 = vpop.xlane.xlu1 %3289  ;;  %v3884_v40 = vpack.c.bf16 %v3398_v5, %v3396_v37  ;;  %v3886_v53 = vpack.c.bf16 %v3397_v35, %v3395_v58 }
 0xdeb   : > { %v6806_v61 = vpop.eup %4514  ;;  %4526 = vrcp.f32 %v3290_v25 }
 0xdec   : > { %v3345_v19 = vadd.f32 %v6806_v61, %v6804_v27  ;;  %v4517_v18 = vpop.eup %4516  ;;  %3885 = vmatprep.subr.bf16.mxu0 %v3884_v40  ;;  %v7190_v40 = vld [vmem:[#allocation9_spill] sm:$0xff] }
 0xded   : > { %v6810_v44 = vpop.eup %4518  ;;  %3887 = vmatpush1.bf16.xpose.msra.mxu0 %v3886_v53  ;;  %v3400_v22 = vmul.f32 %v4517_v18, %v6618_v14  ;;  %v3399_v24 = vmul.f32 %v4517_v18, %v6614_v33  ;;  %v7191_v53 = vld [vmem:[#allocation15_spill] sm:$0xff] }
 0xdee   : > { %3346 = vadd.xlane.f32.xlu0 %v3345_v19  ;;  %v6812_v3 = vpop.eup %4520  ;;  %v3293_v8 = vpop.xlane.xlu0 %3292 }
 0xdef   : > { %v4523_v63 = vpop.eup %4522  ;;  %v3348_v46 = vadd.f32 %v6812_v3, %v6810_v44  ;;  %4528 = vrcp.f32 %v3293_v8 }
 0xdf0   : > { %v3402_v17 = vmul.f32 %v4523_v63, %v6626_v2  ;;  %v3401_v48 = vmul.f32 %v4523_v63, %v6624_v28 }
 0xdf1   : > { %3349 = vadd.xlane.f32.xlu1 %v3348_v46  ;;  %v4525_v50 = vpop.eup %4524 }
 0xdf2   : > { %v3296_v0 = vpop.xlane.xlu1 %3295  ;;  %v3888_v36 = vpack.c.bf16 %v3402_v17, %v3400_v22  ;;  %v3890_v51 = vpack.c.bf16 %v3401_v48, %v3399_v24  ;;  %v3404_v13 = vmul.f32 %v4525_v50, %v6634_v49  ;;  %v3403_v33 = vmul.f32 %v4525_v50, %v6632_v57  ;;  %v7192_v22 = vld [vmem:[#allocation17_spill] sm:$0xff]  ;;  %v7193_v24 = vld [vmem:[#allocation20_spill] sm:$0xff]  ;;  %v7194_v48 = vld [vmem:[#allocation19_spill] sm:$0xff] }
 0xdf3   : > { %4530 = vrcp.f32 %v3296_v0  ;;  %v7195_v0 = vld [vmem:[#allocation13_spill] sm:$0xff] }
 0xdf4   : > { %3889 = vmatprep.subr.bf16.mxu0 %v3888_v36 }
 0xdf5   : > { %v4527_v62 = vpop.eup %4526  ;;  %3891 = vmatpush1.bf16.xpose.msra.mxu0 %v3890_v51 }
 0xdf6   : > { %v3299_v26 = vpop.xlane.xlu0 %3298  ;;  %v3406_v14 = vmul.f32 %v4527_v62, %v6642_v4  ;;  %v3405_v2 = vmul.f32 %v4527_v62, %v6640_v47 }
 0xdf7   : > { %4532 = vrcp.f32 %v3299_v26 }
 0xdf8   : > { %v3892_v28 = vpack.c.bf16 %v3406_v14, %v3404_v13  ;;  %v3894_v42 = vpack.c.bf16 %v3405_v2, %v3403_v33 }
 0xdf9   : > { %v4529_v38 = vpop.eup %4528 }
 0xdfa   : > { %v3302_v55 = vpop.xlane.xlu1 %3301  ;;  %3893 = vmatprep.subr.bf16.mxu0 %v3892_v28  ;;  %v3408_v11 = vmul.f32 %v4529_v38, %v6650_v23  ;;  %v3407_v47 = vmul.f32 %v4529_v38, %v6648_v20 }
 0xdfb   : > { %4534 = vrcp.f32 %v3302_v55 }
 0xdfd   : > { %v4531_v10 = vpop.eup %4530  ;;  %3895 = vmatpush1.bf16.xpose.msra.mxu0 %v3894_v42 }
 0xdfe   : > { %v3305_v60 = vpop.xlane.xlu0 %3304  ;;  %v3410_v49 = vmul.f32 %v4531_v10, %v6658_v6  ;;  %v3409_v4 = vmul.f32 %v4531_v10, %v6656_v34 }
 0xdff   : > { %4536 = vrcp.f32 %v3305_v60 }
 0xe00   : > { %v3896_v30 = vpack.c.bf16 %v3410_v49, %v3408_v11  ;;  %v3898_v57 = vpack.c.bf16 %v3409_v4, %v3407_v47  ;;  %v7196_v49 = vld [vmem:[#allocation14_spill] sm:$0xff]  ;;  %v7197_v47 = vld [vmem:[#allocation24_spill] sm:$0xff] }
 0xe01   : > { %v4533_v5 = vpop.eup %4532 }
 0xe02   : > { %v3308_v37 = vpop.xlane.xlu1 %3307  ;;  %3897 = vmatprep.subr.bf16.mxu0 %v3896_v30  ;;  %v3412_v25 = vmul.f32 %v4533_v5, %v6666_v52  ;;  %v3411_v34 = vmul.f32 %v4533_v5, %v7191_v53 }
 0xe03   : > { %4538 = vrcp.f32 %v3308_v37 }
 0xe05   : > { %v4535_v58 = vpop.eup %4534  ;;  %3899 = vmatpush1.bf16.xpose.msra.mxu0 %v3898_v57 }
 0xe06   : > { %v3311_v35 = vpop.xlane.xlu0 %3310  ;;  %v3414_v23 = vmul.f32 %v4535_v58, %v6674_v56  ;;  %v3413_v6 = vmul.f32 %v4535_v58, %v7190_v40 }
 0xe07   : > { %4540 = vrcp.f32 %v3311_v35  ;;  %v7200_v35 = vld [vmem:[#allocation18_spill] sm:$0xff] }
 0xe08   : > { %v3900_v19 = vpack.c.bf16 %v3414_v23, %v3412_v25  ;;  %v3902_v20 = vpack.c.bf16 %v3413_v6, %v3411_v34  ;;  %v7201_v23 = vld [vmem:[#allocation26_spill] sm:$0xff]  ;;  %v7203_v34 = vld [vmem:[#allocation25_spill] sm:$0xff] }
 0xe09   : > { %v4537_v8 = vpop.eup %4536  ;;  %v7202_v6 = vld [vmem:[#allocation10_spill] sm:$0xff] }
 0xe0a   : > { %v3314_v18 = vpop.xlane.xlu1 %3313  ;;  %3901 = vmatprep.subr.bf16.mxu0 %v3900_v19  ;;  %v3416_v17 = vmul.f32 %v4537_v8, %v7192_v22  ;;  %v3415_v36 = vmul.f32 %v4537_v8, %v7195_v0 }
 0xe0b   : > { %4542 = vrcp.f32 %v3314_v18 }
 0xe0d   : > { %v4539_v63 = vpop.eup %4538  ;;  %3903 = vmatpush1.bf16.xpose.msra.mxu0 %v3902_v20 }
 0xe0e   : > { %v3317_v46 = vpop.xlane.xlu0 %3316  ;;  %v3418_v52 = vmul.f32 %v4539_v63, %v7193_v24  ;;  %v3417_v56 = vmul.f32 %v4539_v63, %v7194_v48 }
 0xe0f   : > { %4544 = vrcp.f32 %v3317_v46 }
 0xe10   : > { %v3904_v51 = vpack.c.bf16 %v3418_v52, %v3416_v17  ;;  %v3906_v50 = vpack.c.bf16 %v3417_v56, %v3415_v36 }
 0xe11   : > { %v4541_v26 = vpop.eup %4540 }
 0xe12   : > { %v3320_v62 = vpop.xlane.xlu1 %3319  ;;  %3905 = vmatprep.subr.bf16.mxu0 %v3904_v51  ;;  %v3420_v2 = vmul.f32 %v4541_v26, %v6698_v43  ;;  %v3419_v42 = vmul.f32 %v4541_v26, %v6696_v7  ;;  %v7198_v43 = vld [vmem:[#allocation23_spill] sm:$0xff] }
 0xe13   : > { %4546 = vrcp.f32 %v3320_v62 }
 0xe15   : > { %v4543_v13 = vpop.eup %4542  ;;  %3907 = vmatpush1.bf16.xpose.msra.mxu0 %v3906_v50 }
 0xe16   : > { %v3323_v14 = vpop.xlane.xlu0 %3322  ;;  %v3422_v33 = vmul.f32 %v4543_v13, %v6706_v31  ;;  %v3421_v28 = vmul.f32 %v4543_v13, %v6704_v15  ;;  %v7199_v31 = vld [vmem:[#allocation21_spill] sm:$0xff] }
 0xe17   : > { %4548 = vrcp.f32 %v3323_v14 }
 0xe18   : > { %v3908_v55 = vpack.c.bf16 %v3422_v33, %v3420_v2  ;;  %v3910_v38 = vpack.c.bf16 %v3421_v28, %v3419_v42 }
 0xe19   : > { %v4545_v60 = vpop.eup %4544 }
 0xe1a   : > { %v3326_v10 = vpop.xlane.xlu1 %3325  ;;  %3909 = vmatprep.subr.bf16.mxu0 %v3908_v55  ;;  %v3424_v4 = vmul.f32 %v4545_v60, %v7196_v49  ;;  %v3423_v37 = vmul.f32 %v4545_v60, %v7199_v31  ;;  %v4705_v31 = vld [vmem:[%s4931_s9 + $0x8] sm:$0xff] }
 0xe1b   : > { %4550 = vrcp.f32 %v3326_v10 }
 0xe1d   : > { %v4547_v11 = vpop.eup %4546  ;;  %3911 = vmatpush1.bf16.xpose.msra.mxu0 %v3910_v38 }
 0xe1e   : > { %v3426_v30 = vmul.f32 %v4547_v11, %v7197_v47  ;;  %v3425_v57 = vmul.f32 %v4547_v11, %v7198_v43  ;;  %v7204_v47 = vld [vmem:[#allocation16_spill] sm:$0xff] }
 0xe1f   : > { %v7205_v43 = vld [vmem:[#allocation12_spill] sm:$0xff] }
 0xe20   : > { %v3912_v15 = vpack.c.bf16 %v3426_v30, %v3424_v4  ;;  %v3914_v5 = vpack.c.bf16 %v3425_v57, %v3423_v37 }
 0xe21   : > { %v4549_v7 = vpop.eup %4548 }
 0xe22   : > { %3913 = vmatprep.subr.bf16.mxu0 %v3912_v15  ;;  %v3428_v25 = vmul.f32 %v4549_v7, %v7200_v35  ;;  %v3427_v19 = vmul.f32 %v4549_v7, %v7203_v34 }
 0xe25   : > { %v4551_v58 = vpop.eup %4550  ;;  %3915 = vmatpush1.bf16.xpose.msra.mxu0 %v3914_v5 }
 0xe26   : > { %v3430_v40 = vmul.f32 %v4551_v58, %v7201_v23  ;;  %v3429_v53 = vmul.f32 %v4551_v58, %v7202_v6 }
 0xe28   : > { %v3916_v20 = vpack.c.bf16 %v3430_v40, %v3428_v25  ;;  %v3918_v18 = vpack.c.bf16 %v3429_v53, %v3427_v19 }
 0xe2a   : > { %3917 = vmatprep.subr.bf16.mxu0 %v3916_v20 }
 0xe2d   : > { %3919 = vmatpush1.bf16.xpose.msra.mxu0 %v3918_v18 }
 0xe62   : > { %v3329_v8 = vpop.xlane.xlu0 %3328 }
 0xe63   : > { %4552 = vrcp.f32 %v3329_v8 }
 0xe66   : > { %v3332_v63 = vpop.xlane.xlu1 %3331 }
 0xe67   : > { %4554 = vrcp.f32 %v3332_v63 }
 0xe6a   : > { %v3335_v46 = vpop.xlane.xlu0 %3334 }
 0xe6b   : > { %4556 = vrcp.f32 %v3335_v46 }
 0xe6d   : > { %v4553_v17 = vpop.eup %4552 }
 0xe6e   : > { %v3338_v22 = vpop.xlane.xlu1 %3337  ;;  %v3432_v48 = vmul.f32 %v4553_v17, %v6750_v12  ;;  %v3431_v0 = vmul.f32 %v4553_v17, %v6748_v29 }
 0xe6f   : > { %4558 = vrcp.f32 %v3338_v22 }
 0xe71   : > { %v4555_v24 = vpop.eup %4554 }
 0xe72   : > { %v3434_v56 = vmul.f32 %v4555_v24, %v6758_v32  ;;  %v3433_v36 = vmul.f32 %v4555_v24, %v6756_v1 }
 0xe73   : > { %v3341_v52 = vpop.xlane.xlu0 %3340 }
 0xe74   : > { %v3920_v51 = vpack.c.bf16 %v3434_v56, %v3432_v48  ;;  %v3922_v50 = vpack.c.bf16 %v3433_v36, %v3431_v0  ;;  %4560 = vrcp.f32 %v3341_v52 }
 0xe75   : > { %v4557_v26 = vpop.eup %4556 }
 0xe76   : > { %v3344_v62 = vpop.xlane.xlu1 %3343  ;;  %3921 = vmatprep.subr.bf16.mxu0 %v3920_v51  ;;  %v3436_v2 = vmul.f32 %v4557_v26, %v6770_v39  ;;  %v3435_v32 = vmul.f32 %v4557_v26, %v6768_v21 }
 0xe77   : > { %4562 = vrcp.f32 %v3344_v62  ;;  %3923 = vmatpush1.bf16.xpose.msra.mxu0 %v3922_v50 }
 0xe79   : > { %v4559_v13 = vpop.eup %4558 }
 0xe7a   : > { %v3438_v12 = vmul.f32 %v4559_v13, %v6778_v45  ;;  %v3437_v29 = vmul.f32 %v4559_v13, %v6776_v41 }
 0xe7b   : > { %v3347_v14 = vpop.xlane.xlu0 %3346 }
 0xe7c   : > { %v3924_v33 = vpack.c.bf16 %v3438_v12, %v3436_v2  ;;  %v3926_v1 = vpack.c.bf16 %v3437_v29, %v3435_v32  ;;  %4564 = vrcp.f32 %v3347_v14 }
 0xe7e   : > { %v3350_v28 = vpop.xlane.xlu1 %3349  ;;  %3925 = vmatprep.subr.bf16.mxu0 %v3924_v33  ;;  %v4561_v42 = vpop.eup %4560 }
 0xe7f   : > { %4566 = vrcp.f32 %v3350_v28  ;;  %3927 = vmatpush1.bf16.xpose.msra.mxu0 %v3926_v1  ;;  %v3440_v38 = vmul.f32 %v4561_v42, %v6790_v54  ;;  %v3439_v39 = vmul.f32 %v4561_v42, %v6788_v16 }
 0xe81   : > { %v4563_v55 = vpop.eup %4562 }
 0xe82   : > { %v3442_v10 = vmul.f32 %v4563_v55, %v6796_v59  ;;  %v3441_v45 = vmul.f32 %v4563_v55, %v6794_v9 }
 0xe84   : > { %v3928_v21 = vpack.c.bf16 %v3442_v10, %v3440_v38  ;;  %v3930_v41 = vpack.c.bf16 %v3441_v45, %v3439_v39 }
 0xe86   : > { %3929 = vmatprep.subr.bf16.mxu0 %v3928_v21  ;;  %v4565_v60 = vpop.eup %4564 }
 0xe87   : > { %3931 = vmatpush1.bf16.xpose.msra.mxu0 %v3930_v41  ;;  %v3444_v49 = vmul.f32 %v4565_v60, %v6806_v61  ;;  %v3443_v54 = vmul.f32 %v4565_v60, %v6804_v27 }
 0xe89   : > { %v4567_v11 = vpop.eup %4566 }
 0xe8a   : > { %v3446_v4 = vmul.f32 %v4567_v11, %v6812_v3  ;;  %v3445_v59 = vmul.f32 %v4567_v11, %v6810_v44  ;;  %v4704_v44 = vld [vmem:[%s4931_s9] sm:$0xff]  ;;  %s4807_s9 = smov [#allocation6]  }
 0xe8b   : > { %s4738_s24 = sshll.u32 %s4807_s9, 4  ;;  %s4739_s24 = int_to_ptr.vmem [resolvable:$false] %s4738_s24 }
 0xe8c   : > { %v3932_v16 = vpack.c.bf16 %v3446_v4, %v3444_v49  ;;  %v3934_v9 = vpack.c.bf16 %v3445_v59, %v3443_v54  ;;  %s4740_s26 = scalar_lea.vmem %s4739_s24, 512  ;;  %p4741_p2 = scmp.lt.s32.totalorder %s6876_s15, %s4739_s24 }
 0xe8d   : > { %p4742_p3 = scmp.lt.s32.totalorder %s4740_s26, %s4734_s19 }
 0xe8e   : > { %3933 = vmatprep.subr.bf16.mxu0 %v3932_v16 }
 0xe8f   : > { %3935 = vmatpush1.bf16.xpose.msra.mxu0 %v3934_v9  ;;  %p4743_p4 = por %p4742_p3, %p4741_p2 }
 0xe91   : > { %p4744_p7 = pnand %p4743_p4, %p4737_p12 }
 0xe96   : > { %3522 = vmatmul.mubr.f32.vlgmr.msra.gmra.mrb[74].mxu0 %v7204_v47 }
 0xf69   : > { %v3523_v30 = vpop.f32.mrb[74].mxu0 }
 0xf6a   : > { %v3528_v57 = vmul.f32 %v3523_v30, %v7205_v43  ;;  %v3525_v61 = vpop.f32.mrb[75].mxu0 }
 0xf6b   : > { %v3529_v27 = vmul.f32 %v3525_v61, %v7205_v43 }
 0xf6c   : > { %v3530_v3 = vadd.f32 %v4704_v44, %v3528_v57 }
 0xf6d   : > { %v3531_v37 = vadd.f32 %v4705_v31, %v3529_v27 }
 0xf6e   : > { %3532 = vst [vmem:[%s233_s14] sm:$0xff] %v3530_v3 }
 0xf6f   : > { %3533 = vst [vmem:[%s233_s14 + $0x8] sm:$0xff] %v3531_v37 }
 0xf70   : > { %4747 = shalt.err (!%p4744_p7)
}
 0xf71   : > { %s4748_s27 = scalar_lea.hbm %s6874_s18, 256  ;;  %s4752_s8 = scalar_lea.hbm %s6921_s5, 512 }
 0xf72   : > { %p4749_p8 = scmp.ne.s32.totalorder %s6874_s18, %s4748_s27  ;;  %p4753_p1 = scmp.lt.u32.totalorder %s6874_s18, %s6921_s5 }
 0xf73   : > { %p4754_p0 = scmp.lt.u32.totalorder %s4752_s8, %s4748_s27  ;;  %p4756_p6 = scmp.lt.u32.totalorder %s4748_s27, %s6874_s18 }
 0xf74   : > { %p4750_p11 = pnand %p4749_p8, %p7206_p9 }
 0xf75   : > { %p4755_p5 = por %p4754_p0, %p4753_p1 }
 0xf76   : > { %p4751_p13 = pneg %p4750_p11 }
 0xf77   : > { %p4757_p10 = por %p4756_p6, %p4755_p5 }
 0xf79   : > { %p4758_p12 = pnand %p4757_p10, %p4751_p13 }
 0xf7b   : > { %4761 = shalt.err (!%p4758_p12)
}
 0xf7c   : > { %3940 = dma.vmem_to_hbm [thread:$0]  (%p7206_p9), %s6876_s15, 256, %s6874_s18, %s3535_s0  }
 0xf7d PF: > { %p3952_p2 = scmp.ge.s32.totalorder %s4800_s23, 2  ;;  %s3561_s12 = sand.u32 1, %s4788_s20  }
 0xf7e   : > { %p7207_p3 = scmp.ne.s32.totalorder %s7020_s30, 0  ;;  %s3562_s13 = scalar_lea.sflag [#allocation5], %s3561_s12 }
 0xf80   : > { %p3947_p4 = pnand %p3952_p2, %p7207_p3 }
 0xf82   : > { %4783 = dma.done.wait (!%p3947_p4), %s3562_s13, 256  }
 0xf83   : > { %4785 = vsyncadd (!%p3947_p4), %s3562_s13, 4294967040  ;;  %p17_p7 = scmp.ge.s32.totalorder %s4866_s25, 4   ;;  %s7208_s20 = smov %s4792_s21 }
 0xf84   : > { %s7209_s21 = smov %s4796_s22  ;;  %s7210_s22 = smov %s4877_s28 }
 0xf85   : > { %s7211_s23 = smov %s4866_s25  ;;  %19 = sbr.rel (!%p17_p7) target bundleno = 6 (0x6), region = 80 }
 0xf8c   :  { %3567 = vsyncpa [#allocation4], 1 }
 0xf8d   :  { %3569 = vsyncpa [#allocation4 + $0x1], 1 }
 0xf8e   :  { %3570 = vsyncpa [#allocation5], 1 }
 0xf8f   :  { %3572 = vsyncpa [#allocation5 + $0x1], 1 }

</bundles_post_ra>
